<compile_context>
chip_gen: v5e
topology: v5e:2x2
jax: 0.10.0
libtpu: 0.0.40
codegen_flags: <defaults>
</compile_context>

<pallas_src>
import functools

import jax
import jax.numpy as jnp
from jax.experimental import pallas as pl
from jax.experimental.pallas import tpu as pltpu


# ----------------------------- Pallas kernels -----------------------------

def _rep_spec(shape):
    """Replicated (grid-invariant) full-array BlockSpec."""
    nd = len(shape)
    return pl.BlockSpec(shape, lambda b, _nd=nd: (0,) * _nd)


def make_dense_kernel(n_pieces, dil, T, F, C, topR):
    """One DenseBlock depth: dilated Conv2d(k=(2,3)) + InstanceNorm + PReLU.

    Inputs (refs): n_pieces canonical bf16 maps (1, C, Lc), packed bf16 weights
    (n_pieces, 6, C, C), packed f32 per-channel params (C, 8) = [b, g, bt, a],
    valid-column mask (1, Lw).  Output: (1, C, Lc) bf16 in canonical layout.
    """
    Fp = F + 2
    Lw = T * Fp
    inv_n = 1.0 / float(T * F)

    def kernel(*refs):
        piece_refs = refs[:n_pieces]
        w_ref = refs[n_pieces]          # (n_pieces, 6, C, C) bf16
        prm_ref = refs[n_pieces + 1]    # (C, 8) f32
        mask_ref = refs[n_pieces + 2]   # (1, Lw) f32
        o_ref = refs[n_pieces + 3]      # (1, C, Lc) bf16

        # conv = sum over pieces x taps of one MXU matmul per (piece, tap);
        # each tap is just a static lane-offset window of the flat padded map.
        acc = jnp.zeros((C, Lw), jnp.float32)
        for p in range(n_pieces):
            for kh in range(2):
                for kw in range(3):
                    off = (topR + (kh - 1) * dil) * Fp + (kw - 1)
                    xs = piece_refs[p][0, :, pl.ds(off, Lw)]       # (C, Lw) bf16
                    acc = acc + jnp.dot(w_ref[p, kh * 3 + kw], xs,
                                        preferred_element_type=jnp.float32)

        prm = prm_ref[...]
        b, g, bt, a = prm[:, 0:1], prm[:, 1:2], prm[:, 2:3], prm[:, 3:4]
        mask = mask_ref[...]                                       # (1, Lw)

        y = acc + b                                                # conv bias
        # InstanceNorm2d(affine) with stats over the T*F valid positions only.
        mean = jnp.sum(y * mask, axis=1, keepdims=True) * inv_n
        d = (y - mean) * mask
        var = jnp.sum(d * d, axis=1, keepdims=True) * inv_n
        z = (y - mean) * jax.lax.rsqrt(var + 1e-5)
        z = z * g + bt
        z = jnp.where(z >= 0.0, z, a * z)                          # PReLU
        z = (z * mask).astype(o_ref.dtype)                         # zero pad cols

        # Emit directly in the canonical layout consumed by later stages:
        # topR zero rows, the data window, one trailing zero row.
        zeros_top = jnp.zeros((C, topR * Fp), o_ref.dtype)
        zeros_bot = jnp.zeros((C, Fp), o_ref.dtype)
        o_ref[0] = jnp.concatenate([zeros_top, z, zeros_bot], axis=1)

    return kernel


def make_final_kernel(T, F, C, topR, beta):
    """SPConvTranspose2d(C->C, (1,3), r=2) + sub-pixel interleave +
    InstanceNorm + PReLU + Conv2d(C->1, (1,2)) + LearnableSigmoid2d, fused.

    Emits the even / odd frequency streams as (1, 2, Lw); the tiny interleave /
    transpose to (B, Fout, T) is wrapper glue on a C-times-smaller tensor.
    """
    Fp = F + 2
    Lw = T * Fp
    inv_n = 1.0 / float(2 * T * F)

    def kernel(x_ref, wsp_ref, prm_ref, wfin_ref, mask_ref, slope_ref, o_ref):
        # SPConv inner conv: Conv2d(C, 2C, (1,3)) on the width-padded map.
        acc = jnp.zeros((2 * C, Lw), jnp.float32)
        for kw in range(3):
            off = topR * Fp + (kw - 1)
            xs = x_ref[0, :, pl.ds(off, Lw)]                       # (C, Lw) bf16
            acc = acc + jnp.dot(wsp_ref[kw], xs,
                                preferred_element_type=jnp.float32)

        prm = prm_ref[...]                                         # (2C, 8)
        y = acc + prm[:, 0:1]                                      # conv bias
        y0 = y[0:C]            # r=0 half -> even output columns (2f)
        y1 = y[C:2 * C]        # r=1 half -> odd  output columns (2f+1)

        mask = mask_ref[...]                                       # (1, Lw)
        g, bt, a = prm[0:C, 1:2], prm[0:C, 2:3], prm[0:C, 3:4]

        # InstanceNorm over the interleaved (T, 2F) map == both halves jointly.
        mean = (jnp.sum(y0 * mask, axis=1, keepdims=True) +
                jnp.sum(y1 * mask, axis=1, keepdims=True)) * inv_n
        d0 = (y0 - mean) * mask
        d1 = (y1 - mean) * mask
        var = (jnp.sum(d0 * d0, axis=1, keepdims=True) +
               jnp.sum(d1 * d1, axis=1, keepdims=True)) * inv_n
        r = jax.lax.rsqrt(var + 1e-5)
        z0 = (y0 - mean) * r * g + bt
        z1 = (y1 - mean) * r * g + bt
        z0 = jnp.where(z0 >= 0.0, z0, a * z0)                      # PReLU
        z1 = jnp.where(z1 >= 0.0, z1, a * z1)

        # Conv2d(C, 1, (1,2)) on the interleaved map, split by parity:
        #   even f'=2f  : w0.z0[f]   + w1.z1[f]
        #   odd  f'=2f+1: w0.z1[f]   + w1.z0[f+1]
        wfin = wfin_ref[...]                                       # (C, 8)
        w0, w1 = wfin[:, 0:1], wfin[:, 1:2]
        bc = wfin[0:1, 2:3]
        r00 = jnp.sum(w0 * z0, axis=0, keepdims=True)              # (1, Lw)
        r11 = jnp.sum(w1 * z1, axis=0, keepdims=True)
        r10 = jnp.sum(w0 * z1, axis=0, keepdims=True)
        r01 = jnp.sum(w1 * z0, axis=0, keepdims=True)
        r01s = jnp.concatenate([r01[:, 1:], r01[:, :1]], axis=1)   # r01 at m+1
        even = r00 + r11 + bc
        odd = r10 + r01s + bc

        # LearnableSigmoid2d: beta * sigmoid(slope[f'] * x), slope pre-tiled.
        se, so = slope_ref[0:1], slope_ref[1:2]
        oe = beta / (1.0 + jnp.exp(-(se * even)))
        oo = beta / (1.0 + jnp.exp(-(so * odd)))
        o_ref[0] = jnp.concatenate([oe, oo], axis=0)               # (2, Lw)

    return kernel


# ------------------------------ pallas_call wrappers ------------------------

_COMPILER_PARAMS = pltpu.CompilerParams(
    dimension_semantics=("parallel",),
    vmem_limit_bytes=48 * 1024 * 1024,
)


def dense_step(pieces, w_packed, prm, mask, *, dil, T, F, C, topR):
    B, _, Lc = pieces[0].shape
    n_pieces = len(pieces)
    kernel = make_dense_kernel(n_pieces, dil, T, F, C, topR)
    in_specs = ([pl.BlockSpec((1, C, Lc), lambda b: (b, 0, 0))
                 for _ in range(n_pieces)]
                + [_rep_spec(w_packed.shape), _rep_spec(prm.shape),
                   _rep_spec(mask.shape)])
    return pl.pallas_call(
        kernel,
        out_shape=jax.ShapeDtypeStruct((B, C, Lc), jnp.bfloat16),
        grid=(B,),
        in_specs=in_specs,
        out_specs=pl.BlockSpec((1, C, Lc), lambda b: (b, 0, 0)),
        compiler_params=_COMPILER_PARAMS,
    )(*pieces, w_packed, prm, mask)


def final_step(x_canon, wsp, prm, wfin, mask, slope_win, *, beta, T, F, C, topR):
    B, _, Lc = x_canon.shape
    Lw = T * (F + 2)
    kernel = make_final_kernel(T, F, C, topR, beta)
    return pl.pallas_call(
        kernel,
        out_shape=jax.ShapeDtypeStruct((B, 2, Lw), jnp.float32),
        grid=(B,),
        in_specs=[pl.BlockSpec((1, C, Lc), lambda b: (b, 0, 0)),
                  _rep_spec(wsp.shape), _rep_spec(prm.shape),
                  _rep_spec(wfin.shape), _rep_spec(mask.shape),
                  _rep_spec(slope_win.shape)],
        out_specs=pl.BlockSpec((1, 2, Lw), lambda b: (b, 0, 0)),
        compiler_params=_COMPILER_PARAMS,
    )(x_canon, wsp, prm, wfin, mask, slope_win)


# --------------------------- forward (wrapper glue) -------------------------

def mask_decoder_forward(x, prep, *, beta, depth=4, topR=9):
    """x: (B, C, T, F) NCHW -> (B, n_fft//2+1, T), matching the PyTorch module."""
    B, C, T, F = x.shape
    Fp = F + 2
    Lc = (T + topR + 1) * Fp
    mask = prep["final"]["mask"]

    # canonical padded / flattened bf16 layout of the input (built once).
    x0 = jnp.pad(x, ((0, 0), (0, 0), (topR, 1), (0, 2))).astype(jnp.bfloat16)
    pieces = [x0.reshape(B, C, Lc)]

    # ---- DenseBlock(depth=4): channel concat is never materialized ----
    for i in range(depth):
        p = prep["dense"][i]
        y = dense_step(pieces, p["w"], p["prm"], mask,
                       dil=2 ** i, T=T, F=F, C=C, topR=topR)
        pieces.insert(0, y)          # newest-first == torch.cat([x, skip], 1)

    # ---- fused SPConv + interleave + IN + PReLU + Conv(1,2) + sigmoid ----
    fin = prep["final"]
    eo = final_step(pieces[0], fin["wsp"], fin["prm"], fin["wfin"],
                    mask, fin["slope_win"], beta=beta, T=T, F=F, C=C, topR=topR)

    # tiny glue: drop pad columns, interleave even/odd streams, transpose.
    eo = eo.reshape(B, 2, T, Fp)
    even = eo[:, 0, :, :F]
    odd = eo[:, 1, :, :F]
    inter = jnp.stack([even, odd], axis=-1).reshape(B, T, 2 * F)[:, :, :2 * F - 1]
    return jnp.transpose(inter, (0, 2, 1))      # (B, Fout, T)


# --------------------------- parameter packing ------------------------------

def prepare_params(params, T, F, C):
    """Pack PyTorch-layout params into kernel-ready arrays (done once)."""
    Fp = F + 2
    Lw = T * Fp
    prep = {"dense": []}
    for i, p in enumerate(params["dense"]):
        n = i + 1
        w = p["w"]  # (C, n*C, 2, 3)
        wp = (w.reshape(C, n, C, 2, 3)
               .transpose(1, 3, 4, 0, 2)
               .reshape(n, 6, C, C)).astype(jnp.bfloat16)
        prm = jnp.zeros((C, 8), jnp.float32)
        prm = (prm.at[:, 0].set(p["b"]).at[:, 1].set(p["g"])
                  .at[:, 2].set(p["bt"]).at[:, 3].set(p["a"]))
        prep["dense"].append({"w": wp, "prm": prm})

    sp, fin = params["sp"], params["fin"]
    wsp = sp["w"][:, :, 0, :].transpose(2, 0, 1).astype(jnp.bfloat16)   # (3,2C,C)
    prm2 = jnp.zeros((2 * C, 8), jnp.float32)
    prm2 = (prm2.at[:, 0].set(sp["b"])
                .at[:C, 1].set(fin["g"]).at[:C, 2].set(fin["bt"])
                .at[:C, 3].set(fin["a"]))
    wfin = jnp.zeros((C, 8), jnp.float32)
    wfin = (wfin.at[:, 0].set(fin["w"][0, :, 0, 0])
                .at[:, 1].set(fin["w"][0, :, 0, 1])
                .at[:, 2].set(fin["bc"]))
    slope = fin["slope"][:, 0]                                          # (2F-1,)
    sl_e = jnp.zeros((Fp,), jnp.float32).at[:F].set(slope[0::2])
    sl_o = jnp.zeros((Fp,), jnp.float32).at[:F - 1].set(slope[1::2])
    slope_win = jnp.stack([jnp.tile(sl_e, T), jnp.tile(sl_o, T)], axis=0)
    mask = jnp.tile(jnp.concatenate([jnp.ones((F,), jnp.float32),
                                     jnp.zeros((2,), jnp.float32)]),
                    T).reshape(1, Lw)
    prep["final"] = {"wsp": wsp, "prm": prm2, "wfin": wfin,
                     "slope_win": slope_win, "mask": mask}
    return prep


# ------------------------- deterministic params ----------------------------

def init_params(key, C, n_fft):
    Fout = n_fft // 2 + 1
    keys = iter(jax.random.split(key, 64))

    def nrm(shape, scale=0.1):
        return scale * jax.random.normal(next(keys), shape, jnp.float32)

    def bf16_round(w):      # kernels use bf16 weights; keep the reference equal
        return w.astype(jnp.bfloat16).astype(jnp.float32)

    params = {"dense": []}
    for i in range(4):
        cin = C * (i + 1)
        params["dense"].append({
            "w": bf16_round(nrm((C, cin, 2, 3))),
            "b": nrm((C,)),
            "g": 1.0 + nrm((C,)),
            "bt": nrm((C,)),
            "a": 0.25 * jnp.ones((C,), jnp.float32),       # PReLU init
        })
    params["sp"] = {"w": bf16_round(nrm((2 * C, C, 1, 3))), "b": nrm((2 * C,))}
    params["fin"] = {
        "g": 1.0 + nrm((C,)), "bt": nrm((C,)),
        "a": 0.25 * jnp.ones((C,), jnp.float32),
        "w": nrm((1, C, 1, 2)),                            # Conv2d(C, 1, (1,2))
        "bc": nrm(()),
        "slope": 1.0 + nrm((Fout, 1)),                     # LearnableSigmoid
    }
    return params


# ------------------------- pure-JAX reference -------------------------------

def _ref_conv2d(x, w, b, dil_h, pad):
    l, r, t, bo = pad
    xp = jnp.pad(x, ((0, 0), (0, 0), (t, bo), (l, r)))
    Co, Cin, KH, KW = w.shape
    B, _, Tp, Fp = xp.shape
    To, Fo = Tp - (KH - 1) * dil_h, Fp - (KW - 1)
    y = jnp.zeros((B, Co, To, Fo), jnp.float32)
    for kh in range(KH):
        for kw in range(KW):
            y = y + jnp.einsum('oi,bitf->botf', w[:, :, kh, kw],
                               xp[:, :, kh * dil_h:kh * dil_h + To, kw:kw + Fo])
    return y + b.reshape(1, Co, 1, 1)


def _ref_in_prelu(x, g, bt, a):
    mean = x.mean(axis=(2, 3), keepdims=True)
    var = ((x - mean) ** 2).mean(axis=(2, 3), keepdims=True)
    z = ((x - mean) * jax.lax.rsqrt(var + 1e-5) * g.reshape(1, -1, 1, 1)
         + bt.reshape(1, -1, 1, 1))
    return jnp.where(z >= 0, z, a.reshape(1, -1, 1, 1) * z)


def ref_forward(x, params, beta):
    B, C, T, F = x.shape
    skip = x
    for i in range(4):
        p = params["dense"][i]
        y = _ref_conv2d(skip, p["w"], p["b"], 2 ** i, (1, 1, 2 ** i, 0))
        y = _ref_in_prelu(y, p["g"], p["bt"], p["a"])
        skip = jnp.concatenate([y, skip], axis=1)
    x = y
    sp, fin = params["sp"], params["fin"]
    y = _ref_conv2d(x, sp["w"], sp["b"], 1, (1, 1, 0, 0))          # (B,2C,T,F)
    y = y.reshape(B, 2, C, T, F).transpose(0, 2, 3, 4, 1).reshape(B, C, T, 2 * F)
    z = _ref_in_prelu(y, fin["g"], fin["bt"], fin["a"])
    w01 = fin["w"]
    out = (jnp.einsum('c,bctf->btf', w01[0, :, 0, 0], z[:, :, :, :-1]) +
           jnp.einsum('c,bctf->btf', w01[0, :, 0, 1], z[:, :, :, 1:]) + fin["bc"])
    out = out.transpose(0, 2, 1)                                   # (B, Fout, T)
    slope = fin["slope"].reshape(1, -1, 1)
    return beta * jax.nn.sigmoid(slope * out)


# --------------------------------- main ------------------------------------

if __name__ == "__main__":
    # small config consistent with the module:
    #   dense_channel=8, n_fft=32  =>  F_in = n_fft//4+1 = 9, Fout = n_fft//2+1 = 17
    dense_channel = 8
    n_fft = 32
    beta = 2.0
    B, T = 2, 8
    F_in = n_fft // 4 + 1
    Fout = n_fft // 2 + 1

    key = jax.random.PRNGKey(0)
    kx, kp = jax.random.split(key)
    x = jax.random.normal(kx, (B, dense_channel, T, F_in), jnp.float32)
    params = init_params(kp, dense_channel, n_fft)
    prep = prepare_params(params, T, F_in, dense_channel)

    fwd = jax.jit(functools.partial(mask_decoder_forward, beta=beta))
    out = jax.block_until_ready(fwd(x, prep))

    assert out.shape == (B, Fout, T), out.shape
    assert bool(jnp.all(jnp.isfinite(out)))

    # loose tolerance: kernels use bf16 activations/weights between stages.
    ref = ref_forward(x.astype(jnp.bfloat16).astype(jnp.float32), params, beta)
    max_diff = float(jnp.max(jnp.abs(out - ref)))
    assert max_diff < 0.15, f"mismatch vs reference: {max_diff}"
    print("KERNEL_OK")
</pallas_src>

<mosaic_0001>
module attributes {stable_mosaic.version = 11 : i64} {
  func.func @kernel(%arg0: i32, %arg1: memref<1x8x198xbf16, #tpu.memory_space<vmem>>, %arg2: memref<1x6x8x8xbf16, #tpu.memory_space<vmem>>, %arg3: memref<8x8xf32, #tpu.memory_space<vmem>>, %arg4: memref<1x88xf32, #tpu.memory_space<vmem>>, %arg5: memref<1x8x198xbf16, #tpu.memory_space<vmem>>) attributes {dimension_semantics = [#tpu.dimension_semantics<parallel>], iteration_bounds = array<i64: 2>, scalar_prefetch = 0 : i64, scratch_operands = 0 : i64, tpu.core_type = #tpu.core_type<tc>, window_params = [{transform_indices = @transform_0, window_bounds = array<i64: 1, 8, 198>}, {pipeline_mode = #tpu.pipeline_mode<synchronous>, transform_indices = @transform_1, window_bounds = array<i64: 1, 6, 8, 8>}, {pipeline_mode = #tpu.pipeline_mode<synchronous>, transform_indices = @transform_2, window_bounds = array<i64: 8, 8>}, {pipeline_mode = #tpu.pipeline_mode<synchronous>, transform_indices = @transform_3, window_bounds = array<i64: 1, 88>}, {transform_indices = @transform_4, window_bounds = array<i64: 1, 8, 198>}]} {
    %cst = arith.constant 0.000000e+00 : f32
    %0 = vector.broadcast %cst : f32 to vector<8x88xf32>
    %c0 = arith.constant 0 : index
    %c0_0 = arith.constant 0 : index
    %c87 = arith.constant 87 : index
    %1 = vector.load %arg1[%c0, %c0_0, %c87] : memref<1x8x198xbf16, #tpu.memory_space<vmem>>, vector<1x8x88xbf16>
    %2 = vector.shape_cast %1 : vector<1x8x88xbf16> to vector<8x88xbf16>
    %c0_1 = arith.constant 0 : index
    %c0_2 = arith.constant 0 : index
    %c0_3 = arith.constant 0 : index
    %c0_4 = arith.constant 0 : index
    %3 = vector.load %arg2[%c0_1, %c0_2, %c0_3, %c0_4] : memref<1x6x8x8xbf16, #tpu.memory_space<vmem>>, vector<1x1x8x8xbf16>
    %4 = vector.shape_cast %3 : vector<1x1x8x8xbf16> to vector<8x8xbf16>
    %cst_5 = arith.constant dense<0.000000e+00> : vector<8x88xf32>
    %5 = tpu.matmul %4, %2, %cst_5 {dimension_numbers = #tpu.dot_dimension_numbers<[1], [0], [0], [1], [0, 0, 1, 1], [], []>} : vector<8x8xbf16>, vector<8x88xbf16>, vector<8x88xf32> -> vector<8x88xf32>
    %6 = arith.addf %0, %5 : vector<8x88xf32>
    %c0_6 = arith.constant 0 : index
    %c0_7 = arith.constant 0 : index
    %c88 = arith.constant 88 : index
    %7 = vector.load %arg1[%c0_6, %c0_7, %c88] : memref<1x8x198xbf16, #tpu.memory_space<vmem>>, vector<1x8x88xbf16>
    %8 = vector.shape_cast %7 : vector<1x8x88xbf16> to vector<8x88xbf16>
    %c0_8 = arith.constant 0 : index
    %c1 = arith.constant 1 : index
    %c0_9 = arith.constant 0 : index
    %c0_10 = arith.constant 0 : index
    %9 = vector.load %arg2[%c0_8, %c1, %c0_9, %c0_10] : memref<1x6x8x8xbf16, #tpu.memory_space<vmem>>, vector<1x1x8x8xbf16>
    %10 = vector.shape_cast %9 : vector<1x1x8x8xbf16> to vector<8x8xbf16>
    %cst_11 = arith.constant dense<0.000000e+00> : vector<8x88xf32>
    %11 = tpu.matmul %10, %8, %cst_11 {dimension_numbers = #tpu.dot_dimension_numbers<[1], [0], [0], [1], [0, 0, 1, 1], [], []>} : vector<8x8xbf16>, vector<8x88xbf16>, vector<8x88xf32> -> vector<8x88xf32>
    %12 = arith.addf %6, %11 : vector<8x88xf32>
    %c0_12 = arith.constant 0 : index
    %c0_13 = arith.constant 0 : index
    %c89 = arith.constant 89 : index
    %13 = vector.load %arg1[%c0_12, %c0_13, %c89] : memref<1x8x198xbf16, #tpu.memory_space<vmem>>, vector<1x8x88xbf16>
    %14 = vector.shape_cast %13 : vector<1x8x88xbf16> to vector<8x88xbf16>
    %c0_14 = arith.constant 0 : index
    %c2 = arith.constant 2 : index
    %c0_15 = arith.constant 0 : index
    %c0_16 = arith.constant 0 : index
    %15 = vector.load %arg2[%c0_14, %c2, %c0_15, %c0_16] : memref<1x6x8x8xbf16, #tpu.memory_space<vmem>>, vector<1x1x8x8xbf16>
    %16 = vector.shape_cast %15 : vector<1x1x8x8xbf16> to vector<8x8xbf16>
    %cst_17 = arith.constant dense<0.000000e+00> : vector<8x88xf32>
    %17 = tpu.matmul %16, %14, %cst_17 {dimension_numbers = #tpu.dot_dimension_numbers<[1], [0], [0], [1], [0, 0, 1, 1], [], []>} : vector<8x8xbf16>, vector<8x88xbf16>, vector<8x88xf32> -> vector<8x88xf32>
    %18 = arith.addf %12, %17 : vector<8x88xf32>
    %c0_18 = arith.constant 0 : index
    %c0_19 = arith.constant 0 : index
    %c98 = arith.constant 98 : index
    %19 = vector.load %arg1[%c0_18, %c0_19, %c98] : memref<1x8x198xbf16, #tpu.memory_space<vmem>>, vector<1x8x88xbf16>
    %20 = vector.shape_cast %19 : vector<1x8x88xbf16> to vector<8x88xbf16>
    %c0_20 = arith.constant 0 : index
    %c3 = arith.constant 3 : index
    %c0_21 = arith.constant 0 : index
    %c0_22 = arith.constant 0 : index
    %21 = vector.load %arg2[%c0_20, %c3, %c0_21, %c0_22] : memref<1x6x8x8xbf16, #tpu.memory_space<vmem>>, vector<1x1x8x8xbf16>
    %22 = vector.shape_cast %21 : vector<1x1x8x8xbf16> to vector<8x8xbf16>
    %cst_23 = arith.constant dense<0.000000e+00> : vector<8x88xf32>
    %23 = tpu.matmul %22, %20, %cst_23 {dimension_numbers = #tpu.dot_dimension_numbers<[1], [0], [0], [1], [0, 0, 1, 1], [], []>} : vector<8x8xbf16>, vector<8x88xbf16>, vector<8x88xf32> -> vector<8x88xf32>
    %24 = arith.addf %18, %23 : vector<8x88xf32>
    %c0_24 = arith.constant 0 : index
    %c0_25 = arith.constant 0 : index
    %c99 = arith.constant 99 : index
    %25 = vector.load %arg1[%c0_24, %c0_25, %c99] : memref<1x8x198xbf16, #tpu.memory_space<vmem>>, vector<1x8x88xbf16>
    %26 = vector.shape_cast %25 : vector<1x8x88xbf16> to vector<8x88xbf16>
    %c0_26 = arith.constant 0 : index
    %c4 = arith.constant 4 : index
    %c0_27 = arith.constant 0 : index
    %c0_28 = arith.constant 0 : index
    %27 = vector.load %arg2[%c0_26, %c4, %c0_27, %c0_28] : memref<1x6x8x8xbf16, #tpu.memory_space<vmem>>, vector<1x1x8x8xbf16>
    %28 = vector.shape_cast %27 : vector<1x1x8x8xbf16> to vector<8x8xbf16>
    %cst_29 = arith.constant dense<0.000000e+00> : vector<8x88xf32>
    %29 = tpu.matmul %28, %26, %cst_29 {dimension_numbers = #tpu.dot_dimension_numbers<[1], [0], [0], [1], [0, 0, 1, 1], [], []>} : vector<8x8xbf16>, vector<8x88xbf16>, vector<8x88xf32> -> vector<8x88xf32>
    %30 = arith.addf %24, %29 : vector<8x88xf32>
    %c0_30 = arith.constant 0 : index
    %c0_31 = arith.constant 0 : index
    %c100 = arith.constant 100 : index
    %31 = vector.load %arg1[%c0_30, %c0_31, %c100] : memref<1x8x198xbf16, #tpu.memory_space<vmem>>, vector<1x8x88xbf16>
    %32 = vector.shape_cast %31 : vector<1x8x88xbf16> to vector<8x88xbf16>
    %c0_32 = arith.constant 0 : index
    %c5 = arith.constant 5 : index
    %c0_33 = arith.constant 0 : index
    %c0_34 = arith.constant 0 : index
    %33 = vector.load %arg2[%c0_32, %c5, %c0_33, %c0_34] : memref<1x6x8x8xbf16, #tpu.memory_space<vmem>>, vector<1x1x8x8xbf16>
    %34 = vector.shape_cast %33 : vector<1x1x8x8xbf16> to vector<8x8xbf16>
    %cst_35 = arith.constant dense<0.000000e+00> : vector<8x88xf32>
    %35 = tpu.matmul %34, %32, %cst_35 {dimension_numbers = #tpu.dot_dimension_numbers<[1], [0], [0], [1], [0, 0, 1, 1], [], []>} : vector<8x8xbf16>, vector<8x88xbf16>, vector<8x88xf32> -> vector<8x88xf32>
    %36 = arith.addf %30, %35 : vector<8x88xf32>
    %c0_36 = arith.constant 0 : index
    %c0_37 = arith.constant 0 : index
    %37 = vector.load %arg3[%c0_36, %c0_37] : memref<8x8xf32, #tpu.memory_space<vmem>>, vector<8x8xf32>
    %38 = vector.extract_strided_slice %37 {offsets = [0, 0], sizes = [8, 1], strides = [1, 1]} : vector<8x8xf32> to vector<8x1xf32>
    %39 = vector.extract_strided_slice %37 {offsets = [0, 1], sizes = [8, 1], strides = [1, 1]} : vector<8x8xf32> to vector<8x1xf32>
    %40 = vector.extract_strided_slice %37 {offsets = [0, 2], sizes = [8, 1], strides = [1, 1]} : vector<8x8xf32> to vector<8x1xf32>
    %41 = vector.extract_strided_slice %37 {offsets = [0, 3], sizes = [8, 1], strides = [1, 1]} : vector<8x8xf32> to vector<8x1xf32>
    %c0_38 = arith.constant 0 : index
    %c0_39 = arith.constant 0 : index
    %42 = vector.load %arg4[%c0_38, %c0_39] : memref<1x88xf32, #tpu.memory_space<vmem>>, vector<1x88xf32>
    %43 = vector.broadcast %38 : vector<8x1xf32> to vector<8x88xf32>
    %44 = arith.addf %36, %43 : vector<8x88xf32>
    %45 = vector.broadcast %42 : vector<1x88xf32> to vector<8x88xf32>
    %46 = arith.mulf %44, %45 : vector<8x88xf32>
    %cst_40 = arith.constant dense<0.000000e+00> : vector<8xf32>
    %47 = vector.multi_reduction <add>, %46, %cst_40 [1] : vector<8x88xf32> to vector<8xf32>
    %48 = vector.shape_cast %47 : vector<8xf32> to vector<8x1xf32>
    %cst_41 = arith.constant 0.013888889 : f32
    %49 = vector.broadcast %cst_41 : f32 to vector<8x1xf32>
    %50 = arith.mulf %48, %49 : vector<8x1xf32>
    %51 = vector.broadcast %50 : vector<8x1xf32> to vector<8x88xf32>
    %52 = arith.subf %44, %51 : vector<8x88xf32>
    %53 = vector.broadcast %42 : vector<1x88xf32> to vector<8x88xf32>
    %54 = arith.mulf %52, %53 : vector<8x88xf32>
    %55 = arith.mulf %54, %54 : vector<8x88xf32>
    %cst_42 = arith.constant dense<0.000000e+00> : vector<8xf32>
    %56 = vector.multi_reduction <add>, %55, %cst_42 [1] : vector<8x88xf32> to vector<8xf32>
    %57 = vector.shape_cast %56 : vector<8xf32> to vector<8x1xf32>
    %cst_43 = arith.constant 0.013888889 : f32
    %58 = vector.broadcast %cst_43 : f32 to vector<8x1xf32>
    %59 = arith.mulf %57, %58 : vector<8x1xf32>
    %60 = vector.broadcast %50 : vector<8x1xf32> to vector<8x88xf32>
    %61 = arith.subf %44, %60 : vector<8x88xf32>
    %cst_44 = arith.constant 9.99999974E-6 : f32
    %62 = vector.broadcast %cst_44 : f32 to vector<8x1xf32>
    %63 = arith.addf %59, %62 : vector<8x1xf32>
    %64 = math.rsqrt %63 : vector<8x1xf32>
    %65 = vector.broadcast %64 : vector<8x1xf32> to vector<8x88xf32>
    %66 = arith.mulf %61, %65 : vector<8x88xf32>
    %67 = vector.broadcast %39 : vector<8x1xf32> to vector<8x88xf32>
    %68 = arith.mulf %66, %67 : vector<8x88xf32>
    %69 = vector.broadcast %40 : vector<8x1xf32> to vector<8x88xf32>
    %70 = arith.addf %68, %69 : vector<8x88xf32>
    %cst_45 = arith.constant 0.000000e+00 : f32
    %71 = vector.broadcast %cst_45 : f32 to vector<8x88xf32>
    %72 = arith.cmpf oge, %70, %71 : vector<8x88xf32>
    %73 = vector.broadcast %41 : vector<8x1xf32> to vector<8x88xf32>
    %74 = arith.mulf %73, %70 : vector<8x88xf32>
    %75 = arith.select %72, %70, %74 : vector<8x88xi1>, vector<8x88xf32>
    %76 = vector.broadcast %42 : vector<1x88xf32> to vector<8x88xf32>
    %77 = arith.mulf %75, %76 : vector<8x88xf32>
    %78 = arith.truncf %77 : vector<8x88xf32> to vector<8x88xbf16>
    %cst_46 = arith.constant 0.000000e+00 : bf16
    %79 = vector.broadcast %cst_46 : bf16 to vector<8x99xbf16>
    %cst_47 = arith.constant 0.000000e+00 : bf16
    %80 = vector.broadcast %cst_47 : bf16 to vector<8x11xbf16>
    %81 = tpu.concatenate %79, %78, %80 in 1 : vector<8x99xbf16>, vector<8x88xbf16>, vector<8x11xbf16> -> vector<8x198xbf16>
    %c0_48 = arith.constant 0 : index
    %c0_49 = arith.constant 0 : index
    %c0_50 = arith.constant 0 : index
    %82 = vector.load %arg5[%c0_48, %c0_49, %c0_50] : memref<1x8x198xbf16, #tpu.memory_space<vmem>>, vector<1x8x198xbf16>
    %83 = vector.shape_cast %82 : vector<1x8x198xbf16> to vector<8x198xbf16>
    %84 = vector.shape_cast %81 : vector<8x198xbf16> to vector<1x8x198xbf16>
    tpu.vector_store %arg5[%c0_48, %c0_49, %c0_50], %84 {strides = array<i32>} : memref<1x8x198xbf16, #tpu.memory_space<vmem>>, vector<1x8x198xbf16>,
    return
  }
  func.func @transform_0(%arg0: i32) -> (i32, i32, i32) {
    %c0_i32 = arith.constant 0 : i32
    %c0_i32_0 = arith.constant 0 : i32
    %c0_i32_1 = arith.constant 0 : i32
    return %arg0, %c0_i32, %c0_i32_0 : i32, i32, i32
  }
  func.func @transform_1(%arg0: i32) -> (i32, i32, i32, i32) {
    %c0_i32 = arith.constant 0 : i32
    %c0_i32_0 = arith.constant 0 : i32
    %c0_i32_1 = arith.constant 0 : i32
    %c0_i32_2 = arith.constant 0 : i32
    %c0_i32_3 = arith.constant 0 : i32
    return %c0_i32, %c0_i32_0, %c0_i32_1, %c0_i32_2 : i32, i32, i32, i32
  }
  func.func @transform_2(%arg0: i32) -> (i32, i32) {
    %c0_i32 = arith.constant 0 : i32
    %c0_i32_0 = arith.constant 0 : i32
    %c0_i32_1 = arith.constant 0 : i32
    return %c0_i32, %c0_i32_0 : i32, i32
  }
  func.func @transform_3(%arg0: i32) -> (i32, i32) {
    %c0_i32 = arith.constant 0 : i32
    %c0_i32_0 = arith.constant 0 : i32
    %c0_i32_1 = arith.constant 0 : i32
    return %c0_i32, %c0_i32_0 : i32, i32
  }
  func.func @transform_4(%arg0: i32) -> (i32, i32, i32) {
    %c0_i32 = arith.constant 0 : i32
    %c0_i32_0 = arith.constant 0 : i32
    %c0_i32_1 = arith.constant 0 : i32
    return %arg0, %c0_i32, %c0_i32_0 : i32, i32, i32
  }
}

module attributes {stable_mosaic.version = 11 : i64} {
  func.func @kernel(%arg0: i32, %arg1: memref<1x8x198xbf16, #tpu.memory_space<vmem>>, %arg2: memref<1x8x198xbf16, #tpu.memory_space<vmem>>, %arg3: memref<2x6x8x8xbf16, #tpu.memory_space<vmem>>, %arg4: memref<8x8xf32, #tpu.memory_space<vmem>>, %arg5: memref<1x88xf32, #tpu.memory_space<vmem>>, %arg6: memref<1x8x198xbf16, #tpu.memory_space<vmem>>) attributes {dimension_semantics = [#tpu.dimension_semantics<parallel>], iteration_bounds = array<i64: 2>, scalar_prefetch = 0 : i64, scratch_operands = 0 : i64, tpu.core_type = #tpu.core_type<tc>, window_params = [{transform_indices = @transform_0, window_bounds = array<i64: 1, 8, 198>}, {transform_indices = @transform_1, window_bounds = array<i64: 1, 8, 198>}, {pipeline_mode = #tpu.pipeline_mode<synchronous>, transform_indices = @transform_2, window_bounds = array<i64: 2, 6, 8, 8>}, {pipeline_mode = #tpu.pipeline_mode<synchronous>, transform_indices = @transform_3, window_bounds = array<i64: 8, 8>}, {pipeline_mode = #tpu.pipeline_mode<synchronous>, transform_indices = @transform_4, window_bounds = array<i64: 1, 88>}, {transform_indices = @transform_5, window_bounds = array<i64: 1, 8, 198>}]} {
    %cst = arith.constant 0.000000e+00 : f32
    %0 = vector.broadcast %cst : f32 to vector<8x88xf32>
    %c0 = arith.constant 0 : index
    %c0_0 = arith.constant 0 : index
    %c76 = arith.constant 76 : index
    %1 = vector.load %arg1[%c0, %c0_0, %c76] : memref<1x8x198xbf16, #tpu.memory_space<vmem>>, vector<1x8x88xbf16>
    %2 = vector.shape_cast %1 : vector<1x8x88xbf16> to vector<8x88xbf16>
    %c0_1 = arith.constant 0 : index
    %c0_2 = arith.constant 0 : index
    %c0_3 = arith.constant 0 : index
    %c0_4 = arith.constant 0 : index
    %3 = vector.load %arg3[%c0_1, %c0_2, %c0_3, %c0_4] : memref<2x6x8x8xbf16, #tpu.memory_space<vmem>>, vector<1x1x8x8xbf16>
    %4 = vector.shape_cast %3 : vector<1x1x8x8xbf16> to vector<8x8xbf16>
    %cst_5 = arith.constant dense<0.000000e+00> : vector<8x88xf32>
    %5 = tpu.matmul %4, %2, %cst_5 {dimension_numbers = #tpu.dot_dimension_numbers<[1], [0], [0], [1], [0, 0, 1, 1], [], []>} : vector<8x8xbf16>, vector<8x88xbf16>, vector<8x88xf32> -> vector<8x88xf32>
    %6 = arith.addf %0, %5 : vector<8x88xf32>
    %c0_6 = arith.constant 0 : index
    %c0_7 = arith.constant 0 : index
    %c77 = arith.constant 77 : index
    %7 = vector.load %arg1[%c0_6, %c0_7, %c77] : memref<1x8x198xbf16, #tpu.memory_space<vmem>>, vector<1x8x88xbf16>
    %8 = vector.shape_cast %7 : vector<1x8x88xbf16> to vector<8x88xbf16>
    %c0_8 = arith.constant 0 : index
    %c1 = arith.constant 1 : index
    %c0_9 = arith.constant 0 : index
    %c0_10 = arith.constant 0 : index
    %9 = vector.load %arg3[%c0_8, %c1, %c0_9, %c0_10] : memref<2x6x8x8xbf16, #tpu.memory_space<vmem>>, vector<1x1x8x8xbf16>
    %10 = vector.shape_cast %9 : vector<1x1x8x8xbf16> to vector<8x8xbf16>
    %cst_11 = arith.constant dense<0.000000e+00> : vector<8x88xf32>
    %11 = tpu.matmul %10, %8, %cst_11 {dimension_numbers = #tpu.dot_dimension_numbers<[1], [0], [0], [1], [0, 0, 1, 1], [], []>} : vector<8x8xbf16>, vector<8x88xbf16>, vector<8x88xf32> -> vector<8x88xf32>
    %12 = arith.addf %6, %11 : vector<8x88xf32>
    %c0_12 = arith.constant 0 : index
    %c0_13 = arith.constant 0 : index
    %c78 = arith.constant 78 : index
    %13 = vector.load %arg1[%c0_12, %c0_13, %c78] : memref<1x8x198xbf16, #tpu.memory_space<vmem>>, vector<1x8x88xbf16>
    %14 = vector.shape_cast %13 : vector<1x8x88xbf16> to vector<8x88xbf16>
    %c0_14 = arith.constant 0 : index
    %c2 = arith.constant 2 : index
    %c0_15 = arith.constant 0 : index
    %c0_16 = arith.constant 0 : index
    %15 = vector.load %arg3[%c0_14, %c2, %c0_15, %c0_16] : memref<2x6x8x8xbf16, #tpu.memory_space<vmem>>, vector<1x1x8x8xbf16>
    %16 = vector.shape_cast %15 : vector<1x1x8x8xbf16> to vector<8x8xbf16>
    %cst_17 = arith.constant dense<0.000000e+00> : vector<8x88xf32>
    %17 = tpu.matmul %16, %14, %cst_17 {dimension_numbers = #tpu.dot_dimension_numbers<[1], [0], [0], [1], [0, 0, 1, 1], [], []>} : vector<8x8xbf16>, vector<8x88xbf16>, vector<8x88xf32> -> vector<8x88xf32>
    %18 = arith.addf %12, %17 : vector<8x88xf32>
    %c0_18 = arith.constant 0 : index
    %c0_19 = arith.constant 0 : index
    %c98 = arith.constant 98 : index
    %19 = vector.load %arg1[%c0_18, %c0_19, %c98] : memref<1x8x198xbf16, #tpu.memory_space<vmem>>, vector<1x8x88xbf16>
    %20 = vector.shape_cast %19 : vector<1x8x88xbf16> to vector<8x88xbf16>
    %c0_20 = arith.constant 0 : index
    %c3 = arith.constant 3 : index
    %c0_21 = arith.constant 0 : index
    %c0_22 = arith.constant 0 : index
    %21 = vector.load %arg3[%c0_20, %c3, %c0_21, %c0_22] : memref<2x6x8x8xbf16, #tpu.memory_space<vmem>>, vector<1x1x8x8xbf16>
    %22 = vector.shape_cast %21 : vector<1x1x8x8xbf16> to vector<8x8xbf16>
    %cst_23 = arith.constant dense<0.000000e+00> : vector<8x88xf32>
    %23 = tpu.matmul %22, %20, %cst_23 {dimension_numbers = #tpu.dot_dimension_numbers<[1], [0], [0], [1], [0, 0, 1, 1], [], []>} : vector<8x8xbf16>, vector<8x88xbf16>, vector<8x88xf32> -> vector<8x88xf32>
    %24 = arith.addf %18, %23 : vector<8x88xf32>
    %c0_24 = arith.constant 0 : index
    %c0_25 = arith.constant 0 : index
    %c99 = arith.constant 99 : index
    %25 = vector.load %arg1[%c0_24, %c0_25, %c99] : memref<1x8x198xbf16, #tpu.memory_space<vmem>>, vector<1x8x88xbf16>
    %26 = vector.shape_cast %25 : vector<1x8x88xbf16> to vector<8x88xbf16>
    %c0_26 = arith.constant 0 : index
    %c4 = arith.constant 4 : index
    %c0_27 = arith.constant 0 : index
    %c0_28 = arith.constant 0 : index
    %27 = vector.load %arg3[%c0_26, %c4, %c0_27, %c0_28] : memref<2x6x8x8xbf16, #tpu.memory_space<vmem>>, vector<1x1x8x8xbf16>
    %28 = vector.shape_cast %27 : vector<1x1x8x8xbf16> to vector<8x8xbf16>
    %cst_29 = arith.constant dense<0.000000e+00> : vector<8x88xf32>
    %29 = tpu.matmul %28, %26, %cst_29 {dimension_numbers = #tpu.dot_dimension_numbers<[1], [0], [0], [1], [0, 0, 1, 1], [], []>} : vector<8x8xbf16>, vector<8x88xbf16>, vector<8x88xf32> -> vector<8x88xf32>
    %30 = arith.addf %24, %29 : vector<8x88xf32>
    %c0_30 = arith.constant 0 : index
    %c0_31 = arith.constant 0 : index
    %c100 = arith.constant 100 : index
    %31 = vector.load %arg1[%c0_30, %c0_31, %c100] : memref<1x8x198xbf16, #tpu.memory_space<vmem>>, vector<1x8x88xbf16>
    %32 = vector.shape_cast %31 : vector<1x8x88xbf16> to vector<8x88xbf16>
    %c0_32 = arith.constant 0 : index
    %c5 = arith.constant 5 : index
    %c0_33 = arith.constant 0 : index
    %c0_34 = arith.constant 0 : index
    %33 = vector.load %arg3[%c0_32, %c5, %c0_33, %c0_34] : memref<2x6x8x8xbf16, #tpu.memory_space<vmem>>, vector<1x1x8x8xbf16>
    %34 = vector.shape_cast %33 : vector<1x1x8x8xbf16> to vector<8x8xbf16>
    %cst_35 = arith.constant dense<0.000000e+00> : vector<8x88xf32>
    %35 = tpu.matmul %34, %32, %cst_35 {dimension_numbers = #tpu.dot_dimension_numbers<[1], [0], [0], [1], [0, 0, 1, 1], [], []>} : vector<8x8xbf16>, vector<8x88xbf16>, vector<8x88xf32> -> vector<8x88xf32>
    %36 = arith.addf %30, %35 : vector<8x88xf32>
    %c0_36 = arith.constant 0 : index
    %c0_37 = arith.constant 0 : index
    %c76_38 = arith.constant 76 : index
    %37 = vector.load %arg2[%c0_36, %c0_37, %c76_38] : memref<1x8x198xbf16, #tpu.memory_space<vmem>>, vector<1x8x88xbf16>
    %38 = vector.shape_cast %37 : vector<1x8x88xbf16> to vector<8x88xbf16>
    %c1_39 = arith.constant 1 : index
    %c0_40 = arith.constant 0 : index
    %c0_41 = arith.constant 0 : index
    %c0_42 = arith.constant 0 : index
    %39 = vector.load %arg3[%c1_39, %c0_40, %c0_41, %c0_42] : memref<2x6x8x8xbf16, #tpu.memory_space<vmem>>, vector<1x1x8x8xbf16>
    %40 = vector.shape_cast %39 : vector<1x1x8x8xbf16> to vector<8x8xbf16>
    %cst_43 = arith.constant dense<0.000000e+00> : vector<8x88xf32>
    %41 = tpu.matmul %40, %38, %cst_43 {dimension_numbers = #tpu.dot_dimension_numbers<[1], [0], [0], [1], [0, 0, 1, 1], [], []>} : vector<8x8xbf16>, vector<8x88xbf16>, vector<8x88xf32> -> vector<8x88xf32>
    %42 = arith.addf %36, %41 : vector<8x88xf32>
    %c0_44 = arith.constant 0 : index
    %c0_45 = arith.constant 0 : index
    %c77_46 = arith.constant 77 : index
    %43 = vector.load %arg2[%c0_44, %c0_45, %c77_46] : memref<1x8x198xbf16, #tpu.memory_space<vmem>>, vector<1x8x88xbf16>
    %44 = vector.shape_cast %43 : vector<1x8x88xbf16> to vector<8x88xbf16>
    %c1_47 = arith.constant 1 : index
    %c1_48 = arith.constant 1 : index
    %c0_49 = arith.constant 0 : index
    %c0_50 = arith.constant 0 : index
    %45 = vector.load %arg3[%c1_47, %c1_48, %c0_49, %c0_50] : memref<2x6x8x8xbf16, #tpu.memory_space<vmem>>, vector<1x1x8x8xbf16>
    %46 = vector.shape_cast %45 : vector<1x1x8x8xbf16> to vector<8x8xbf16>
    %cst_51 = arith.constant dense<0.000000e+00> : vector<8x88xf32>
    %47 = tpu.matmul %46, %44, %cst_51 {dimension_numbers = #tpu.dot_dimension_numbers<[1], [0], [0], [1], [0, 0, 1, 1], [], []>} : vector<8x8xbf16>, vector<8x88xbf16>, vector<8x88xf32> -> vector<8x88xf32>
    %48 = arith.addf %42, %47 : vector<8x88xf32>
    %c0_52 = arith.constant 0 : index
    %c0_53 = arith.constant 0 : index
    %c78_54 = arith.constant 78 : index
    %49 = vector.load %arg2[%c0_52, %c0_53, %c78_54] : memref<1x8x198xbf16, #tpu.memory_space<vmem>>, vector<1x8x88xbf16>
    %50 = vector.shape_cast %49 : vector<1x8x88xbf16> to vector<8x88xbf16>
    %c1_55 = arith.constant 1 : index
    %c2_56 = arith.constant 2 : index
    %c0_57 = arith.constant 0 : index
    %c0_58 = arith.constant 0 : index
    %51 = vector.load %arg3[%c1_55, %c2_56, %c0_57, %c0_58] : memref<2x6x8x8xbf16, #tpu.memory_space<vmem>>, vector<1x1x8x8xbf16>
    %52 = vector.shape_cast %51 : vector<1x1x8x8xbf16> to vector<8x8xbf16>
    %cst_59 = arith.constant dense<0.000000e+00> : vector<8x88xf32>
    %53 = tpu.matmul %52, %50, %cst_59 {dimension_numbers = #tpu.dot_dimension_numbers<[1], [0], [0], [1], [0, 0, 1, 1], [], []>} : vector<8x8xbf16>, vector<8x88xbf16>, vector<8x88xf32> -> vector<8x88xf32>
    %54 = arith.addf %48, %53 : vector<8x88xf32>
    %c0_60 = arith.constant 0 : index
    %c0_61 = arith.constant 0 : index
    %c98_62 = arith.constant 98 : index
    %55 = vector.load %arg2[%c0_60, %c0_61, %c98_62] : memref<1x8x198xbf16, #tpu.memory_space<vmem>>, vector<1x8x88xbf16>
    %56 = vector.shape_cast %55 : vector<1x8x88xbf16> to vector<8x88xbf16>
    %c1_63 = arith.constant 1 : index
    %c3_64 = arith.constant 3 : index
    %c0_65 = arith.constant 0 : index
    %c0_66 = arith.constant 0 : index
    %57 = vector.load %arg3[%c1_63, %c3_64, %c0_65, %c0_66] : memref<2x6x8x8xbf16, #tpu.memory_space<vmem>>, vector<1x1x8x8xbf16>
    %58 = vector.shape_cast %57 : vector<1x1x8x8xbf16> to vector<8x8xbf16>
    %cst_67 = arith.constant dense<0.000000e+00> : vector<8x88xf32>
    %59 = tpu.matmul %58, %56, %cst_67 {dimension_numbers = #tpu.dot_dimension_numbers<[1], [0], [0], [1], [0, 0, 1, 1], [], []>} : vector<8x8xbf16>, vector<8x88xbf16>, vector<8x88xf32> -> vector<8x88xf32>
    %60 = arith.addf %54, %59 : vector<8x88xf32>
    %c0_68 = arith.constant 0 : index
    %c0_69 = arith.constant 0 : index
    %c99_70 = arith.constant 99 : index
    %61 = vector.load %arg2[%c0_68, %c0_69, %c99_70] : memref<1x8x198xbf16, #tpu.memory_space<vmem>>, vector<1x8x88xbf16>
    %62 = vector.shape_cast %61 : vector<1x8x88xbf16> to vector<8x88xbf16>
    %c1_71 = arith.constant 1 : index
    %c4_72 = arith.constant 4 : index
    %c0_73 = arith.constant 0 : index
    %c0_74 = arith.constant 0 : index
    %63 = vector.load %arg3[%c1_71, %c4_72, %c0_73, %c0_74] : memref<2x6x8x8xbf16, #tpu.memory_space<vmem>>, vector<1x1x8x8xbf16>
    %64 = vector.shape_cast %63 : vector<1x1x8x8xbf16> to vector<8x8xbf16>
    %cst_75 = arith.constant dense<0.000000e+00> : vector<8x88xf32>
    %65 = tpu.matmul %64, %62, %cst_75 {dimension_numbers = #tpu.dot_dimension_numbers<[1], [0], [0], [1], [0, 0, 1, 1], [], []>} : vector<8x8xbf16>, vector<8x88xbf16>, vector<8x88xf32> -> vector<8x88xf32>
    %66 = arith.addf %60, %65 : vector<8x88xf32>
    %c0_76 = arith.constant 0 : index
    %c0_77 = arith.constant 0 : index
    %c100_78 = arith.constant 100 : index
    %67 = vector.load %arg2[%c0_76, %c0_77, %c100_78] : memref<1x8x198xbf16, #tpu.memory_space<vmem>>, vector<1x8x88xbf16>
    %68 = vector.shape_cast %67 : vector<1x8x88xbf16> to vector<8x88xbf16>
    %c1_79 = arith.constant 1 : index
    %c5_80 = arith.constant 5 : index
    %c0_81 = arith.constant 0 : index
    %c0_82 = arith.constant 0 : index
    %69 = vector.load %arg3[%c1_79, %c5_80, %c0_81, %c0_82] : memref<2x6x8x8xbf16, #tpu.memory_space<vmem>>, vector<1x1x8x8xbf16>
    %70 = vector.shape_cast %69 : vector<1x1x8x8xbf16> to vector<8x8xbf16>
    %cst_83 = arith.constant dense<0.000000e+00> : vector<8x88xf32>
    %71 = tpu.matmul %70, %68, %cst_83 {dimension_numbers = #tpu.dot_dimension_numbers<[1], [0], [0], [1], [0, 0, 1, 1], [], []>} : vector<8x8xbf16>, vector<8x88xbf16>, vector<8x88xf32> -> vector<8x88xf32>
    %72 = arith.addf %66, %71 : vector<8x88xf32>
    %c0_84 = arith.constant 0 : index
    %c0_85 = arith.constant 0 : index
    %73 = vector.load %arg4[%c0_84, %c0_85] : memref<8x8xf32, #tpu.memory_space<vmem>>, vector<8x8xf32>
    %74 = vector.extract_strided_slice %73 {offsets = [0, 0], sizes = [8, 1], strides = [1, 1]} : vector<8x8xf32> to vector<8x1xf32>
    %75 = vector.extract_strided_slice %73 {offsets = [0, 1], sizes = [8, 1], strides = [1, 1]} : vector<8x8xf32> to vector<8x1xf32>
    %76 = vector.extract_strided_slice %73 {offsets = [0, 2], sizes = [8, 1], strides = [1, 1]} : vector<8x8xf32> to vector<8x1xf32>
    %77 = vector.extract_strided_slice %73 {offsets = [0, 3], sizes = [8, 1], strides = [1, 1]} : vector<8x8xf32> to vector<8x1xf32>
    %c0_86 = arith.constant 0 : index
    %c0_87 = arith.constant 0 : index
    %78 = vector.load %arg5[%c0_86, %c0_87] : memref<1x88xf32, #tpu.memory_space<vmem>>, vector<1x88xf32>
    %79 = vector.broadcast %74 : vector<8x1xf32> to vector<8x88xf32>
    %80 = arith.addf %72, %79 : vector<8x88xf32>
    %81 = vector.broadcast %78 : vector<1x88xf32> to vector<8x88xf32>
    %82 = arith.mulf %80, %81 : vector<8x88xf32>
    %cst_88 = arith.constant dense<0.000000e+00> : vector<8xf32>
    %83 = vector.multi_reduction <add>, %82, %cst_88 [1] : vector<8x88xf32> to vector<8xf32>
    %84 = vector.shape_cast %83 : vector<8xf32> to vector<8x1xf32>
    %cst_89 = arith.constant 0.013888889 : f32
    %85 = vector.broadcast %cst_89 : f32 to vector<8x1xf32>
    %86 = arith.mulf %84, %85 : vector<8x1xf32>
    %87 = vector.broadcast %86 : vector<8x1xf32> to vector<8x88xf32>
    %88 = arith.subf %80, %87 : vector<8x88xf32>
    %89 = vector.broadcast %78 : vector<1x88xf32> to vector<8x88xf32>
    %90 = arith.mulf %88, %89 : vector<8x88xf32>
    %91 = arith.mulf %90, %90 : vector<8x88xf32>
    %cst_90 = arith.constant dense<0.000000e+00> : vector<8xf32>
    %92 = vector.multi_reduction <add>, %91, %cst_90 [1] : vector<8x88xf32> to vector<8xf32>
    %93 = vector.shape_cast %92 : vector<8xf32> to vector<8x1xf32>
    %cst_91 = arith.constant 0.013888889 : f32
    %94 = vector.broadcast %cst_91 : f32 to vector<8x1xf32>
    %95 = arith.mulf %93, %94 : vector<8x1xf32>
    %96 = vector.broadcast %86 : vector<8x1xf32> to vector<8x88xf32>
    %97 = arith.subf %80, %96 : vector<8x88xf32>
    %cst_92 = arith.constant 9.99999974E-6 : f32
    %98 = vector.broadcast %cst_92 : f32 to vector<8x1xf32>
    %99 = arith.addf %95, %98 : vector<8x1xf32>
    %100 = math.rsqrt %99 : vector<8x1xf32>
    %101 = vector.broadcast %100 : vector<8x1xf32> to vector<8x88xf32>
    %102 = arith.mulf %97, %101 : vector<8x88xf32>
    %103 = vector.broadcast %75 : vector<8x1xf32> to vector<8x88xf32>
    %104 = arith.mulf %102, %103 : vector<8x88xf32>
    %105 = vector.broadcast %76 : vector<8x1xf32> to vector<8x88xf32>
    %106 = arith.addf %104, %105 : vector<8x88xf32>
    %cst_93 = arith.constant 0.000000e+00 : f32
    %107 = vector.broadcast %cst_93 : f32 to vector<8x88xf32>
    %108 = arith.cmpf oge, %106, %107 : vector<8x88xf32>
    %109 = vector.broadcast %77 : vector<8x1xf32> to vector<8x88xf32>
    %110 = arith.mulf %109, %106 : vector<8x88xf32>
    %111 = arith.select %108, %106, %110 : vector<8x88xi1>, vector<8x88xf32>
    %112 = vector.broadcast %78 : vector<1x88xf32> to vector<8x88xf32>
    %113 = arith.mulf %111, %112 : vector<8x88xf32>
    %114 = arith.truncf %113 : vector<8x88xf32> to vector<8x88xbf16>
    %cst_94 = arith.constant 0.000000e+00 : bf16
    %115 = vector.broadcast %cst_94 : bf16 to vector<8x99xbf16>
    %cst_95 = arith.constant 0.000000e+00 : bf16
    %116 = vector.broadcast %cst_95 : bf16 to vector<8x11xbf16>
    %117 = tpu.concatenate %115, %114, %116 in 1 : vector<8x99xbf16>, vector<8x88xbf16>, vector<8x11xbf16> -> vector<8x198xbf16>
    %c0_96 = arith.constant 0 : index
    %c0_97 = arith.constant 0 : index
    %c0_98 = arith.constant 0 : index
    %118 = vector.load %arg6[%c0_96, %c0_97, %c0_98] : memref<1x8x198xbf16, #tpu.memory_space<vmem>>, vector<1x8x198xbf16>
    %119 = vector.shape_cast %118 : vector<1x8x198xbf16> to vector<8x198xbf16>
    %120 = vector.shape_cast %117 : vector<8x198xbf16> to vector<1x8x198xbf16>
    tpu.vector_store %arg6[%c0_96, %c0_97, %c0_98], %120 {strides = array<i32>} : memref<1x8x198xbf16, #tpu.memory_space<vmem>>, vector<1x8x198xbf16>,
    return
  }
  func.func @transform_0(%arg0: i32) -> (i32, i32, i32) {
    %c0_i32 = arith.constant 0 : i32
    %c0_i32_0 = arith.constant 0 : i32
    %c0_i32_1 = arith.constant 0 : i32
    return %arg0, %c0_i32, %c0_i32_0 : i32, i32, i32
  }
  func.func @transform_1(%arg0: i32) -> (i32, i32, i32) {
    %c0_i32 = arith.constant 0 : i32
    %c0_i32_0 = arith.constant 0 : i32
    %c0_i32_1 = arith.constant 0 : i32
    return %arg0, %c0_i32, %c0_i32_0 : i32, i32, i32
  }
  func.func @transform_2(%arg0: i32) -> (i32, i32, i32, i32) {
    %c0_i32 = arith.constant 0 : i32
    %c0_i32_0 = arith.constant 0 : i32
    %c0_i32_1 = arith.constant 0 : i32
    %c0_i32_2 = arith.constant 0 : i32
    %c0_i32_3 = arith.constant 0 : i32
    return %c0_i32, %c0_i32_0, %c0_i32_1, %c0_i32_2 : i32, i32, i32, i32
  }
  func.func @transform_3(%arg0: i32) -> (i32, i32) {
    %c0_i32 = arith.constant 0 : i32
    %c0_i32_0 = arith.constant 0 : i32
    %c0_i32_1 = arith.constant 0 : i32
    return %c0_i32, %c0_i32_0 : i32, i32
  }
  func.func @transform_4(%arg0: i32) -> (i32, i32) {
    %c0_i32 = arith.constant 0 : i32
    %c0_i32_0 = arith.constant 0 : i32
    %c0_i32_1 = arith.constant 0 : i32
    return %c0_i32, %c0_i32_0 : i32, i32
  }
  func.func @transform_5(%arg0: i32) -> (i32, i32, i32) {
    %c0_i32 = arith.constant 0 : i32
    %c0_i32_0 = arith.constant 0 : i32
    %c0_i32_1 = arith.constant 0 : i32
    return %arg0, %c0_i32, %c0_i32_0 : i32, i32, i32
  }
}

module attributes {stable_mosaic.version = 11 : i64} {
  func.func @kernel(%arg0: i32, %arg1: memref<1x8x198xbf16, #tpu.memory_space<vmem>>, %arg2: memref<1x8x198xbf16, #tpu.memory_space<vmem>>, %arg3: memref<1x8x198xbf16, #tpu.memory_space<vmem>>, %arg4: memref<3x6x8x8xbf16, #tpu.memory_space<vmem>>, %arg5: memref<8x8xf32, #tpu.memory_space<vmem>>, %arg6: memref<1x88xf32, #tpu.memory_space<vmem>>, %arg7: memref<1x8x198xbf16, #tpu.memory_space<vmem>>) attributes {dimension_semantics = [#tpu.dimension_semantics<parallel>], iteration_bounds = array<i64: 2>, scalar_prefetch = 0 : i64, scratch_operands = 0 : i64, tpu.core_type = #tpu.core_type<tc>, window_params = [{transform_indices = @transform_0, window_bounds = array<i64: 1, 8, 198>}, {transform_indices = @transform_1, window_bounds = array<i64: 1, 8, 198>}, {transform_indices = @transform_2, window_bounds = array<i64: 1, 8, 198>}, {pipeline_mode = #tpu.pipeline_mode<synchronous>, transform_indices = @transform_3, window_bounds = array<i64: 3, 6, 8, 8>}, {pipeline_mode = #tpu.pipeline_mode<synchronous>, transform_indices = @transform_4, window_bounds = array<i64: 8, 8>}, {pipeline_mode = #tpu.pipeline_mode<synchronous>, transform_indices = @transform_5, window_bounds = array<i64: 1, 88>}, {transform_indices = @transform_6, window_bounds = array<i64: 1, 8, 198>}]} {
    %cst = arith.constant 0.000000e+00 : f32
    %0 = vector.broadcast %cst : f32 to vector<8x88xf32>
    %c0 = arith.constant 0 : index
    %c0_0 = arith.constant 0 : index
    %c54 = arith.constant 54 : index
    %1 = vector.load %arg1[%c0, %c0_0, %c54] : memref<1x8x198xbf16, #tpu.memory_space<vmem>>, vector<1x8x88xbf16>
    %2 = vector.shape_cast %1 : vector<1x8x88xbf16> to vector<8x88xbf16>
    %c0_1 = arith.constant 0 : index
    %c0_2 = arith.constant 0 : index
    %c0_3 = arith.constant 0 : index
    %c0_4 = arith.constant 0 : index
    %3 = vector.load %arg4[%c0_1, %c0_2, %c0_3, %c0_4] : memref<3x6x8x8xbf16, #tpu.memory_space<vmem>>, vector<1x1x8x8xbf16>
    %4 = vector.shape_cast %3 : vector<1x1x8x8xbf16> to vector<8x8xbf16>
    %cst_5 = arith.constant dense<0.000000e+00> : vector<8x88xf32>
    %5 = tpu.matmul %4, %2, %cst_5 {dimension_numbers = #tpu.dot_dimension_numbers<[1], [0], [0], [1], [0, 0, 1, 1], [], []>} : vector<8x8xbf16>, vector<8x88xbf16>, vector<8x88xf32> -> vector<8x88xf32>
    %6 = arith.addf %0, %5 : vector<8x88xf32>
    %c0_6 = arith.constant 0 : index
    %c0_7 = arith.constant 0 : index
    %c55 = arith.constant 55 : index
    %7 = vector.load %arg1[%c0_6, %c0_7, %c55] : memref<1x8x198xbf16, #tpu.memory_space<vmem>>, vector<1x8x88xbf16>
    %8 = vector.shape_cast %7 : vector<1x8x88xbf16> to vector<8x88xbf16>
    %c0_8 = arith.constant 0 : index
    %c1 = arith.constant 1 : index
    %c0_9 = arith.constant 0 : index
    %c0_10 = arith.constant 0 : index
    %9 = vector.load %arg4[%c0_8, %c1, %c0_9, %c0_10] : memref<3x6x8x8xbf16, #tpu.memory_space<vmem>>, vector<1x1x8x8xbf16>
    %10 = vector.shape_cast %9 : vector<1x1x8x8xbf16> to vector<8x8xbf16>
    %cst_11 = arith.constant dense<0.000000e+00> : vector<8x88xf32>
    %11 = tpu.matmul %10, %8, %cst_11 {dimension_numbers = #tpu.dot_dimension_numbers<[1], [0], [0], [1], [0, 0, 1, 1], [], []>} : vector<8x8xbf16>, vector<8x88xbf16>, vector<8x88xf32> -> vector<8x88xf32>
    %12 = arith.addf %6, %11 : vector<8x88xf32>
    %c0_12 = arith.constant 0 : index
    %c0_13 = arith.constant 0 : index
    %c56 = arith.constant 56 : index
    %13 = vector.load %arg1[%c0_12, %c0_13, %c56] : memref<1x8x198xbf16, #tpu.memory_space<vmem>>, vector<1x8x88xbf16>
    %14 = vector.shape_cast %13 : vector<1x8x88xbf16> to vector<8x88xbf16>
    %c0_14 = arith.constant 0 : index
    %c2 = arith.constant 2 : index
    %c0_15 = arith.constant 0 : index
    %c0_16 = arith.constant 0 : index
    %15 = vector.load %arg4[%c0_14, %c2, %c0_15, %c0_16] : memref<3x6x8x8xbf16, #tpu.memory_space<vmem>>, vector<1x1x8x8xbf16>
    %16 = vector.shape_cast %15 : vector<1x1x8x8xbf16> to vector<8x8xbf16>
    %cst_17 = arith.constant dense<0.000000e+00> : vector<8x88xf32>
    %17 = tpu.matmul %16, %14, %cst_17 {dimension_numbers = #tpu.dot_dimension_numbers<[1], [0], [0], [1], [0, 0, 1, 1], [], []>} : vector<8x8xbf16>, vector<8x88xbf16>, vector<8x88xf32> -> vector<8x88xf32>
    %18 = arith.addf %12, %17 : vector<8x88xf32>
    %c0_18 = arith.constant 0 : index
    %c0_19 = arith.constant 0 : index
    %c98 = arith.constant 98 : index
    %19 = vector.load %arg1[%c0_18, %c0_19, %c98] : memref<1x8x198xbf16, #tpu.memory_space<vmem>>, vector<1x8x88xbf16>
    %20 = vector.shape_cast %19 : vector<1x8x88xbf16> to vector<8x88xbf16>
    %c0_20 = arith.constant 0 : index
    %c3 = arith.constant 3 : index
    %c0_21 = arith.constant 0 : index
    %c0_22 = arith.constant 0 : index
    %21 = vector.load %arg4[%c0_20, %c3, %c0_21, %c0_22] : memref<3x6x8x8xbf16, #tpu.memory_space<vmem>>, vector<1x1x8x8xbf16>
    %22 = vector.shape_cast %21 : vector<1x1x8x8xbf16> to vector<8x8xbf16>
    %cst_23 = arith.constant dense<0.000000e+00> : vector<8x88xf32>
    %23 = tpu.matmul %22, %20, %cst_23 {dimension_numbers = #tpu.dot_dimension_numbers<[1], [0], [0], [1], [0, 0, 1, 1], [], []>} : vector<8x8xbf16>, vector<8x88xbf16>, vector<8x88xf32> -> vector<8x88xf32>
    %24 = arith.addf %18, %23 : vector<8x88xf32>
    %c0_24 = arith.constant 0 : index
    %c0_25 = arith.constant 0 : index
    %c99 = arith.constant 99 : index
    %25 = vector.load %arg1[%c0_24, %c0_25, %c99] : memref<1x8x198xbf16, #tpu.memory_space<vmem>>, vector<1x8x88xbf16>
    %26 = vector.shape_cast %25 : vector<1x8x88xbf16> to vector<8x88xbf16>
    %c0_26 = arith.constant 0 : index
    %c4 = arith.constant 4 : index
    %c0_27 = arith.constant 0 : index
    %c0_28 = arith.constant 0 : index
    %27 = vector.load %arg4[%c0_26, %c4, %c0_27, %c0_28] : memref<3x6x8x8xbf16, #tpu.memory_space<vmem>>, vector<1x1x8x8xbf16>
    %28 = vector.shape_cast %27 : vector<1x1x8x8xbf16> to vector<8x8xbf16>
    %cst_29 = arith.constant dense<0.000000e+00> : vector<8x88xf32>
    %29 = tpu.matmul %28, %26, %cst_29 {dimension_numbers = #tpu.dot_dimension_numbers<[1], [0], [0], [1], [0, 0, 1, 1], [], []>} : vector<8x8xbf16>, vector<8x88xbf16>, vector<8x88xf32> -> vector<8x88xf32>
    %30 = arith.addf %24, %29 : vector<8x88xf32>
    %c0_30 = arith.constant 0 : index
    %c0_31 = arith.constant 0 : index
    %c100 = arith.constant 100 : index
    %31 = vector.load %arg1[%c0_30, %c0_31, %c100] : memref<1x8x198xbf16, #tpu.memory_space<vmem>>, vector<1x8x88xbf16>
    %32 = vector.shape_cast %31 : vector<1x8x88xbf16> to vector<8x88xbf16>
    %c0_32 = arith.constant 0 : index
    %c5 = arith.constant 5 : index
    %c0_33 = arith.constant 0 : index
    %c0_34 = arith.constant 0 : index
    %33 = vector.load %arg4[%c0_32, %c5, %c0_33, %c0_34] : memref<3x6x8x8xbf16, #tpu.memory_space<vmem>>, vector<1x1x8x8xbf16>
    %34 = vector.shape_cast %33 : vector<1x1x8x8xbf16> to vector<8x8xbf16>
    %cst_35 = arith.constant dense<0.000000e+00> : vector<8x88xf32>
    %35 = tpu.matmul %34, %32, %cst_35 {dimension_numbers = #tpu.dot_dimension_numbers<[1], [0], [0], [1], [0, 0, 1, 1], [], []>} : vector<8x8xbf16>, vector<8x88xbf16>, vector<8x88xf32> -> vector<8x88xf32>
    %36 = arith.addf %30, %35 : vector<8x88xf32>
    %c0_36 = arith.constant 0 : index
    %c0_37 = arith.constant 0 : index
    %c54_38 = arith.constant 54 : index
    %37 = vector.load %arg2[%c0_36, %c0_37, %c54_38] : memref<1x8x198xbf16, #tpu.memory_space<vmem>>, vector<1x8x88xbf16>
    %38 = vector.shape_cast %37 : vector<1x8x88xbf16> to vector<8x88xbf16>
    %c1_39 = arith.constant 1 : index
    %c0_40 = arith.constant 0 : index
    %c0_41 = arith.constant 0 : index
    %c0_42 = arith.constant 0 : index
    %39 = vector.load %arg4[%c1_39, %c0_40, %c0_41, %c0_42] : memref<3x6x8x8xbf16, #tpu.memory_space<vmem>>, vector<1x1x8x8xbf16>
    %40 = vector.shape_cast %39 : vector<1x1x8x8xbf16> to vector<8x8xbf16>
    %cst_43 = arith.constant dense<0.000000e+00> : vector<8x88xf32>
    %41 = tpu.matmul %40, %38, %cst_43 {dimension_numbers = #tpu.dot_dimension_numbers<[1], [0], [0], [1], [0, 0, 1, 1], [], []>} : vector<8x8xbf16>, vector<8x88xbf16>, vector<8x88xf32> -> vector<8x88xf32>
    %42 = arith.addf %36, %41 : vector<8x88xf32>
    %c0_44 = arith.constant 0 : index
    %c0_45 = arith.constant 0 : index
    %c55_46 = arith.constant 55 : index
    %43 = vector.load %arg2[%c0_44, %c0_45, %c55_46] : memref<1x8x198xbf16, #tpu.memory_space<vmem>>, vector<1x8x88xbf16>
    %44 = vector.shape_cast %43 : vector<1x8x88xbf16> to vector<8x88xbf16>
    %c1_47 = arith.constant 1 : index
    %c1_48 = arith.constant 1 : index
    %c0_49 = arith.constant 0 : index
    %c0_50 = arith.constant 0 : index
    %45 = vector.load %arg4[%c1_47, %c1_48, %c0_49, %c0_50] : memref<3x6x8x8xbf16, #tpu.memory_space<vmem>>, vector<1x1x8x8xbf16>
    %46 = vector.shape_cast %45 : vector<1x1x8x8xbf16> to vector<8x8xbf16>
    %cst_51 = arith.constant dense<0.000000e+00> : vector<8x88xf32>
    %47 = tpu.matmul %46, %44, %cst_51 {dimension_numbers = #tpu.dot_dimension_numbers<[1], [0], [0], [1], [0, 0, 1, 1], [], []>} : vector<8x8xbf16>, vector<8x88xbf16>, vector<8x88xf32> -> vector<8x88xf32>
    %48 = arith.addf %42, %47 : vector<8x88xf32>
    %c0_52 = arith.constant 0 : index
    %c0_53 = arith.constant 0 : index
    %c56_54 = arith.constant 56 : index
    %49 = vector.load %arg2[%c0_52, %c0_53, %c56_54] : memref<1x8x198xbf16, #tpu.memory_space<vmem>>, vector<1x8x88xbf16>
    %50 = vector.shape_cast %49 : vector<1x8x88xbf16> to vector<8x88xbf16>
    %c1_55 = arith.constant 1 : index
    %c2_56 = arith.constant 2 : index
    %c0_57 = arith.constant 0 : index
    %c0_58 = arith.constant 0 : index
    %51 = vector.load %arg4[%c1_55, %c2_56, %c0_57, %c0_58] : memref<3x6x8x8xbf16, #tpu.memory_space<vmem>>, vector<1x1x8x8xbf16>
    %52 = vector.shape_cast %51 : vector<1x1x8x8xbf16> to vector<8x8xbf16>
    %cst_59 = arith.constant dense<0.000000e+00> : vector<8x88xf32>
    %53 = tpu.matmul %52, %50, %cst_59 {dimension_numbers = #tpu.dot_dimension_numbers<[1], [0], [0], [1], [0, 0, 1, 1], [], []>} : vector<8x8xbf16>, vector<8x88xbf16>, vector<8x88xf32> -> vector<8x88xf32>
    %54 = arith.addf %48, %53 : vector<8x88xf32>
    %c0_60 = arith.constant 0 : index
    %c0_61 = arith.constant 0 : index
    %c98_62 = arith.constant 98 : index
    %55 = vector.load %arg2[%c0_60, %c0_61, %c98_62] : memref<1x8x198xbf16, #tpu.memory_space<vmem>>, vector<1x8x88xbf16>
    %56 = vector.shape_cast %55 : vector<1x8x88xbf16> to vector<8x88xbf16>
    %c1_63 = arith.constant 1 : index
    %c3_64 = arith.constant 3 : index
    %c0_65 = arith.constant 0 : index
    %c0_66 = arith.constant 0 : index
    %57 = vector.load %arg4[%c1_63, %c3_64, %c0_65, %c0_66] : memref<3x6x8x8xbf16, #tpu.memory_space<vmem>>, vector<1x1x8x8xbf16>
    %58 = vector.shape_cast %57 : vector<1x1x8x8xbf16> to vector<8x8xbf16>
    %cst_67 = arith.constant dense<0.000000e+00> : vector<8x88xf32>
    %59 = tpu.matmul %58, %56, %cst_67 {dimension_numbers = #tpu.dot_dimension_numbers<[1], [0], [0], [1], [0, 0, 1, 1], [], []>} : vector<8x8xbf16>, vector<8x88xbf16>, vector<8x88xf32> -> vector<8x88xf32>
    %60 = arith.addf %54, %59 : vector<8x88xf32>
    %c0_68 = arith.constant 0 : index
    %c0_69 = arith.constant 0 : index
    %c99_70 = arith.constant 99 : index
    %61 = vector.load %arg2[%c0_68, %c0_69, %c99_70] : memref<1x8x198xbf16, #tpu.memory_space<vmem>>, vector<1x8x88xbf16>
    %62 = vector.shape_cast %61 : vector<1x8x88xbf16> to vector<8x88xbf16>
    %c1_71 = arith.constant 1 : index
    %c4_72 = arith.constant 4 : index
    %c0_73 = arith.constant 0 : index
    %c0_74 = arith.constant 0 : index
    %63 = vector.load %arg4[%c1_71, %c4_72, %c0_73, %c0_74] : memref<3x6x8x8xbf16, #tpu.memory_space<vmem>>, vector<1x1x8x8xbf16>
    %64 = vector.shape_cast %63 : vector<1x1x8x8xbf16> to vector<8x8xbf16>
    %cst_75 = arith.constant dense<0.000000e+00> : vector<8x88xf32>
    %65 = tpu.matmul %64, %62, %cst_75 {dimension_numbers = #tpu.dot_dimension_numbers<[1], [0], [0], [1], [0, 0, 1, 1], [], []>} : vector<8x8xbf16>, vector<8x88xbf16>, vector<8x88xf32> -> vector<8x88xf32>
    %66 = arith.addf %60, %65 : vector<8x88xf32>
    %c0_76 = arith.constant 0 : index
    %c0_77 = arith.constant 0 : index
    %c100_78 = arith.constant 100 : index
    %67 = vector.load %arg2[%c0_76, %c0_77, %c100_78] : memref<1x8x198xbf16, #tpu.memory_space<vmem>>, vector<1x8x88xbf16>
    %68 = vector.shape_cast %67 : vector<1x8x88xbf16> to vector<8x88xbf16>
    %c1_79 = arith.constant 1 : index
    %c5_80 = arith.constant 5 : index
    %c0_81 = arith.constant 0 : index
    %c0_82 = arith.constant 0 : index
    %69 = vector.load %arg4[%c1_79, %c5_80, %c0_81, %c0_82] : memref<3x6x8x8xbf16, #tpu.memory_space<vmem>>, vector<1x1x8x8xbf16>
    %70 = vector.shape_cast %69 : vector<1x1x8x8xbf16> to vector<8x8xbf16>
    %cst_83 = arith.constant dense<0.000000e+00> : vector<8x88xf32>
    %71 = tpu.matmul %70, %68, %cst_83 {dimension_numbers = #tpu.dot_dimension_numbers<[1], [0], [0], [1], [0, 0, 1, 1], [], []>} : vector<8x8xbf16>, vector<8x88xbf16>, vector<8x88xf32> -> vector<8x88xf32>
    %72 = arith.addf %66, %71 : vector<8x88xf32>
    %c0_84 = arith.constant 0 : index
    %c0_85 = arith.constant 0 : index
    %c54_86 = arith.constant 54 : index
    %73 = vector.load %arg3[%c0_84, %c0_85, %c54_86] : memref<1x8x198xbf16, #tpu.memory_space<vmem>>, vector<1x8x88xbf16>
    %74 = vector.shape_cast %73 : vector<1x8x88xbf16> to vector<8x88xbf16>
    %c2_87 = arith.constant 2 : index
    %c0_88 = arith.constant 0 : index
    %c0_89 = arith.constant 0 : index
    %c0_90 = arith.constant 0 : index
    %75 = vector.load %arg4[%c2_87, %c0_88, %c0_89, %c0_90] : memref<3x6x8x8xbf16, #tpu.memory_space<vmem>>, vector<1x1x8x8xbf16>
    %76 = vector.shape_cast %75 : vector<1x1x8x8xbf16> to vector<8x8xbf16>
    %cst_91 = arith.constant dense<0.000000e+00> : vector<8x88xf32>
    %77 = tpu.matmul %76, %74, %cst_91 {dimension_numbers = #tpu.dot_dimension_numbers<[1], [0], [0], [1], [0, 0, 1, 1], [], []>} : vector<8x8xbf16>, vector<8x88xbf16>, vector<8x88xf32> -> vector<8x88xf32>
    %78 = arith.addf %72, %77 : vector<8x88xf32>
    %c0_92 = arith.constant 0 : index
    %c0_93 = arith.constant 0 : index
    %c55_94 = arith.constant 55 : index
    %79 = vector.load %arg3[%c0_92, %c0_93, %c55_94] : memref<1x8x198xbf16, #tpu.memory_space<vmem>>, vector<1x8x88xbf16>
    %80 = vector.shape_cast %79 : vector<1x8x88xbf16> to vector<8x88xbf16>
    %c2_95 = arith.constant 2 : index
    %c1_96 = arith.constant 1 : index
    %c0_97 = arith.constant 0 : index
    %c0_98 = arith.constant 0 : index
    %81 = vector.load %arg4[%c2_95, %c1_96, %c0_97, %c0_98] : memref<3x6x8x8xbf16, #tpu.memory_space<vmem>>, vector<1x1x8x8xbf16>
    %82 = vector.shape_cast %81 : vector<1x1x8x8xbf16> to vector<8x8xbf16>
    %cst_99 = arith.constant dense<0.000000e+00> : vector<8x88xf32>
    %83 = tpu.matmul %82, %80, %cst_99 {dimension_numbers = #tpu.dot_dimension_numbers<[1], [0], [0], [1], [0, 0, 1, 1], [], []>} : vector<8x8xbf16>, vector<8x88xbf16>, vector<8x88xf32> -> vector<8x88xf32>
    %84 = arith.addf %78, %83 : vector<8x88xf32>
    %c0_100 = arith.constant 0 : index
    %c0_101 = arith.constant 0 : index
    %c56_102 = arith.constant 56 : index
    %85 = vector.load %arg3[%c0_100, %c0_101, %c56_102] : memref<1x8x198xbf16, #tpu.memory_space<vmem>>, vector<1x8x88xbf16>
    %86 = vector.shape_cast %85 : vector<1x8x88xbf16> to vector<8x88xbf16>
    %c2_103 = arith.constant 2 : index
    %c2_104 = arith.constant 2 : index
    %c0_105 = arith.constant 0 : index
    %c0_106 = arith.constant 0 : index
    %87 = vector.load %arg4[%c2_103, %c2_104, %c0_105, %c0_106] : memref<3x6x8x8xbf16, #tpu.memory_space<vmem>>, vector<1x1x8x8xbf16>
    %88 = vector.shape_cast %87 : vector<1x1x8x8xbf16> to vector<8x8xbf16>
    %cst_107 = arith.constant dense<0.000000e+00> : vector<8x88xf32>
    %89 = tpu.matmul %88, %86, %cst_107 {dimension_numbers = #tpu.dot_dimension_numbers<[1], [0], [0], [1], [0, 0, 1, 1], [], []>} : vector<8x8xbf16>, vector<8x88xbf16>, vector<8x88xf32> -> vector<8x88xf32>
    %90 = arith.addf %84, %89 : vector<8x88xf32>
    %c0_108 = arith.constant 0 : index
    %c0_109 = arith.constant 0 : index
    %c98_110 = arith.constant 98 : index
    %91 = vector.load %arg3[%c0_108, %c0_109, %c98_110] : memref<1x8x198xbf16, #tpu.memory_space<vmem>>, vector<1x8x88xbf16>
    %92 = vector.shape_cast %91 : vector<1x8x88xbf16> to vector<8x88xbf16>
    %c2_111 = arith.constant 2 : index
    %c3_112 = arith.constant 3 : index
    %c0_113 = arith.constant 0 : index
    %c0_114 = arith.constant 0 : index
    %93 = vector.load %arg4[%c2_111, %c3_112, %c0_113, %c0_114] : memref<3x6x8x8xbf16, #tpu.memory_space<vmem>>, vector<1x1x8x8xbf16>
    %94 = vector.shape_cast %93 : vector<1x1x8x8xbf16> to vector<8x8xbf16>
    %cst_115 = arith.constant dense<0.000000e+00> : vector<8x88xf32>
    %95 = tpu.matmul %94, %92, %cst_115 {dimension_numbers = #tpu.dot_dimension_numbers<[1], [0], [0], [1], [0, 0, 1, 1], [], []>} : vector<8x8xbf16>, vector<8x88xbf16>, vector<8x88xf32> -> vector<8x88xf32>
    %96 = arith.addf %90, %95 : vector<8x88xf32>
    %c0_116 = arith.constant 0 : index
    %c0_117 = arith.constant 0 : index
    %c99_118 = arith.constant 99 : index
    %97 = vector.load %arg3[%c0_116, %c0_117, %c99_118] : memref<1x8x198xbf16, #tpu.memory_space<vmem>>, vector<1x8x88xbf16>
    %98 = vector.shape_cast %97 : vector<1x8x88xbf16> to vector<8x88xbf16>
    %c2_119 = arith.constant 2 : index
    %c4_120 = arith.constant 4 : index
    %c0_121 = arith.constant 0 : index
    %c0_122 = arith.constant 0 : index
    %99 = vector.load %arg4[%c2_119, %c4_120, %c0_121, %c0_122] : memref<3x6x8x8xbf16, #tpu.memory_space<vmem>>, vector<1x1x8x8xbf16>
    %100 = vector.shape_cast %99 : vector<1x1x8x8xbf16> to vector<8x8xbf16>
    %cst_123 = arith.constant dense<0.000000e+00> : vector<8x88xf32>
    %101 = tpu.matmul %100, %98, %cst_123 {dimension_numbers = #tpu.dot_dimension_numbers<[1], [0], [0], [1], [0, 0, 1, 1], [], []>} : vector<8x8xbf16>, vector<8x88xbf16>, vector<8x88xf32> -> vector<8x88xf32>
    %102 = arith.addf %96, %101 : vector<8x88xf32>
    %c0_124 = arith.constant 0 : index
    %c0_125 = arith.constant 0 : index
    %c100_126 = arith.constant 100 : index
    %103 = vector.load %arg3[%c0_124, %c0_125, %c100_126] : memref<1x8x198xbf16, #tpu.memory_space<vmem>>, vector<1x8x88xbf16>
    %104 = vector.shape_cast %103 : vector<1x8x88xbf16> to vector<8x88xbf16>
    %c2_127 = arith.constant 2 : index
    %c5_128 = arith.constant 5 : index
    %c0_129 = arith.constant 0 : index
    %c0_130 = arith.constant 0 : index
    %105 = vector.load %arg4[%c2_127, %c5_128, %c0_129, %c0_130] : memref<3x6x8x8xbf16, #tpu.memory_space<vmem>>, vector<1x1x8x8xbf16>
    %106 = vector.shape_cast %105 : vector<1x1x8x8xbf16> to vector<8x8xbf16>
    %cst_131 = arith.constant dense<0.000000e+00> : vector<8x88xf32>
    %107 = tpu.matmul %106, %104, %cst_131 {dimension_numbers = #tpu.dot_dimension_numbers<[1], [0], [0], [1], [0, 0, 1, 1], [], []>} : vector<8x8xbf16>, vector<8x88xbf16>, vector<8x88xf32> -> vector<8x88xf32>
    %108 = arith.addf %102, %107 : vector<8x88xf32>
    %c0_132 = arith.constant 0 : index
    %c0_133 = arith.constant 0 : index
    %109 = vector.load %arg5[%c0_132, %c0_133] : memref<8x8xf32, #tpu.memory_space<vmem>>, vector<8x8xf32>
    %110 = vector.extract_strided_slice %109 {offsets = [0, 0], sizes = [8, 1], strides = [1, 1]} : vector<8x8xf32> to vector<8x1xf32>
    %111 = vector.extract_strided_slice %109 {offsets = [0, 1], sizes = [8, 1], strides = [1, 1]} : vector<8x8xf32> to vector<8x1xf32>
    %112 = vector.extract_strided_slice %109 {offsets = [0, 2], sizes = [8, 1], strides = [1, 1]} : vector<8x8xf32> to vector<8x1xf32>
    %113 = vector.extract_strided_slice %109 {offsets = [0, 3], sizes = [8, 1], strides = [1, 1]} : vector<8x8xf32> to vector<8x1xf32>
    %c0_134 = arith.constant 0 : index
    %c0_135 = arith.constant 0 : index
    %114 = vector.load %arg6[%c0_134, %c0_135] : memref<1x88xf32, #tpu.memory_space<vmem>>, vector<1x88xf32>
    %115 = vector.broadcast %110 : vector<8x1xf32> to vector<8x88xf32>
    %116 = arith.addf %108, %115 : vector<8x88xf32>
    %117 = vector.broadcast %114 : vector<1x88xf32> to vector<8x88xf32>
    %118 = arith.mulf %116, %117 : vector<8x88xf32>
    %cst_136 = arith.constant dense<0.000000e+00> : vector<8xf32>
    %119 = vector.multi_reduction <add>, %118, %cst_136 [1] : vector<8x88xf32> to vector<8xf32>
    %120 = vector.shape_cast %119 : vector<8xf32> to vector<8x1xf32>
    %cst_137 = arith.constant 0.013888889 : f32
    %121 = vector.broadcast %cst_137 : f32 to vector<8x1xf32>
    %122 = arith.mulf %120, %121 : vector<8x1xf32>
    %123 = vector.broadcast %122 : vector<8x1xf32> to vector<8x88xf32>
    %124 = arith.subf %116, %123 : vector<8x88xf32>
    %125 = vector.broadcast %114 : vector<1x88xf32> to vector<8x88xf32>
    %126 = arith.mulf %124, %125 : vector<8x88xf32>
    %127 = arith.mulf %126, %126 : vector<8x88xf32>
    %cst_138 = arith.constant dense<0.000000e+00> : vector<8xf32>
    %128 = vector.multi_reduction <add>, %127, %cst_138 [1] : vector<8x88xf32> to vector<8xf32>
    %129 = vector.shape_cast %128 : vector<8xf32> to vector<8x1xf32>
    %cst_139 = arith.constant 0.013888889 : f32
    %130 = vector.broadcast %cst_139 : f32 to vector<8x1xf32>
    %131 = arith.mulf %129, %130 : vector<8x1xf32>
    %132 = vector.broadcast %122 : vector<8x1xf32> to vector<8x88xf32>
    %133 = arith.subf %116, %132 : vector<8x88xf32>
    %cst_140 = arith.constant 9.99999974E-6 : f32
    %134 = vector.broadcast %cst_140 : f32 to vector<8x1xf32>
    %135 = arith.addf %131, %134 : vector<8x1xf32>
    %136 = math.rsqrt %135 : vector<8x1xf32>
    %137 = vector.broadcast %136 : vector<8x1xf32> to vector<8x88xf32>
    %138 = arith.mulf %133, %137 : vector<8x88xf32>
    %139 = vector.broadcast %111 : vector<8x1xf32> to vector<8x88xf32>
    %140 = arith.mulf %138, %139 : vector<8x88xf32>
    %141 = vector.broadcast %112 : vector<8x1xf32> to vector<8x88xf32>
    %142 = arith.addf %140, %141 : vector<8x88xf32>
    %cst_141 = arith.constant 0.000000e+00 : f32
    %143 = vector.broadcast %cst_141 : f32 to vector<8x88xf32>
    %144 = arith.cmpf oge, %142, %143 : vector<8x88xf32>
    %145 = vector.broadcast %113 : vector<8x1xf32> to vector<8x88xf32>
    %146 = arith.mulf %145, %142 : vector<8x88xf32>
    %147 = arith.select %144, %142, %146 : vector<8x88xi1>, vector<8x88xf32>
    %148 = vector.broadcast %114 : vector<1x88xf32> to vector<8x88xf32>
    %149 = arith.mulf %147, %148 : vector<8x88xf32>
    %150 = arith.truncf %149 : vector<8x88xf32> to vector<8x88xbf16>
    %cst_142 = arith.constant 0.000000e+00 : bf16
    %151 = vector.broadcast %cst_142 : bf16 to vector<8x99xbf16>
    %cst_143 = arith.constant 0.000000e+00 : bf16
    %152 = vector.broadcast %cst_143 : bf16 to vector<8x11xbf16>
    %153 = tpu.concatenate %151, %150, %152 in 1 : vector<8x99xbf16>, vector<8x88xbf16>, vector<8x11xbf16> -> vector<8x198xbf16>
    %c0_144 = arith.constant 0 : index
    %c0_145 = arith.constant 0 : index
    %c0_146 = arith.constant 0 : index
    %154 = vector.load %arg7[%c0_144, %c0_145, %c0_146] : memref<1x8x198xbf16, #tpu.memory_space<vmem>>, vector<1x8x198xbf16>
    %155 = vector.shape_cast %154 : vector<1x8x198xbf16> to vector<8x198xbf16>
    %156 = vector.shape_cast %153 : vector<8x198xbf16> to vector<1x8x198xbf16>
    tpu.vector_store %arg7[%c0_144, %c0_145, %c0_146], %156 {strides = array<i32>} : memref<1x8x198xbf16, #tpu.memory_space<vmem>>, vector<1x8x198xbf16>,
    return
  }
  func.func @transform_0(%arg0: i32) -> (i32, i32, i32) {
    %c0_i32 = arith.constant 0 : i32
    %c0_i32_0 = arith.constant 0 : i32
    %c0_i32_1 = arith.constant 0 : i32
    return %arg0, %c0_i32, %c0_i32_0 : i32, i32, i32
  }
  func.func @transform_1(%arg0: i32) -> (i32, i32, i32) {
    %c0_i32 = arith.constant 0 : i32
    %c0_i32_0 = arith.constant 0 : i32
    %c0_i32_1 = arith.constant 0 : i32
    return %arg0, %c0_i32, %c0_i32_0 : i32, i32, i32
  }
  func.func @transform_2(%arg0: i32) -> (i32, i32, i32) {
    %c0_i32 = arith.constant 0 : i32
    %c0_i32_0 = arith.constant 0 : i32
    %c0_i32_1 = arith.constant 0 : i32
    return %arg0, %c0_i32, %c0_i32_0 : i32, i32, i32
  }
  func.func @transform_3(%arg0: i32) -> (i32, i32, i32, i32) {
    %c0_i32 = arith.constant 0 : i32
    %c0_i32_0 = arith.constant 0 : i32
    %c0_i32_1 = arith.constant 0 : i32
    %c0_i32_2 = arith.constant 0 : i32
    %c0_i32_3 = arith.constant 0 : i32
    return %c0_i32, %c0_i32_0, %c0_i32_1, %c0_i32_2 : i32, i32, i32, i32
  }
  func.func @transform_4(%arg0: i32) -> (i32, i32) {
    %c0_i32 = arith.constant 0 : i32
    %c0_i32_0 = arith.constant 0 : i32
    %c0_i32_1 = arith.constant 0 : i32
    return %c0_i32, %c0_i32_0 : i32, i32
  }
  func.func @transform_5(%arg0: i32) -> (i32, i32) {
    %c0_i32 = arith.constant 0 : i32
    %c0_i32_0 = arith.constant 0 : i32
    %c0_i32_1 = arith.constant 0 : i32
    return %c0_i32, %c0_i32_0 : i32, i32
  }
  func.func @transform_6(%arg0: i32) -> (i32, i32, i32) {
    %c0_i32 = arith.constant 0 : i32
    %c0_i32_0 = arith.constant 0 : i32
    %c0_i32_1 = arith.constant 0 : i32
    return %arg0, %c0_i32, %c0_i32_0 : i32, i32, i32
  }
}

module attributes {stable_mosaic.version = 11 : i64} {
  func.func @kernel(%arg0: i32, %arg1: memref<1x8x198xbf16, #tpu.memory_space<vmem>>, %arg2: memref<1x8x198xbf16, #tpu.memory_space<vmem>>, %arg3: memref<1x8x198xbf16, #tpu.memory_space<vmem>>, %arg4: memref<1x8x198xbf16, #tpu.memory_space<vmem>>, %arg5: memref<4x6x8x8xbf16, #tpu.memory_space<vmem>>, %arg6: memref<8x8xf32, #tpu.memory_space<vmem>>, %arg7: memref<1x88xf32, #tpu.memory_space<vmem>>, %arg8: memref<1x8x198xbf16, #tpu.memory_space<vmem>>) attributes {dimension_semantics = [#tpu.dimension_semantics<parallel>], iteration_bounds = array<i64: 2>, scalar_prefetch = 0 : i64, scratch_operands = 0 : i64, tpu.core_type = #tpu.core_type<tc>, window_params = [{transform_indices = @transform_0, window_bounds = array<i64: 1, 8, 198>}, {transform_indices = @transform_1, window_bounds = array<i64: 1, 8, 198>}, {transform_indices = @transform_2, window_bounds = array<i64: 1, 8, 198>}, {transform_indices = @transform_3, window_bounds = array<i64: 1, 8, 198>}, {pipeline_mode = #tpu.pipeline_mode<synchronous>, transform_indices = @transform_4, window_bounds = array<i64: 4, 6, 8, 8>}, {pipeline_mode = #tpu.pipeline_mode<synchronous>, transform_indices = @transform_5, window_bounds = array<i64: 8, 8>}, {pipeline_mode = #tpu.pipeline_mode<synchronous>, transform_indices = @transform_6, window_bounds = array<i64: 1, 88>}, {transform_indices = @transform_7, window_bounds = array<i64: 1, 8, 198>}]} {
    %cst = arith.constant 0.000000e+00 : f32
    %0 = vector.broadcast %cst : f32 to vector<8x88xf32>
    %c0 = arith.constant 0 : index
    %c0_0 = arith.constant 0 : index
    %c10 = arith.constant 10 : index
    %1 = vector.load %arg1[%c0, %c0_0, %c10] : memref<1x8x198xbf16, #tpu.memory_space<vmem>>, vector<1x8x88xbf16>
    %2 = vector.shape_cast %1 : vector<1x8x88xbf16> to vector<8x88xbf16>
    %c0_1 = arith.constant 0 : index
    %c0_2 = arith.constant 0 : index
    %c0_3 = arith.constant 0 : index
    %c0_4 = arith.constant 0 : index
    %3 = vector.load %arg5[%c0_1, %c0_2, %c0_3, %c0_4] : memref<4x6x8x8xbf16, #tpu.memory_space<vmem>>, vector<1x1x8x8xbf16>
    %4 = vector.shape_cast %3 : vector<1x1x8x8xbf16> to vector<8x8xbf16>
    %cst_5 = arith.constant dense<0.000000e+00> : vector<8x88xf32>
    %5 = tpu.matmul %4, %2, %cst_5 {dimension_numbers = #tpu.dot_dimension_numbers<[1], [0], [0], [1], [0, 0, 1, 1], [], []>} : vector<8x8xbf16>, vector<8x88xbf16>, vector<8x88xf32> -> vector<8x88xf32>
    %6 = arith.addf %0, %5 : vector<8x88xf32>
    %c0_6 = arith.constant 0 : index
    %c0_7 = arith.constant 0 : index
    %c11 = arith.constant 11 : index
    %7 = vector.load %arg1[%c0_6, %c0_7, %c11] : memref<1x8x198xbf16, #tpu.memory_space<vmem>>, vector<1x8x88xbf16>
    %8 = vector.shape_cast %7 : vector<1x8x88xbf16> to vector<8x88xbf16>
    %c0_8 = arith.constant 0 : index
    %c1 = arith.constant 1 : index
    %c0_9 = arith.constant 0 : index
    %c0_10 = arith.constant 0 : index
    %9 = vector.load %arg5[%c0_8, %c1, %c0_9, %c0_10] : memref<4x6x8x8xbf16, #tpu.memory_space<vmem>>, vector<1x1x8x8xbf16>
    %10 = vector.shape_cast %9 : vector<1x1x8x8xbf16> to vector<8x8xbf16>
    %cst_11 = arith.constant dense<0.000000e+00> : vector<8x88xf32>
    %11 = tpu.matmul %10, %8, %cst_11 {dimension_numbers = #tpu.dot_dimension_numbers<[1], [0], [0], [1], [0, 0, 1, 1], [], []>} : vector<8x8xbf16>, vector<8x88xbf16>, vector<8x88xf32> -> vector<8x88xf32>
    %12 = arith.addf %6, %11 : vector<8x88xf32>
    %c0_12 = arith.constant 0 : index
    %c0_13 = arith.constant 0 : index
    %c12 = arith.constant 12 : index
    %13 = vector.load %arg1[%c0_12, %c0_13, %c12] : memref<1x8x198xbf16, #tpu.memory_space<vmem>>, vector<1x8x88xbf16>
    %14 = vector.shape_cast %13 : vector<1x8x88xbf16> to vector<8x88xbf16>
    %c0_14 = arith.constant 0 : index
    %c2 = arith.constant 2 : index
    %c0_15 = arith.constant 0 : index
    %c0_16 = arith.constant 0 : index
    %15 = vector.load %arg5[%c0_14, %c2, %c0_15, %c0_16] : memref<4x6x8x8xbf16, #tpu.memory_space<vmem>>, vector<1x1x8x8xbf16>
    %16 = vector.shape_cast %15 : vector<1x1x8x8xbf16> to vector<8x8xbf16>
    %cst_17 = arith.constant dense<0.000000e+00> : vector<8x88xf32>
    %17 = tpu.matmul %16, %14, %cst_17 {dimension_numbers = #tpu.dot_dimension_numbers<[1], [0], [0], [1], [0, 0, 1, 1], [], []>} : vector<8x8xbf16>, vector<8x88xbf16>, vector<8x88xf32> -> vector<8x88xf32>
    %18 = arith.addf %12, %17 : vector<8x88xf32>
    %c0_18 = arith.constant 0 : index
    %c0_19 = arith.constant 0 : index
    %c98 = arith.constant 98 : index
    %19 = vector.load %arg1[%c0_18, %c0_19, %c98] : memref<1x8x198xbf16, #tpu.memory_space<vmem>>, vector<1x8x88xbf16>
    %20 = vector.shape_cast %19 : vector<1x8x88xbf16> to vector<8x88xbf16>
    %c0_20 = arith.constant 0 : index
    %c3 = arith.constant 3 : index
    %c0_21 = arith.constant 0 : index
    %c0_22 = arith.constant 0 : index
    %21 = vector.load %arg5[%c0_20, %c3, %c0_21, %c0_22] : memref<4x6x8x8xbf16, #tpu.memory_space<vmem>>, vector<1x1x8x8xbf16>
    %22 = vector.shape_cast %21 : vector<1x1x8x8xbf16> to vector<8x8xbf16>
    %cst_23 = arith.constant dense<0.000000e+00> : vector<8x88xf32>
    %23 = tpu.matmul %22, %20, %cst_23 {dimension_numbers = #tpu.dot_dimension_numbers<[1], [0], [0], [1], [0, 0, 1, 1], [], []>} : vector<8x8xbf16>, vector<8x88xbf16>, vector<8x88xf32> -> vector<8x88xf32>
    %24 = arith.addf %18, %23 : vector<8x88xf32>
    %c0_24 = arith.constant 0 : index
    %c0_25 = arith.constant 0 : index
    %c99 = arith.constant 99 : index
    %25 = vector.load %arg1[%c0_24, %c0_25, %c99] : memref<1x8x198xbf16, #tpu.memory_space<vmem>>, vector<1x8x88xbf16>
    %26 = vector.shape_cast %25 : vector<1x8x88xbf16> to vector<8x88xbf16>
    %c0_26 = arith.constant 0 : index
    %c4 = arith.constant 4 : index
    %c0_27 = arith.constant 0 : index
    %c0_28 = arith.constant 0 : index
    %27 = vector.load %arg5[%c0_26, %c4, %c0_27, %c0_28] : memref<4x6x8x8xbf16, #tpu.memory_space<vmem>>, vector<1x1x8x8xbf16>
    %28 = vector.shape_cast %27 : vector<1x1x8x8xbf16> to vector<8x8xbf16>
    %cst_29 = arith.constant dense<0.000000e+00> : vector<8x88xf32>
    %29 = tpu.matmul %28, %26, %cst_29 {dimension_numbers = #tpu.dot_dimension_numbers<[1], [0], [0], [1], [0, 0, 1, 1], [], []>} : vector<8x8xbf16>, vector<8x88xbf16>, vector<8x88xf32> -> vector<8x88xf32>
    %30 = arith.addf %24, %29 : vector<8x88xf32>
    %c0_30 = arith.constant 0 : index
    %c0_31 = arith.constant 0 : index
    %c100 = arith.constant 100 : index
    %31 = vector.load %arg1[%c0_30, %c0_31, %c100] : memref<1x8x198xbf16, #tpu.memory_space<vmem>>, vector<1x8x88xbf16>
    %32 = vector.shape_cast %31 : vector<1x8x88xbf16> to vector<8x88xbf16>
    %c0_32 = arith.constant 0 : index
    %c5 = arith.constant 5 : index
    %c0_33 = arith.constant 0 : index
    %c0_34 = arith.constant 0 : index
    %33 = vector.load %arg5[%c0_32, %c5, %c0_33, %c0_34] : memref<4x6x8x8xbf16, #tpu.memory_space<vmem>>, vector<1x1x8x8xbf16>
    %34 = vector.shape_cast %33 : vector<1x1x8x8xbf16> to vector<8x8xbf16>
    %cst_35 = arith.constant dense<0.000000e+00> : vector<8x88xf32>
    %35 = tpu.matmul %34, %32, %cst_35 {dimension_numbers = #tpu.dot_dimension_numbers<[1], [0], [0], [1], [0, 0, 1, 1], [], []>} : vector<8x8xbf16>, vector<8x88xbf16>, vector<8x88xf32> -> vector<8x88xf32>
    %36 = arith.addf %30, %35 : vector<8x88xf32>
    %c0_36 = arith.constant 0 : index
    %c0_37 = arith.constant 0 : index
    %c10_38 = arith.constant 10 : index
    %37 = vector.load %arg2[%c0_36, %c0_37, %c10_38] : memref<1x8x198xbf16, #tpu.memory_space<vmem>>, vector<1x8x88xbf16>
    %38 = vector.shape_cast %37 : vector<1x8x88xbf16> to vector<8x88xbf16>
    %c1_39 = arith.constant 1 : index
    %c0_40 = arith.constant 0 : index
    %c0_41 = arith.constant 0 : index
    %c0_42 = arith.constant 0 : index
    %39 = vector.load %arg5[%c1_39, %c0_40, %c0_41, %c0_42] : memref<4x6x8x8xbf16, #tpu.memory_space<vmem>>, vector<1x1x8x8xbf16>
    %40 = vector.shape_cast %39 : vector<1x1x8x8xbf16> to vector<8x8xbf16>
    %cst_43 = arith.constant dense<0.000000e+00> : vector<8x88xf32>
    %41 = tpu.matmul %40, %38, %cst_43 {dimension_numbers = #tpu.dot_dimension_numbers<[1], [0], [0], [1], [0, 0, 1, 1], [], []>} : vector<8x8xbf16>, vector<8x88xbf16>, vector<8x88xf32> -> vector<8x88xf32>
    %42 = arith.addf %36, %41 : vector<8x88xf32>
    %c0_44 = arith.constant 0 : index
    %c0_45 = arith.constant 0 : index
    %c11_46 = arith.constant 11 : index
    %43 = vector.load %arg2[%c0_44, %c0_45, %c11_46] : memref<1x8x198xbf16, #tpu.memory_space<vmem>>, vector<1x8x88xbf16>
    %44 = vector.shape_cast %43 : vector<1x8x88xbf16> to vector<8x88xbf16>
    %c1_47 = arith.constant 1 : index
    %c1_48 = arith.constant 1 : index
    %c0_49 = arith.constant 0 : index
    %c0_50 = arith.constant 0 : index
    %45 = vector.load %arg5[%c1_47, %c1_48, %c0_49, %c0_50] : memref<4x6x8x8xbf16, #tpu.memory_space<vmem>>, vector<1x1x8x8xbf16>
    %46 = vector.shape_cast %45 : vector<1x1x8x8xbf16> to vector<8x8xbf16>
    %cst_51 = arith.constant dense<0.000000e+00> : vector<8x88xf32>
    %47 = tpu.matmul %46, %44, %cst_51 {dimension_numbers = #tpu.dot_dimension_numbers<[1], [0], [0], [1], [0, 0, 1, 1], [], []>} : vector<8x8xbf16>, vector<8x88xbf16>, vector<8x88xf32> -> vector<8x88xf32>
    %48 = arith.addf %42, %47 : vector<8x88xf32>
    %c0_52 = arith.constant 0 : index
    %c0_53 = arith.constant 0 : index
    %c12_54 = arith.constant 12 : index
    %49 = vector.load %arg2[%c0_52, %c0_53, %c12_54] : memref<1x8x198xbf16, #tpu.memory_space<vmem>>, vector<1x8x88xbf16>
    %50 = vector.shape_cast %49 : vector<1x8x88xbf16> to vector<8x88xbf16>
    %c1_55 = arith.constant 1 : index
    %c2_56 = arith.constant 2 : index
    %c0_57 = arith.constant 0 : index
    %c0_58 = arith.constant 0 : index
    %51 = vector.load %arg5[%c1_55, %c2_56, %c0_57, %c0_58] : memref<4x6x8x8xbf16, #tpu.memory_space<vmem>>, vector<1x1x8x8xbf16>
    %52 = vector.shape_cast %51 : vector<1x1x8x8xbf16> to vector<8x8xbf16>
    %cst_59 = arith.constant dense<0.000000e+00> : vector<8x88xf32>
    %53 = tpu.matmul %52, %50, %cst_59 {dimension_numbers = #tpu.dot_dimension_numbers<[1], [0], [0], [1], [0, 0, 1, 1], [], []>} : vector<8x8xbf16>, vector<8x88xbf16>, vector<8x88xf32> -> vector<8x88xf32>
    %54 = arith.addf %48, %53 : vector<8x88xf32>
    %c0_60 = arith.constant 0 : index
    %c0_61 = arith.constant 0 : index
    %c98_62 = arith.constant 98 : index
    %55 = vector.load %arg2[%c0_60, %c0_61, %c98_62] : memref<1x8x198xbf16, #tpu.memory_space<vmem>>, vector<1x8x88xbf16>
    %56 = vector.shape_cast %55 : vector<1x8x88xbf16> to vector<8x88xbf16>
    %c1_63 = arith.constant 1 : index
    %c3_64 = arith.constant 3 : index
    %c0_65 = arith.constant 0 : index
    %c0_66 = arith.constant 0 : index
    %57 = vector.load %arg5[%c1_63, %c3_64, %c0_65, %c0_66] : memref<4x6x8x8xbf16, #tpu.memory_space<vmem>>, vector<1x1x8x8xbf16>
    %58 = vector.shape_cast %57 : vector<1x1x8x8xbf16> to vector<8x8xbf16>
    %cst_67 = arith.constant dense<0.000000e+00> : vector<8x88xf32>
    %59 = tpu.matmul %58, %56, %cst_67 {dimension_numbers = #tpu.dot_dimension_numbers<[1], [0], [0], [1], [0, 0, 1, 1], [], []>} : vector<8x8xbf16>, vector<8x88xbf16>, vector<8x88xf32> -> vector<8x88xf32>
    %60 = arith.addf %54, %59 : vector<8x88xf32>
    %c0_68 = arith.constant 0 : index
    %c0_69 = arith.constant 0 : index
    %c99_70 = arith.constant 99 : index
    %61 = vector.load %arg2[%c0_68, %c0_69, %c99_70] : memref<1x8x198xbf16, #tpu.memory_space<vmem>>, vector<1x8x88xbf16>
    %62 = vector.shape_cast %61 : vector<1x8x88xbf16> to vector<8x88xbf16>
    %c1_71 = arith.constant 1 : index
    %c4_72 = arith.constant 4 : index
    %c0_73 = arith.constant 0 : index
    %c0_74 = arith.constant 0 : index
    %63 = vector.load %arg5[%c1_71, %c4_72, %c0_73, %c0_74] : memref<4x6x8x8xbf16, #tpu.memory_space<vmem>>, vector<1x1x8x8xbf16>
    %64 = vector.shape_cast %63 : vector<1x1x8x8xbf16> to vector<8x8xbf16>
    %cst_75 = arith.constant dense<0.000000e+00> : vector<8x88xf32>
    %65 = tpu.matmul %64, %62, %cst_75 {dimension_numbers = #tpu.dot_dimension_numbers<[1], [0], [0], [1], [0, 0, 1, 1], [], []>} : vector<8x8xbf16>, vector<8x88xbf16>, vector<8x88xf32> -> vector<8x88xf32>
    %66 = arith.addf %60, %65 : vector<8x88xf32>
    %c0_76 = arith.constant 0 : index
    %c0_77 = arith.constant 0 : index
    %c100_78 = arith.constant 100 : index
    %67 = vector.load %arg2[%c0_76, %c0_77, %c100_78] : memref<1x8x198xbf16, #tpu.memory_space<vmem>>, vector<1x8x88xbf16>
    %68 = vector.shape_cast %67 : vector<1x8x88xbf16> to vector<8x88xbf16>
    %c1_79 = arith.constant 1 : index
    %c5_80 = arith.constant 5 : index
    %c0_81 = arith.constant 0 : index
    %c0_82 = arith.constant 0 : index
    %69 = vector.load %arg5[%c1_79, %c5_80, %c0_81, %c0_82] : memref<4x6x8x8xbf16, #tpu.memory_space<vmem>>, vector<1x1x8x8xbf16>
    %70 = vector.shape_cast %69 : vector<1x1x8x8xbf16> to vector<8x8xbf16>
    %cst_83 = arith.constant dense<0.000000e+00> : vector<8x88xf32>
    %71 = tpu.matmul %70, %68, %cst_83 {dimension_numbers = #tpu.dot_dimension_numbers<[1], [0], [0], [1], [0, 0, 1, 1], [], []>} : vector<8x8xbf16>, vector<8x88xbf16>, vector<8x88xf32> -> vector<8x88xf32>
    %72 = arith.addf %66, %71 : vector<8x88xf32>
    %c0_84 = arith.constant 0 : index
    %c0_85 = arith.constant 0 : index
    %c10_86 = arith.constant 10 : index
    %73 = vector.load %arg3[%c0_84, %c0_85, %c10_86] : memref<1x8x198xbf16, #tpu.memory_space<vmem>>, vector<1x8x88xbf16>
    %74 = vector.shape_cast %73 : vector<1x8x88xbf16> to vector<8x88xbf16>
    %c2_87 = arith.constant 2 : index
    %c0_88 = arith.constant 0 : index
    %c0_89 = arith.constant 0 : index
    %c0_90 = arith.constant 0 : index
    %75 = vector.load %arg5[%c2_87, %c0_88, %c0_89, %c0_90] : memref<4x6x8x8xbf16, #tpu.memory_space<vmem>>, vector<1x1x8x8xbf16>
    %76 = vector.shape_cast %75 : vector<1x1x8x8xbf16> to vector<8x8xbf16>
    %cst_91 = arith.constant dense<0.000000e+00> : vector<8x88xf32>
    %77 = tpu.matmul %76, %74, %cst_91 {dimension_numbers = #tpu.dot_dimension_numbers<[1], [0], [0], [1], [0, 0, 1, 1], [], []>} : vector<8x8xbf16>, vector<8x88xbf16>, vector<8x88xf32> -> vector<8x88xf32>
    %78 = arith.addf %72, %77 : vector<8x88xf32>
    %c0_92 = arith.constant 0 : index
    %c0_93 = arith.constant 0 : index
    %c11_94 = arith.constant 11 : index
    %79 = vector.load %arg3[%c0_92, %c0_93, %c11_94] : memref<1x8x198xbf16, #tpu.memory_space<vmem>>, vector<1x8x88xbf16>
    %80 = vector.shape_cast %79 : vector<1x8x88xbf16> to vector<8x88xbf16>
    %c2_95 = arith.constant 2 : index
    %c1_96 = arith.constant 1 : index
    %c0_97 = arith.constant 0 : index
    %c0_98 = arith.constant 0 : index
    %81 = vector.load %arg5[%c2_95, %c1_96, %c0_97, %c0_98] : memref<4x6x8x8xbf16, #tpu.memory_space<vmem>>, vector<1x1x8x8xbf16>
    %82 = vector.shape_cast %81 : vector<1x1x8x8xbf16> to vector<8x8xbf16>
    %cst_99 = arith.constant dense<0.000000e+00> : vector<8x88xf32>
    %83 = tpu.matmul %82, %80, %cst_99 {dimension_numbers = #tpu.dot_dimension_numbers<[1], [0], [0], [1], [0, 0, 1, 1], [], []>} : vector<8x8xbf16>, vector<8x88xbf16>, vector<8x88xf32> -> vector<8x88xf32>
    %84 = arith.addf %78, %83 : vector<8x88xf32>
    %c0_100 = arith.constant 0 : index
    %c0_101 = arith.constant 0 : index
    %c12_102 = arith.constant 12 : index
    %85 = vector.load %arg3[%c0_100, %c0_101, %c12_102] : memref<1x8x198xbf16, #tpu.memory_space<vmem>>, vector<1x8x88xbf16>
    %86 = vector.shape_cast %85 : vector<1x8x88xbf16> to vector<8x88xbf16>
    %c2_103 = arith.constant 2 : index
    %c2_104 = arith.constant 2 : index
    %c0_105 = arith.constant 0 : index
    %c0_106 = arith.constant 0 : index
    %87 = vector.load %arg5[%c2_103, %c2_104, %c0_105, %c0_106] : memref<4x6x8x8xbf16, #tpu.memory_space<vmem>>, vector<1x1x8x8xbf16>
    %88 = vector.shape_cast %87 : vector<1x1x8x8xbf16> to vector<8x8xbf16>
    %cst_107 = arith.constant dense<0.000000e+00> : vector<8x88xf32>
    %89 = tpu.matmul %88, %86, %cst_107 {dimension_numbers = #tpu.dot_dimension_numbers<[1], [0], [0], [1], [0, 0, 1, 1], [], []>} : vector<8x8xbf16>, vector<8x88xbf16>, vector<8x88xf32> -> vector<8x88xf32>
    %90 = arith.addf %84, %89 : vector<8x88xf32>
    %c0_108 = arith.constant 0 : index
    %c0_109 = arith.constant 0 : index
    %c98_110 = arith.constant 98 : index
    %91 = vector.load %arg3[%c0_108, %c0_109, %c98_110] : memref<1x8x198xbf16, #tpu.memory_space<vmem>>, vector<1x8x88xbf16>
    %92 = vector.shape_cast %91 : vector<1x8x88xbf16> to vector<8x88xbf16>
    %c2_111 = arith.constant 2 : index
    %c3_112 = arith.constant 3 : index
    %c0_113 = arith.constant 0 : index
    %c0_114 = arith.constant 0 : index
    %93 = vector.load %arg5[%c2_111, %c3_112, %c0_113, %c0_114] : memref<4x6x8x8xbf16, #tpu.memory_space<vmem>>, vector<1x1x8x8xbf16>
    %94 = vector.shape_cast %93 : vector<1x1x8x8xbf16> to vector<8x8xbf16>
    %cst_115 = arith.constant dense<0.000000e+00> : vector<8x88xf32>
    %95 = tpu.matmul %94, %92, %cst_115 {dimension_numbers = #tpu.dot_dimension_numbers<[1], [0], [0], [1], [0, 0, 1, 1], [], []>} : vector<8x8xbf16>, vector<8x88xbf16>, vector<8x88xf32> -> vector<8x88xf32>
    %96 = arith.addf %90, %95 : vector<8x88xf32>
    %c0_116 = arith.constant 0 : index
    %c0_117 = arith.constant 0 : index
    %c99_118 = arith.constant 99 : index
    %97 = vector.load %arg3[%c0_116, %c0_117, %c99_118] : memref<1x8x198xbf16, #tpu.memory_space<vmem>>, vector<1x8x88xbf16>
    %98 = vector.shape_cast %97 : vector<1x8x88xbf16> to vector<8x88xbf16>
    %c2_119 = arith.constant 2 : index
    %c4_120 = arith.constant 4 : index
    %c0_121 = arith.constant 0 : index
    %c0_122 = arith.constant 0 : index
    %99 = vector.load %arg5[%c2_119, %c4_120, %c0_121, %c0_122] : memref<4x6x8x8xbf16, #tpu.memory_space<vmem>>, vector<1x1x8x8xbf16>
    %100 = vector.shape_cast %99 : vector<1x1x8x8xbf16> to vector<8x8xbf16>
    %cst_123 = arith.constant dense<0.000000e+00> : vector<8x88xf32>
    %101 = tpu.matmul %100, %98, %cst_123 {dimension_numbers = #tpu.dot_dimension_numbers<[1], [0], [0], [1], [0, 0, 1, 1], [], []>} : vector<8x8xbf16>, vector<8x88xbf16>, vector<8x88xf32> -> vector<8x88xf32>
    %102 = arith.addf %96, %101 : vector<8x88xf32>
    %c0_124 = arith.constant 0 : index
    %c0_125 = arith.constant 0 : index
    %c100_126 = arith.constant 100 : index
    %103 = vector.load %arg3[%c0_124, %c0_125, %c100_126] : memref<1x8x198xbf16, #tpu.memory_space<vmem>>, vector<1x8x88xbf16>
    %104 = vector.shape_cast %103 : vector<1x8x88xbf16> to vector<8x88xbf16>
    %c2_127 = arith.constant 2 : index
    %c5_128 = arith.constant 5 : index
    %c0_129 = arith.constant 0 : index
    %c0_130 = arith.constant 0 : index
    %105 = vector.load %arg5[%c2_127, %c5_128, %c0_129, %c0_130] : memref<4x6x8x8xbf16, #tpu.memory_space<vmem>>, vector<1x1x8x8xbf16>
    %106 = vector.shape_cast %105 : vector<1x1x8x8xbf16> to vector<8x8xbf16>
    %cst_131 = arith.constant dense<0.000000e+00> : vector<8x88xf32>
    %107 = tpu.matmul %106, %104, %cst_131 {dimension_numbers = #tpu.dot_dimension_numbers<[1], [0], [0], [1], [0, 0, 1, 1], [], []>} : vector<8x8xbf16>, vector<8x88xbf16>, vector<8x88xf32> -> vector<8x88xf32>
    %108 = arith.addf %102, %107 : vector<8x88xf32>
    %c0_132 = arith.constant 0 : index
    %c0_133 = arith.constant 0 : index
    %c10_134 = arith.constant 10 : index
    %109 = vector.load %arg4[%c0_132, %c0_133, %c10_134] : memref<1x8x198xbf16, #tpu.memory_space<vmem>>, vector<1x8x88xbf16>
    %110 = vector.shape_cast %109 : vector<1x8x88xbf16> to vector<8x88xbf16>
    %c3_135 = arith.constant 3 : index
    %c0_136 = arith.constant 0 : index
    %c0_137 = arith.constant 0 : index
    %c0_138 = arith.constant 0 : index
    %111 = vector.load %arg5[%c3_135, %c0_136, %c0_137, %c0_138] : memref<4x6x8x8xbf16, #tpu.memory_space<vmem>>, vector<1x1x8x8xbf16>
    %112 = vector.shape_cast %111 : vector<1x1x8x8xbf16> to vector<8x8xbf16>
    %cst_139 = arith.constant dense<0.000000e+00> : vector<8x88xf32>
    %113 = tpu.matmul %112, %110, %cst_139 {dimension_numbers = #tpu.dot_dimension_numbers<[1], [0], [0], [1], [0, 0, 1, 1], [], []>} : vector<8x8xbf16>, vector<8x88xbf16>, vector<8x88xf32> -> vector<8x88xf32>
    %114 = arith.addf %108, %113 : vector<8x88xf32>
    %c0_140 = arith.constant 0 : index
    %c0_141 = arith.constant 0 : index
    %c11_142 = arith.constant 11 : index
    %115 = vector.load %arg4[%c0_140, %c0_141, %c11_142] : memref<1x8x198xbf16, #tpu.memory_space<vmem>>, vector<1x8x88xbf16>
    %116 = vector.shape_cast %115 : vector<1x8x88xbf16> to vector<8x88xbf16>
    %c3_143 = arith.constant 3 : index
    %c1_144 = arith.constant 1 : index
    %c0_145 = arith.constant 0 : index
    %c0_146 = arith.constant 0 : index
    %117 = vector.load %arg5[%c3_143, %c1_144, %c0_145, %c0_146] : memref<4x6x8x8xbf16, #tpu.memory_space<vmem>>, vector<1x1x8x8xbf16>
    %118 = vector.shape_cast %117 : vector<1x1x8x8xbf16> to vector<8x8xbf16>
    %cst_147 = arith.constant dense<0.000000e+00> : vector<8x88xf32>
    %119 = tpu.matmul %118, %116, %cst_147 {dimension_numbers = #tpu.dot_dimension_numbers<[1], [0], [0], [1], [0, 0, 1, 1], [], []>} : vector<8x8xbf16>, vector<8x88xbf16>, vector<8x88xf32> -> vector<8x88xf32>
    %120 = arith.addf %114, %119 : vector<8x88xf32>
    %c0_148 = arith.constant 0 : index
    %c0_149 = arith.constant 0 : index
    %c12_150 = arith.constant 12 : index
    %121 = vector.load %arg4[%c0_148, %c0_149, %c12_150] : memref<1x8x198xbf16, #tpu.memory_space<vmem>>, vector<1x8x88xbf16>
    %122 = vector.shape_cast %121 : vector<1x8x88xbf16> to vector<8x88xbf16>
    %c3_151 = arith.constant 3 : index
    %c2_152 = arith.constant 2 : index
    %c0_153 = arith.constant 0 : index
    %c0_154 = arith.constant 0 : index
    %123 = vector.load %arg5[%c3_151, %c2_152, %c0_153, %c0_154] : memref<4x6x8x8xbf16, #tpu.memory_space<vmem>>, vector<1x1x8x8xbf16>
    %124 = vector.shape_cast %123 : vector<1x1x8x8xbf16> to vector<8x8xbf16>
    %cst_155 = arith.constant dense<0.000000e+00> : vector<8x88xf32>
    %125 = tpu.matmul %124, %122, %cst_155 {dimension_numbers = #tpu.dot_dimension_numbers<[1], [0], [0], [1], [0, 0, 1, 1], [], []>} : vector<8x8xbf16>, vector<8x88xbf16>, vector<8x88xf32> -> vector<8x88xf32>
    %126 = arith.addf %120, %125 : vector<8x88xf32>
    %c0_156 = arith.constant 0 : index
    %c0_157 = arith.constant 0 : index
    %c98_158 = arith.constant 98 : index
    %127 = vector.load %arg4[%c0_156, %c0_157, %c98_158] : memref<1x8x198xbf16, #tpu.memory_space<vmem>>, vector<1x8x88xbf16>
    %128 = vector.shape_cast %127 : vector<1x8x88xbf16> to vector<8x88xbf16>
    %c3_159 = arith.constant 3 : index
    %c3_160 = arith.constant 3 : index
    %c0_161 = arith.constant 0 : index
    %c0_162 = arith.constant 0 : index
    %129 = vector.load %arg5[%c3_159, %c3_160, %c0_161, %c0_162] : memref<4x6x8x8xbf16, #tpu.memory_space<vmem>>, vector<1x1x8x8xbf16>
    %130 = vector.shape_cast %129 : vector<1x1x8x8xbf16> to vector<8x8xbf16>
    %cst_163 = arith.constant dense<0.000000e+00> : vector<8x88xf32>
    %131 = tpu.matmul %130, %128, %cst_163 {dimension_numbers = #tpu.dot_dimension_numbers<[1], [0], [0], [1], [0, 0, 1, 1], [], []>} : vector<8x8xbf16>, vector<8x88xbf16>, vector<8x88xf32> -> vector<8x88xf32>
    %132 = arith.addf %126, %131 : vector<8x88xf32>
    %c0_164 = arith.constant 0 : index
    %c0_165 = arith.constant 0 : index
    %c99_166 = arith.constant 99 : index
    %133 = vector.load %arg4[%c0_164, %c0_165, %c99_166] : memref<1x8x198xbf16, #tpu.memory_space<vmem>>, vector<1x8x88xbf16>
    %134 = vector.shape_cast %133 : vector<1x8x88xbf16> to vector<8x88xbf16>
    %c3_167 = arith.constant 3 : index
    %c4_168 = arith.constant 4 : index
    %c0_169 = arith.constant 0 : index
    %c0_170 = arith.constant 0 : index
    %135 = vector.load %arg5[%c3_167, %c4_168, %c0_169, %c0_170] : memref<4x6x8x8xbf16, #tpu.memory_space<vmem>>, vector<1x1x8x8xbf16>
    %136 = vector.shape_cast %135 : vector<1x1x8x8xbf16> to vector<8x8xbf16>
    %cst_171 = arith.constant dense<0.000000e+00> : vector<8x88xf32>
    %137 = tpu.matmul %136, %134, %cst_171 {dimension_numbers = #tpu.dot_dimension_numbers<[1], [0], [0], [1], [0, 0, 1, 1], [], []>} : vector<8x8xbf16>, vector<8x88xbf16>, vector<8x88xf32> -> vector<8x88xf32>
    %138 = arith.addf %132, %137 : vector<8x88xf32>
    %c0_172 = arith.constant 0 : index
    %c0_173 = arith.constant 0 : index
    %c100_174 = arith.constant 100 : index
    %139 = vector.load %arg4[%c0_172, %c0_173, %c100_174] : memref<1x8x198xbf16, #tpu.memory_space<vmem>>, vector<1x8x88xbf16>
    %140 = vector.shape_cast %139 : vector<1x8x88xbf16> to vector<8x88xbf16>
    %c3_175 = arith.constant 3 : index
    %c5_176 = arith.constant 5 : index
    %c0_177 = arith.constant 0 : index
    %c0_178 = arith.constant 0 : index
    %141 = vector.load %arg5[%c3_175, %c5_176, %c0_177, %c0_178] : memref<4x6x8x8xbf16, #tpu.memory_space<vmem>>, vector<1x1x8x8xbf16>
    %142 = vector.shape_cast %141 : vector<1x1x8x8xbf16> to vector<8x8xbf16>
    %cst_179 = arith.constant dense<0.000000e+00> : vector<8x88xf32>
    %143 = tpu.matmul %142, %140, %cst_179 {dimension_numbers = #tpu.dot_dimension_numbers<[1], [0], [0], [1], [0, 0, 1, 1], [], []>} : vector<8x8xbf16>, vector<8x88xbf16>, vector<8x88xf32> -> vector<8x88xf32>
    %144 = arith.addf %138, %143 : vector<8x88xf32>
    %c0_180 = arith.constant 0 : index
    %c0_181 = arith.constant 0 : index
    %145 = vector.load %arg6[%c0_180, %c0_181] : memref<8x8xf32, #tpu.memory_space<vmem>>, vector<8x8xf32>
    %146 = vector.extract_strided_slice %145 {offsets = [0, 0], sizes = [8, 1], strides = [1, 1]} : vector<8x8xf32> to vector<8x1xf32>
    %147 = vector.extract_strided_slice %145 {offsets = [0, 1], sizes = [8, 1], strides = [1, 1]} : vector<8x8xf32> to vector<8x1xf32>
    %148 = vector.extract_strided_slice %145 {offsets = [0, 2], sizes = [8, 1], strides = [1, 1]} : vector<8x8xf32> to vector<8x1xf32>
    %149 = vector.extract_strided_slice %145 {offsets = [0, 3], sizes = [8, 1], strides = [1, 1]} : vector<8x8xf32> to vector<8x1xf32>
    %c0_182 = arith.constant 0 : index
    %c0_183 = arith.constant 0 : index
    %150 = vector.load %arg7[%c0_182, %c0_183] : memref<1x88xf32, #tpu.memory_space<vmem>>, vector<1x88xf32>
    %151 = vector.broadcast %146 : vector<8x1xf32> to vector<8x88xf32>
    %152 = arith.addf %144, %151 : vector<8x88xf32>
    %153 = vector.broadcast %150 : vector<1x88xf32> to vector<8x88xf32>
    %154 = arith.mulf %152, %153 : vector<8x88xf32>
    %cst_184 = arith.constant dense<0.000000e+00> : vector<8xf32>
    %155 = vector.multi_reduction <add>, %154, %cst_184 [1] : vector<8x88xf32> to vector<8xf32>
    %156 = vector.shape_cast %155 : vector<8xf32> to vector<8x1xf32>
    %cst_185 = arith.constant 0.013888889 : f32
    %157 = vector.broadcast %cst_185 : f32 to vector<8x1xf32>
    %158 = arith.mulf %156, %157 : vector<8x1xf32>
    %159 = vector.broadcast %158 : vector<8x1xf32> to vector<8x88xf32>
    %160 = arith.subf %152, %159 : vector<8x88xf32>
    %161 = vector.broadcast %150 : vector<1x88xf32> to vector<8x88xf32>
    %162 = arith.mulf %160, %161 : vector<8x88xf32>
    %163 = arith.mulf %162, %162 : vector<8x88xf32>
    %cst_186 = arith.constant dense<0.000000e+00> : vector<8xf32>
    %164 = vector.multi_reduction <add>, %163, %cst_186 [1] : vector<8x88xf32> to vector<8xf32>
    %165 = vector.shape_cast %164 : vector<8xf32> to vector<8x1xf32>
    %cst_187 = arith.constant 0.013888889 : f32
    %166 = vector.broadcast %cst_187 : f32 to vector<8x1xf32>
    %167 = arith.mulf %165, %166 : vector<8x1xf32>
    %168 = vector.broadcast %158 : vector<8x1xf32> to vector<8x88xf32>
    %169 = arith.subf %152, %168 : vector<8x88xf32>
    %cst_188 = arith.constant 9.99999974E-6 : f32
    %170 = vector.broadcast %cst_188 : f32 to vector<8x1xf32>
    %171 = arith.addf %167, %170 : vector<8x1xf32>
    %172 = math.rsqrt %171 : vector<8x1xf32>
    %173 = vector.broadcast %172 : vector<8x1xf32> to vector<8x88xf32>
    %174 = arith.mulf %169, %173 : vector<8x88xf32>
    %175 = vector.broadcast %147 : vector<8x1xf32> to vector<8x88xf32>
    %176 = arith.mulf %174, %175 : vector<8x88xf32>
    %177 = vector.broadcast %148 : vector<8x1xf32> to vector<8x88xf32>
    %178 = arith.addf %176, %177 : vector<8x88xf32>
    %cst_189 = arith.constant 0.000000e+00 : f32
    %179 = vector.broadcast %cst_189 : f32 to vector<8x88xf32>
    %180 = arith.cmpf oge, %178, %179 : vector<8x88xf32>
    %181 = vector.broadcast %149 : vector<8x1xf32> to vector<8x88xf32>
    %182 = arith.mulf %181, %178 : vector<8x88xf32>
    %183 = arith.select %180, %178, %182 : vector<8x88xi1>, vector<8x88xf32>
    %184 = vector.broadcast %150 : vector<1x88xf32> to vector<8x88xf32>
    %185 = arith.mulf %183, %184 : vector<8x88xf32>
    %186 = arith.truncf %185 : vector<8x88xf32> to vector<8x88xbf16>
    %cst_190 = arith.constant 0.000000e+00 : bf16
    %187 = vector.broadcast %cst_190 : bf16 to vector<8x99xbf16>
    %cst_191 = arith.constant 0.000000e+00 : bf16
    %188 = vector.broadcast %cst_191 : bf16 to vector<8x11xbf16>
    %189 = tpu.concatenate %187, %186, %188 in 1 : vector<8x99xbf16>, vector<8x88xbf16>, vector<8x11xbf16> -> vector<8x198xbf16>
    %c0_192 = arith.constant 0 : index
    %c0_193 = arith.constant 0 : index
    %c0_194 = arith.constant 0 : index
    %190 = vector.load %arg8[%c0_192, %c0_193, %c0_194] : memref<1x8x198xbf16, #tpu.memory_space<vmem>>, vector<1x8x198xbf16>
    %191 = vector.shape_cast %190 : vector<1x8x198xbf16> to vector<8x198xbf16>
    %192 = vector.shape_cast %189 : vector<8x198xbf16> to vector<1x8x198xbf16>
    tpu.vector_store %arg8[%c0_192, %c0_193, %c0_194], %192 {strides = array<i32>} : memref<1x8x198xbf16, #tpu.memory_space<vmem>>, vector<1x8x198xbf16>,
    return
  }
  func.func @transform_0(%arg0: i32) -> (i32, i32, i32) {
    %c0_i32 = arith.constant 0 : i32
    %c0_i32_0 = arith.constant 0 : i32
    %c0_i32_1 = arith.constant 0 : i32
    return %arg0, %c0_i32, %c0_i32_0 : i32, i32, i32
  }
  func.func @transform_1(%arg0: i32) -> (i32, i32, i32) {
    %c0_i32 = arith.constant 0 : i32
    %c0_i32_0 = arith.constant 0 : i32
    %c0_i32_1 = arith.constant 0 : i32
    return %arg0, %c0_i32, %c0_i32_0 : i32, i32, i32
  }
  func.func @transform_2(%arg0: i32) -> (i32, i32, i32) {
    %c0_i32 = arith.constant 0 : i32
    %c0_i32_0 = arith.constant 0 : i32
    %c0_i32_1 = arith.constant 0 : i32
    return %arg0, %c0_i32, %c0_i32_0 : i32, i32, i32
  }
  func.func @transform_3(%arg0: i32) -> (i32, i32, i32) {
    %c0_i32 = arith.constant 0 : i32
    %c0_i32_0 = arith.constant 0 : i32
    %c0_i32_1 = arith.constant 0 : i32
    return %arg0, %c0_i32, %c0_i32_0 : i32, i32, i32
  }
  func.func @transform_4(%arg0: i32) -> (i32, i32, i32, i32) {
    %c0_i32 = arith.constant 0 : i32
    %c0_i32_0 = arith.constant 0 : i32
    %c0_i32_1 = arith.constant 0 : i32
    %c0_i32_2 = arith.constant 0 : i32
    %c0_i32_3 = arith.constant 0 : i32
    return %c0_i32, %c0_i32_0, %c0_i32_1, %c0_i32_2 : i32, i32, i32, i32
  }
  func.func @transform_5(%arg0: i32) -> (i32, i32) {
    %c0_i32 = arith.constant 0 : i32
    %c0_i32_0 = arith.constant 0 : i32
    %c0_i32_1 = arith.constant 0 : i32
    return %c0_i32, %c0_i32_0 : i32, i32
  }
  func.func @transform_6(%arg0: i32) -> (i32, i32) {
    %c0_i32 = arith.constant 0 : i32
    %c0_i32_0 = arith.constant 0 : i32
    %c0_i32_1 = arith.constant 0 : i32
    return %c0_i32, %c0_i32_0 : i32, i32
  }
  func.func @transform_7(%arg0: i32) -> (i32, i32, i32) {
    %c0_i32 = arith.constant 0 : i32
    %c0_i32_0 = arith.constant 0 : i32
    %c0_i32_1 = arith.constant 0 : i32
    return %arg0, %c0_i32, %c0_i32_0 : i32, i32, i32
  }
}

module attributes {stable_mosaic.version = 11 : i64} {
  func.func @kernel(%arg0: i32, %arg1: memref<1x8x198xbf16, #tpu.memory_space<vmem>>, %arg2: memref<3x16x8xbf16, #tpu.memory_space<vmem>>, %arg3: memref<16x8xf32, #tpu.memory_space<vmem>>, %arg4: memref<8x8xf32, #tpu.memory_space<vmem>>, %arg5: memref<1x88xf32, #tpu.memory_space<vmem>>, %arg6: memref<2x88xf32, #tpu.memory_space<vmem>>, %arg7: memref<1x2x88xf32, #tpu.memory_space<vmem>>) attributes {dimension_semantics = [#tpu.dimension_semantics<parallel>], iteration_bounds = array<i64: 2>, scalar_prefetch = 0 : i64, scratch_operands = 0 : i64, tpu.core_type = #tpu.core_type<tc>, window_params = [{transform_indices = @transform_0, window_bounds = array<i64: 1, 8, 198>}, {pipeline_mode = #tpu.pipeline_mode<synchronous>, transform_indices = @transform_1, window_bounds = array<i64: 3, 16, 8>}, {pipeline_mode = #tpu.pipeline_mode<synchronous>, transform_indices = @transform_2, window_bounds = array<i64: 16, 8>}, {pipeline_mode = #tpu.pipeline_mode<synchronous>, transform_indices = @transform_3, window_bounds = array<i64: 8, 8>}, {pipeline_mode = #tpu.pipeline_mode<synchronous>, transform_indices = @transform_4, window_bounds = array<i64: 1, 88>}, {pipeline_mode = #tpu.pipeline_mode<synchronous>, transform_indices = @transform_5, window_bounds = array<i64: 2, 88>}, {transform_indices = @transform_6, window_bounds = array<i64: 1, 2, 88>}]} {
    %cst = arith.constant 0.000000e+00 : f32
    %0 = vector.broadcast %cst : f32 to vector<16x88xf32>
    %c0 = arith.constant 0 : index
    %c0_0 = arith.constant 0 : index
    %c98 = arith.constant 98 : index
    %1 = vector.load %arg1[%c0, %c0_0, %c98] : memref<1x8x198xbf16, #tpu.memory_space<vmem>>, vector<1x8x88xbf16>
    %2 = vector.shape_cast %1 : vector<1x8x88xbf16> to vector<8x88xbf16>
    %c0_1 = arith.constant 0 : index
    %c0_2 = arith.constant 0 : index
    %c0_3 = arith.constant 0 : index
    %3 = vector.load %arg2[%c0_1, %c0_2, %c0_3] : memref<3x16x8xbf16, #tpu.memory_space<vmem>>, vector<1x16x8xbf16>
    %4 = vector.shape_cast %3 : vector<1x16x8xbf16> to vector<16x8xbf16>
    %cst_4 = arith.constant dense<0.000000e+00> : vector<16x88xf32>
    %5 = tpu.matmul %4, %2, %cst_4 {dimension_numbers = #tpu.dot_dimension_numbers<[1], [0], [0], [1], [0, 0, 1, 1], [], []>} : vector<16x8xbf16>, vector<8x88xbf16>, vector<16x88xf32> -> vector<16x88xf32>
    %6 = arith.addf %0, %5 : vector<16x88xf32>
    %c0_5 = arith.constant 0 : index
    %c0_6 = arith.constant 0 : index
    %c99 = arith.constant 99 : index
    %7 = vector.load %arg1[%c0_5, %c0_6, %c99] : memref<1x8x198xbf16, #tpu.memory_space<vmem>>, vector<1x8x88xbf16>
    %8 = vector.shape_cast %7 : vector<1x8x88xbf16> to vector<8x88xbf16>
    %c1 = arith.constant 1 : index
    %c0_7 = arith.constant 0 : index
    %c0_8 = arith.constant 0 : index
    %9 = vector.load %arg2[%c1, %c0_7, %c0_8] : memref<3x16x8xbf16, #tpu.memory_space<vmem>>, vector<1x16x8xbf16>
    %10 = vector.shape_cast %9 : vector<1x16x8xbf16> to vector<16x8xbf16>
    %cst_9 = arith.constant dense<0.000000e+00> : vector<16x88xf32>
    %11 = tpu.matmul %10, %8, %cst_9 {dimension_numbers = #tpu.dot_dimension_numbers<[1], [0], [0], [1], [0, 0, 1, 1], [], []>} : vector<16x8xbf16>, vector<8x88xbf16>, vector<16x88xf32> -> vector<16x88xf32>
    %12 = arith.addf %6, %11 : vector<16x88xf32>
    %c0_10 = arith.constant 0 : index
    %c0_11 = arith.constant 0 : index
    %c100 = arith.constant 100 : index
    %13 = vector.load %arg1[%c0_10, %c0_11, %c100] : memref<1x8x198xbf16, #tpu.memory_space<vmem>>, vector<1x8x88xbf16>
    %14 = vector.shape_cast %13 : vector<1x8x88xbf16> to vector<8x88xbf16>
    %c2 = arith.constant 2 : index
    %c0_12 = arith.constant 0 : index
    %c0_13 = arith.constant 0 : index
    %15 = vector.load %arg2[%c2, %c0_12, %c0_13] : memref<3x16x8xbf16, #tpu.memory_space<vmem>>, vector<1x16x8xbf16>
    %16 = vector.shape_cast %15 : vector<1x16x8xbf16> to vector<16x8xbf16>
    %cst_14 = arith.constant dense<0.000000e+00> : vector<16x88xf32>
    %17 = tpu.matmul %16, %14, %cst_14 {dimension_numbers = #tpu.dot_dimension_numbers<[1], [0], [0], [1], [0, 0, 1, 1], [], []>} : vector<16x8xbf16>, vector<8x88xbf16>, vector<16x88xf32> -> vector<16x88xf32>
    %18 = arith.addf %12, %17 : vector<16x88xf32>
    %c0_15 = arith.constant 0 : index
    %c0_16 = arith.constant 0 : index
    %19 = vector.load %arg3[%c0_15, %c0_16] : memref<16x8xf32, #tpu.memory_space<vmem>>, vector<16x8xf32>
    %20 = vector.extract_strided_slice %19 {offsets = [0, 0], sizes = [16, 1], strides = [1, 1]} : vector<16x8xf32> to vector<16x1xf32>
    %21 = vector.broadcast %20 : vector<16x1xf32> to vector<16x88xf32>
    %22 = arith.addf %18, %21 : vector<16x88xf32>
    %23 = vector.extract_strided_slice %22 {offsets = [0, 0], sizes = [8, 88], strides = [1, 1]} : vector<16x88xf32> to vector<8x88xf32>
    %24 = vector.extract_strided_slice %22 {offsets = [8, 0], sizes = [8, 88], strides = [1, 1]} : vector<16x88xf32> to vector<8x88xf32>
    %c0_17 = arith.constant 0 : index
    %c0_18 = arith.constant 0 : index
    %25 = vector.load %arg5[%c0_17, %c0_18] : memref<1x88xf32, #tpu.memory_space<vmem>>, vector<1x88xf32>
    %26 = vector.extract_strided_slice %19 {offsets = [0, 1], sizes = [8, 1], strides = [1, 1]} : vector<16x8xf32> to vector<8x1xf32>
    %27 = vector.extract_strided_slice %19 {offsets = [0, 2], sizes = [8, 1], strides = [1, 1]} : vector<16x8xf32> to vector<8x1xf32>
    %28 = vector.extract_strided_slice %19 {offsets = [0, 3], sizes = [8, 1], strides = [1, 1]} : vector<16x8xf32> to vector<8x1xf32>
    %29 = vector.broadcast %25 : vector<1x88xf32> to vector<8x88xf32>
    %30 = arith.mulf %23, %29 : vector<8x88xf32>
    %cst_19 = arith.constant dense<0.000000e+00> : vector<8xf32>
    %31 = vector.multi_reduction <add>, %30, %cst_19 [1] : vector<8x88xf32> to vector<8xf32>
    %32 = vector.shape_cast %31 : vector<8xf32> to vector<8x1xf32>
    %33 = vector.broadcast %25 : vector<1x88xf32> to vector<8x88xf32>
    %34 = arith.mulf %24, %33 : vector<8x88xf32>
    %cst_20 = arith.constant dense<0.000000e+00> : vector<8xf32>
    %35 = vector.multi_reduction <add>, %34, %cst_20 [1] : vector<8x88xf32> to vector<8xf32>
    %36 = vector.shape_cast %35 : vector<8xf32> to vector<8x1xf32>
    %37 = arith.addf %32, %36 : vector<8x1xf32>
    %cst_21 = arith.constant 0.0069444445 : f32
    %38 = vector.broadcast %cst_21 : f32 to vector<8x1xf32>
    %39 = arith.mulf %37, %38 : vector<8x1xf32>
    %40 = vector.broadcast %39 : vector<8x1xf32> to vector<8x88xf32>
    %41 = arith.subf %23, %40 : vector<8x88xf32>
    %42 = vector.broadcast %25 : vector<1x88xf32> to vector<8x88xf32>
    %43 = arith.mulf %41, %42 : vector<8x88xf32>
    %44 = vector.broadcast %39 : vector<8x1xf32> to vector<8x88xf32>
    %45 = arith.subf %24, %44 : vector<8x88xf32>
    %46 = vector.broadcast %25 : vector<1x88xf32> to vector<8x88xf32>
    %47 = arith.mulf %45, %46 : vector<8x88xf32>
    %48 = arith.mulf %43, %43 : vector<8x88xf32>
    %cst_22 = arith.constant dense<0.000000e+00> : vector<8xf32>
    %49 = vector.multi_reduction <add>, %48, %cst_22 [1] : vector<8x88xf32> to vector<8xf32>
    %50 = vector.shape_cast %49 : vector<8xf32> to vector<8x1xf32>
    %51 = arith.mulf %47, %47 : vector<8x88xf32>
    %cst_23 = arith.constant dense<0.000000e+00> : vector<8xf32>
    %52 = vector.multi_reduction <add>, %51, %cst_23 [1] : vector<8x88xf32> to vector<8xf32>
    %53 = vector.shape_cast %52 : vector<8xf32> to vector<8x1xf32>
    %54 = arith.addf %50, %53 : vector<8x1xf32>
    %cst_24 = arith.constant 0.0069444445 : f32
    %55 = vector.broadcast %cst_24 : f32 to vector<8x1xf32>
    %56 = arith.mulf %54, %55 : vector<8x1xf32>
    %cst_25 = arith.constant 9.99999974E-6 : f32
    %57 = vector.broadcast %cst_25 : f32 to vector<8x1xf32>
    %58 = arith.addf %56, %57 : vector<8x1xf32>
    %59 = math.rsqrt %58 : vector<8x1xf32>
    %60 = vector.broadcast %39 : vector<8x1xf32> to vector<8x88xf32>
    %61 = arith.subf %23, %60 : vector<8x88xf32>
    %62 = vector.broadcast %59 : vector<8x1xf32> to vector<8x88xf32>
    %63 = arith.mulf %61, %62 : vector<8x88xf32>
    %64 = vector.broadcast %26 : vector<8x1xf32> to vector<8x88xf32>
    %65 = arith.mulf %63, %64 : vector<8x88xf32>
    %66 = vector.broadcast %27 : vector<8x1xf32> to vector<8x88xf32>
    %67 = arith.addf %65, %66 : vector<8x88xf32>
    %68 = vector.broadcast %39 : vector<8x1xf32> to vector<8x88xf32>
    %69 = arith.subf %24, %68 : vector<8x88xf32>
    %70 = vector.broadcast %59 : vector<8x1xf32> to vector<8x88xf32>
    %71 = arith.mulf %69, %70 : vector<8x88xf32>
    %72 = vector.broadcast %26 : vector<8x1xf32> to vector<8x88xf32>
    %73 = arith.mulf %71, %72 : vector<8x88xf32>
    %74 = vector.broadcast %27 : vector<8x1xf32> to vector<8x88xf32>
    %75 = arith.addf %73, %74 : vector<8x88xf32>
    %cst_26 = arith.constant 0.000000e+00 : f32
    %76 = vector.broadcast %cst_26 : f32 to vector<8x88xf32>
    %77 = arith.cmpf oge, %67, %76 : vector<8x88xf32>
    %78 = vector.broadcast %28 : vector<8x1xf32> to vector<8x88xf32>
    %79 = arith.mulf %78, %67 : vector<8x88xf32>
    %80 = arith.select %77, %67, %79 : vector<8x88xi1>, vector<8x88xf32>
    %cst_27 = arith.constant 0.000000e+00 : f32
    %81 = vector.broadcast %cst_27 : f32 to vector<8x88xf32>
    %82 = arith.cmpf oge, %75, %81 : vector<8x88xf32>
    %83 = vector.broadcast %28 : vector<8x1xf32> to vector<8x88xf32>
    %84 = arith.mulf %83, %75 : vector<8x88xf32>
    %85 = arith.select %82, %75, %84 : vector<8x88xi1>, vector<8x88xf32>
    %c0_28 = arith.constant 0 : index
    %c0_29 = arith.constant 0 : index
    %86 = vector.load %arg4[%c0_28, %c0_29] : memref<8x8xf32, #tpu.memory_space<vmem>>, vector<8x8xf32>
    %87 = vector.extract_strided_slice %86 {offsets = [0, 0], sizes = [8, 1], strides = [1, 1]} : vector<8x8xf32> to vector<8x1xf32>
    %88 = vector.extract_strided_slice %86 {offsets = [0, 1], sizes = [8, 1], strides = [1, 1]} : vector<8x8xf32> to vector<8x1xf32>
    %89 = vector.extract_strided_slice %86 {offsets = [0, 2], sizes = [1, 1], strides = [1, 1]} : vector<8x8xf32> to vector<1x1xf32>
    %90 = vector.broadcast %87 : vector<8x1xf32> to vector<8x88xf32>
    %91 = arith.mulf %90, %80 : vector<8x88xf32>
    %cst_30 = arith.constant dense<0.000000e+00> : vector<88xf32>
    %92 = vector.multi_reduction <add>, %91, %cst_30 [0] : vector<8x88xf32> to vector<88xf32>
    %93 = vector.shape_cast %92 : vector<88xf32> to vector<1x88xf32>
    %94 = vector.broadcast %88 : vector<8x1xf32> to vector<8x88xf32>
    %95 = arith.mulf %94, %85 : vector<8x88xf32>
    %cst_31 = arith.constant dense<0.000000e+00> : vector<88xf32>
    %96 = vector.multi_reduction <add>, %95, %cst_31 [0] : vector<8x88xf32> to vector<88xf32>
    %97 = vector.shape_cast %96 : vector<88xf32> to vector<1x88xf32>
    %98 = vector.broadcast %87 : vector<8x1xf32> to vector<8x88xf32>
    %99 = arith.mulf %98, %85 : vector<8x88xf32>
    %cst_32 = arith.constant dense<0.000000e+00> : vector<88xf32>
    %100 = vector.multi_reduction <add>, %99, %cst_32 [0] : vector<8x88xf32> to vector<88xf32>
    %101 = vector.shape_cast %100 : vector<88xf32> to vector<1x88xf32>
    %102 = vector.broadcast %88 : vector<8x1xf32> to vector<8x88xf32>
    %103 = arith.mulf %102, %80 : vector<8x88xf32>
    %cst_33 = arith.constant dense<0.000000e+00> : vector<88xf32>
    %104 = vector.multi_reduction <add>, %103, %cst_33 [0] : vector<8x88xf32> to vector<88xf32>
    %105 = vector.shape_cast %104 : vector<88xf32> to vector<1x88xf32>
    %106 = vector.extract_strided_slice %105 {offsets = [0, 1], sizes = [1, 87], strides = [1, 1]} : vector<1x88xf32> to vector<1x87xf32>
    %107 = vector.extract_strided_slice %105 {offsets = [0, 0], sizes = [1, 1], strides = [1, 1]} : vector<1x88xf32> to vector<1x1xf32>
    %108 = tpu.concatenate %106, %107 in 1 : vector<1x87xf32>, vector<1x1xf32> -> vector<1x88xf32>
    %109 = arith.addf %93, %97 : vector<1x88xf32>
    %110 = vector.broadcast %89 : vector<1x1xf32> to vector<1x88xf32>
    %111 = arith.addf %109, %110 : vector<1x88xf32>
    %112 = arith.addf %101, %108 : vector<1x88xf32>
    %113 = vector.broadcast %89 : vector<1x1xf32> to vector<1x88xf32>
    %114 = arith.addf %112, %113 : vector<1x88xf32>
    %c0_34 = arith.constant 0 : index
    %c0_35 = arith.constant 0 : index
    %115 = vector.load %arg6[%c0_34, %c0_35] : memref<2x88xf32, #tpu.memory_space<vmem>>, vector<1x88xf32>
    %c1_36 = arith.constant 1 : index
    %c0_37 = arith.constant 0 : index
    %116 = vector.load %arg6[%c1_36, %c0_37] : memref<2x88xf32, #tpu.memory_space<vmem>>, vector<1x88xf32>
    %117 = arith.mulf %115, %111 : vector<1x88xf32>
    %cst_38 = arith.constant 0.000000e+00 : f32
    %118 = vector.broadcast %cst_38 : f32 to vector<1x88xf32>
    %119 = arith.subf %118, %117 : vector<1x88xf32>
    %120 = math.exp %119 : vector<1x88xf32>
    %cst_39 = arith.constant 1.000000e+00 : f32
    %121 = vector.broadcast %cst_39 : f32 to vector<1x88xf32>
    %122 = arith.addf %121, %120 : vector<1x88xf32>
    %cst_40 = arith.constant 2.000000e+00 : f32
    %123 = vector.broadcast %cst_40 : f32 to vector<1x88xf32>
    %124 = arith.divf %123, %122 : vector<1x88xf32>
    %125 = arith.mulf %116, %114 : vector<1x88xf32>
    %cst_41 = arith.constant 0.000000e+00 : f32
    %126 = vector.broadcast %cst_41 : f32 to vector<1x88xf32>
    %127 = arith.subf %126, %125 : vector<1x88xf32>
    %128 = math.exp %127 : vector<1x88xf32>
    %cst_42 = arith.constant 1.000000e+00 : f32
    %129 = vector.broadcast %cst_42 : f32 to vector<1x88xf32>
    %130 = arith.addf %129, %128 : vector<1x88xf32>
    %cst_43 = arith.constant 2.000000e+00 : f32
    %131 = vector.broadcast %cst_43 : f32 to vector<1x88xf32>
    %132 = arith.divf %131, %130 : vector<1x88xf32>
    %133 = tpu.concatenate %124, %132 in 0 : vector<1x88xf32>, vector<1x88xf32> -> vector<2x88xf32>
    %c0_44 = arith.constant 0 : index
    %c0_45 = arith.constant 0 : index
    %c0_46 = arith.constant 0 : index
    %134 = vector.load %arg7[%c0_44, %c0_45, %c0_46] : memref<1x2x88xf32, #tpu.memory_space<vmem>>, vector<1x2x88xf32>
    %135 = vector.shape_cast %134 : vector<1x2x88xf32> to vector<2x88xf32>
    %136 = vector.shape_cast %133 : vector<2x88xf32> to vector<1x2x88xf32>
    tpu.vector_store %arg7[%c0_44, %c0_45, %c0_46], %136 {strides = array<i32>} : memref<1x2x88xf32, #tpu.memory_space<vmem>>, vector<1x2x88xf32>,
    return
  }
  func.func @transform_0(%arg0: i32) -> (i32, i32, i32) {
    %c0_i32 = arith.constant 0 : i32
    %c0_i32_0 = arith.constant 0 : i32
    %c0_i32_1 = arith.constant 0 : i32
    return %arg0, %c0_i32, %c0_i32_0 : i32, i32, i32
  }
  func.func @transform_1(%arg0: i32) -> (i32, i32, i32) {
    %c0_i32 = arith.constant 0 : i32
    %c0_i32_0 = arith.constant 0 : i32
    %c0_i32_1 = arith.constant 0 : i32
    %c0_i32_2 = arith.constant 0 : i32
    return %c0_i32, %c0_i32_0, %c0_i32_1 : i32, i32, i32
  }
  func.func @transform_2(%arg0: i32) -> (i32, i32) {
    %c0_i32 = arith.constant 0 : i32
    %c0_i32_0 = arith.constant 0 : i32
    %c0_i32_1 = arith.constant 0 : i32
    return %c0_i32, %c0_i32_0 : i32, i32
  }
  func.func @transform_3(%arg0: i32) -> (i32, i32) {
    %c0_i32 = arith.constant 0 : i32
    %c0_i32_0 = arith.constant 0 : i32
    %c0_i32_1 = arith.constant 0 : i32
    return %c0_i32, %c0_i32_0 : i32, i32
  }
  func.func @transform_4(%arg0: i32) -> (i32, i32) {
    %c0_i32 = arith.constant 0 : i32
    %c0_i32_0 = arith.constant 0 : i32
    %c0_i32_1 = arith.constant 0 : i32
    return %c0_i32, %c0_i32_0 : i32, i32
  }
  func.func @transform_5(%arg0: i32) -> (i32, i32) {
    %c0_i32 = arith.constant 0 : i32
    %c0_i32_0 = arith.constant 0 : i32
    %c0_i32_1 = arith.constant 0 : i32
    return %c0_i32, %c0_i32_0 : i32, i32
  }
  func.func @transform_6(%arg0: i32) -> (i32, i32, i32) {
    %c0_i32 = arith.constant 0 : i32
    %c0_i32_0 = arith.constant 0 : i32
    %c0_i32_1 = arith.constant 0 : i32
    return %arg0, %c0_i32, %c0_i32_0 : i32, i32, i32
  }
}

</mosaic_0001>

<bundles_post_ra>
// kernel: mask_decoder_forward.5
= control target key start
LH: loop header
LB: loop body
LE: loop exit
PB: predicated region body
PF: predicated region fallthrough
CT: control target
= control target key end

     0   :  { %s597_s15 = smov 0   ;;  %s666_s0 = inlined_call_operand.vmem [shape: bf16[2,8,198], index: 0, kind: input, shape index: {}]   ;;  %s667_s1 = inlined_call_operand.vmem [shape: bf16[1,6,8,8], index: 1, kind: input, shape index: {}]   ;;  %s668_s2 = inlined_call_operand.vmem [shape: f32[8,8], index: 2, kind: input, shape index: {}]   ;;  %s669_s3 = inlined_call_operand.vmem [shape: f32[1,88], index: 3, kind: input, shape index: {}]   ;;  %s670_s4 = inlined_call_operand.vmem [shape: bf16[2,8,198], index: 4, kind: output, shape index: {}]  }
   0x1 LB: > { %s502_s16 = sadd.s32 4294967295, %s559_s15   ;;  %p506_p0 = scmp.ge.s32.totalorder %s559_s15, 1  ;;  %s559_s15 = sphi %s597_s15, %s14_s15  }
   0x2   : > { %p162_p1 = scmp.lt.s32.totalorder %s559_s15, 3 }
   0x4   : > { %p163_p2 = pnand %p506_p0, %p162_p1 }
   0x5   : > { %p188_p3 = scmp.lt.s32.totalorder (!%p163_p2), %s502_s16, 1  ;;  %s561_s21 = smov (!%p163_p2), 41  }
   0x6   : > { %166 = sbr.rel (%p163_p2) target bundleno = 699 (0x2bb), region = 36  ;;  %s562_s22 = smov (!%p163_p2), 40  }
   0x7   : > { %s563_s23 = smov (!%p163_p2), 39   ;;  %s564_s24 = smov (!%p163_p2), 30  }
   0x8   : > { %s565_s25 = smov (!%p163_p2), 29   ;;  %s566_s26 = smov (!%p163_p2), 28  }
   0xb   : > { %s672_s16 = smov (!%p188_p3, %s502_s16), 1  ;;  %vm266_vm0 = vcmask 318464   ;;  %vm218_vm1 = vcmask 1043456   ;;  %vm214_vm2 = vcmask 64512   ;;  %v514_v9 = vld [vmem:[%s667_s1 + $0x8] sm:$0xf] }
   0xc   : > { %s524_s17 = sshll.u32 %s672_s16, 3  ;;  %v621_v10 = vld [vmem:[%s668_s2] sm:$0xff]  ;;  %v567_v11 = vmov 0   ;;  %vm212_vm3 = vcmask 326656   ;;  %vm239_vm4 = vcmask 334848   ;;  %vm294_vm5 = vcmask 244736  }
   0xd   : > { %s192_s20 = scalar_lea.vmem %s666_s0, %s524_s17  ;;  %545 = vset.pattern.permute.xlu0 %v567_v11  ;;  %v511_v20 = vld [vmem:[%s667_s1 + $0x4] sm:$0xf]  ;;  %v200_v21 = vld [vmem:[%s667_s1] sm:$0xf]  ;;  %v516_v27 = vld [vmem:[%s667_s1 + $0xc] sm:$0xf] }
   0xe   : > { %v199_v0 = vld [vmem:[%s192_s20] sm:$0xff]  ;;  %vm322_vm6 = vcmask 236544   ;;  %vm350_vm7 = vcmask 228352   ;;  %v518_v35 = vld [vmem:[%s667_s1 + $0x10] sm:$0xf]  ;;  %vm384_vm8 = vcmask 719872  }
   0xf   : > { %v204_v1 = vunpack.c.l.b16 %v199_v0  ;;  %v205_v3 = vunpack.c.h.b16 %v199_v0  ;;  %v520_v36 = vld [vmem:[%s667_s1 + $0x14] sm:$0xf]  ;;  %v550_v52 = vld [vmem:[%s669_s3] ss:$0 sm:$0xff]  ;;  %v568_v59 = vmov 1   ;;  %v569_v60 = vmov 3  }
  0x10   : > { %548 = vset.pattern.permute.xlu2 %v569_v60  ;;  %v570_v61 = vmov 2   ;;  %s571_s20 = smov 99   ;;  %vm432_vm13 = vcmask 809984   ;;  %vm436_vm14 = vcmask 482304   ;;  %vm444_vm15 = vcmask 572420  }
  0x11   : > { %v206_v2 = vpack.c.b16 %v204_v1, %v204_v1  ;;  %v207_v4 = vpack.c.b16 %v205_v3, %v205_v3 }
  0x13   : > { %235 = vrot.lane.b32.xlu1 %v206_v2, %s561_s21  ;;  %208 = vrot.lane.b32.xlu0 %v206_v2, %s562_s22 }
  0x14   : > { %262 = vrot.lane.b32.xlu2 %v206_v2, %s563_s23 }
  0x1b   : > { %237 = vrot.lane.b32.xlu1 %v207_v4, %s561_s21  ;;  %210 = vrot.lane.b32.xlu0 %v207_v4, %s562_s22 }
  0x1c   : > { %264 = vrot.lane.b32.xlu2 %v207_v4, %s563_s23  ;;  %s197_s23 = scalar_lea.vmem %s670_s4, %s524_s17 }
  0x23   : > { %292 = vrot.lane.b32.xlu1 %v207_v4, %s564_s24  ;;  %290 = vrot.lane.b32.xlu0 %v206_v2, %s564_s24 }
  0x24   : > { %318 = vrot.lane.b32.xlu2 %v206_v2, %s565_s25 }
  0x2b   : > { %320 = vrot.lane.b32.xlu0 %v207_v4, %s565_s25  ;;  %346 = vrot.lane.b32.xlu1 %v206_v2, %s566_s26 }
  0x2c   : > { %348 = vrot.lane.b32.xlu2 %v207_v4, %s566_s26 }
  0x33   : > { %376 = vperm.xlu0 %545, %v621_v10  }
  0x3b   : > { %546 = vset.pattern.permute.xlu0 %v568_v59 }
  0x3c   : > { %409 = vperm.xlu0 %546, %v621_v10  }
  0x44   : > { %547 = vset.pattern.permute.xlu0 %v570_v61 }
  0x45   : > { %414 = vperm.xlu0 %547, %v621_v10  }
  0x4d   : > { %549 = vset.pattern.permute.xlu0 %v569_v60 }
  0x6e   : > { %v263_v5 = vpop.permute.xlu2 %262 }
  0x76   : > { %v265_v6 = vpop.permute.xlu2 %264 }
  0x77   : > { %v267_v7 = vsel %vm266_vm0, %v263_v5, %v265_v6  ;;  %vm445_vm0 = vmor %vm444_vm15, %vm218_vm1 }
  0x78   : > { %v272_v8 = vsel %vm218_vm1, %v267_v7, 0 }
  0x79   : > { %281 = vmatpush.bf16.msra.mxu2 %v272_v8 }
  0x7c   : > { %515 = vmatmul.msk.bf16.vlgmr.msra.gmra.mxu2 %vm214_vm2, %v514_v9 }
  0x7e   : > { %v319_v22 = vpop.permute.xlu2 %318 }
  0x85   : > { %v236_v12 = vpop.permute.xlu1 %235  ;;  %v209_v13 = vpop.permute.xlu0 %208 }
  0x86   : > { %v349_v28 = vpop.permute.xlu2 %348 }
  0x8d   : > { %v238_v14 = vpop.permute.xlu1 %237  ;;  %v211_v15 = vpop.permute.xlu0 %210 }
  0x8e   : > { %v213_v16 = vsel %vm212_vm3, %v209_v13, %v211_v15  ;;  %v240_v17 = vsel %vm239_vm4, %v236_v12, %v238_v14 }
  0x8f   : > { %v220_v18 = vsel %vm218_vm1, %v213_v16, 0  ;;  %v245_v19 = vsel %vm218_vm1, %v240_v17, 0 }
  0x90   : > { %229 = vmatpush.bf16.msra.mxu0 %v220_v18  ;;  %254 = vmatpush.bf16.msra.mxu1 %v245_v19 }
  0x93   : > { %512 = vmatmul.msk.bf16.vlgmr.msra.gmra.mxu0 %vm214_vm2, %v511_v20  ;;  %513 = vmatmul.msk.bf16.vlgmr.msra.gmra.mxu1 %vm214_vm2, %v200_v21 }
  0x95   : > { %v293_v23 = vpop.permute.xlu1 %292  ;;  %v291_v24 = vpop.permute.xlu0 %290 }
  0x96   : > { %v295_v25 = vsel %vm294_vm5, %v291_v24, %v293_v23 }
  0x97   : > { %v300_v26 = vsel %vm218_vm1, %v295_v25, 0 }
  0x98   : > { %309 = vmatpush.bf16.msra.mxu3 %v300_v26 }
  0x9b   : > { %517 = vmatmul.msk.bf16.vlgmr.msra.gmra.mxu3 %vm214_vm2, %v516_v27 }
  0x9d   : > { %v321_v29 = vpop.permute.xlu0 %320  ;;  %v347_v30 = vpop.permute.xlu1 %346 }
  0x9e   : > { %v323_v31 = vsel %vm322_vm6, %v319_v22, %v321_v29  ;;  %v351_v32 = vsel %vm350_vm7, %v347_v30, %v349_v28 }
  0x9f   : > { %v328_v33 = vsel %vm218_vm1, %v323_v31, 0  ;;  %v356_v34 = vsel %vm218_vm1, %v351_v32, 0 }
  0xa0   : > { %337 = vmatpush.bf16.msrb.mxu0 %v328_v33  ;;  %365 = vmatpush.bf16.msrb.mxu1 %v356_v34 }
  0xa3   : > { %519 = vmatmul.msk.bf16.vlgmr.msrb.gmra.mxu0 %vm214_vm2, %v518_v35  ;;  %521 = vmatmul.msk.bf16.vlgmr.msrb.gmra.mxu1 %vm214_vm2, %v520_v36 }
  0xa5   : > { %v377_v50 = vpop.permute.xlu0 %376 }
  0xae   : > { %v410_v11 = vpop.permute.xlu0 %409 }
  0xb7   : > { %v415_v17 = vpop.permute.xlu0 %414 }
  0xff   : > { %v283_v37 = vpop.f32.mrf.mxu2 }
 0x107   : > { %v285_v38 = vpop.f32.mrf.mxu2 }
 0x110   : > { %v231_v39 = vpop.f32.mrf.mxu0  ;;  %v256_v40 = vpop.f32.mrf.mxu1 }
 0x111   : > { %v257_v43 = vadd.f32 %v256_v40, %v231_v39 }
 0x113   : > { %v287_v44 = vadd.f32 %v283_v37, %v257_v43 }
 0x118   : > { %v233_v41 = vpop.f32.mrf.mxu0  ;;  %v258_v42 = vpop.f32.mrf.mxu1 }
 0x11e   : > { %v311_v45 = vpop.f32.mrf.mxu3 }
 0x11f   : > { %v315_v46 = vadd.f32 %v311_v45, %v287_v44 }
 0x120   : > { %v339_v47 = vpop.f32.mrf.mxu0  ;;  %v367_v48 = vpop.f32.mrf.mxu1 }
 0x121   : > { %v343_v49 = vadd.f32 %v339_v47, %v315_v46 }
 0x123   : > { %v371_v51 = vadd.f32 %v367_v48, %v343_v49 }
 0x125   : > { %v379_v53 = vadd.f32 %v377_v50, %v371_v51 }
 0x126   : > { %v313_v54 = vpop.f32.mrf.mxu3 }
 0x127   : > { %v383_v55 = vmul.f32 %v550_v52, %v379_v53 }
 0x128   : > { %v341_v56 = vpop.f32.mrf.mxu0  ;;  %v369_v57 = vpop.f32.mrf.mxu1 }
 0x129   : > { %v385_v58 = vsel %vm384_vm8, %v383_v55, 0.0 }
 0x12a   : > { %386 = vadd.xlane.f32.xlu1 %v385_v58 }
 0x19d   : > { %v387_v62 = vpop.xlane.xlu1 %386 }
 0x19e   : > { %v388_v63 = vmul.f32 0.013888889, %v387_v62 }
 0x1a0   : > { %v389_v0 = vsub.f32 %v379_v53, %v388_v63 }
 0x1a2   : > { %v390_v1 = vmul.f32 %v550_v52, %v389_v0 }
 0x1a4   : > { %v391_v2 = vmul.f32 %v390_v1, %v390_v1 }
 0x1a6   : > { %v392_v3 = vsel %vm384_vm8, %v391_v2, 0.0 }
 0x1a7   : > { %393 = vadd.xlane.f32.xlu2 %v392_v3 }
 0x1bf   : > { %420 = vperm.xlu2 %548, %v621_v10  }
 0x21a   : > { %v394_v4 = vpop.xlane.xlu2 %393 }
 0x21b   : > { %v395_v5 = vmul.f32 0.013888889, %v394_v4 }
 0x21d   : > { %v396_v6 = vadd.f32 1e-05, %v395_v5 }
 0x21f   : > { %551 = vrsqrt.f32 %v396_v6  ;;  %vm403_vm10 = vweird.f32 %v396_v6 }
 0x222   : > { %v421_v19 = vpop.permute.xlu2 %420 }
 0x225   : > { %v552_v7 = vpop.eup %551 }
 0x226   : > { %v398_v8 = vmul.f32 %v552_v7, %v396_v6  ;;  %vm404_vm9 = vweird.f32 %v552_v7 }
 0x227   : > { %vm405_vm11 = vmor %vm403_vm10, %vm404_vm9 }
 0x228   : > { %v399_v9 = vmul.f32 %v552_v7, %v398_v8 }
 0x22a   : > { %v400_v12 = vmul.f32 0.5, %v399_v9 }
 0x22c   : > { %v401_v13 = vsub.f32 1.5, %v400_v12 }
 0x22e   : > { %v402_v14 = vmul.f32 %v552_v7, %v401_v13 }
 0x230   : > { %v406_v15 = vsel %vm405_vm11, %v552_v7, %v402_v14 }
 0x231   : > { %v407_v16 = vmul.f32 %v406_v15, %v389_v0 }
 0x233   : > { %v412_v18 = vmul.f32 %v410_v11, %v407_v16 }
 0x235   : > { %v417_v10 = vadd.f32 %v415_v17, %v412_v18 }
 0x237   : > { %vm418_vm12 = vcmp.ge.f32.partialorder %v417_v10, 0.0  ;;  %v423_v20 = vmul.f32 %v421_v19, %v417_v10 }
 0x239   : > { %v424_v21 = vsel %vm418_vm12, %v417_v10, %v423_v20 }
 0x23a   : > { %v425_v22 = vmul.f32 %v550_v52, %v424_v21 }
 0x23c   : > { %v426_v23 = vpack.c.bf16 %v425_v22, %v425_v22 }
 0x23e   : > { %v428_v24 = vunpack.c.l.b16 %v426_v23 }
 0x240   : > { %v429_v25 = vpack.c.b16 %v428_v24, %v428_v24 }
 0x242   : > { %430 = vrot.lane.b32.xlu1 %v429_v25, %s571_s20 }
 0x2b4   : > { %v431_v26 = vpop.permute.xlu1 %430 }
 0x2b5   : > { %v435_v27 = vsel %vm432_vm13, 0, %v431_v26  ;;  %v437_v28 = vsel %vm436_vm14, %v431_v26, 0 }
 0x2b6   : > { %v440_v29 = vunpack.c.l.b16 %v435_v27  ;;  %v441_v30 = vunpack.c.l.b16 %v437_v28 }
 0x2b8   : > { %v442_v31 = vpack.c.b16 %v441_v30, %v440_v29 }
 0x2ba   : > { %446 = vst.msk [vmem:[%s197_s23] sm:$0xff] %vm445_vm0, %v442_v31 }
 0x2bb PF: > { %s14_s15 = sadd.s32 1, %s559_s15  }
 0x2bc   : > { %p11_p4 = scmp.ge.s32.totalorder %s14_s15, 4  }
 0x2be   :  { %13 = sbr.rel (!%p11_p4) target bundleno = 1 (0x1), region = 71 }

// kernel: mask_decoder_forward.6
= control target key start
LH: loop header
LB: loop body
LE: loop exit
PB: predicated region body
PF: predicated region fallthrough
CT: control target
= control target key end

     0   :  { %s844_s18 = smov 0   ;;  %s962_s0 = inlined_call_operand.vmem [shape: bf16[2,8,198], index: 0, kind: input, shape index: {}]   ;;  %s963_s1 = inlined_call_operand.vmem [shape: bf16[2,8,198], index: 1, kind: input, shape index: {}]   ;;  %s964_s2 = inlined_call_operand.vmem [shape: bf16[2,6,8,8], index: 2, kind: input, shape index: {}]   ;;  %s965_s3 = inlined_call_operand.vmem [shape: f32[8,8], index: 3, kind: input, shape index: {}]   ;;  %s966_s4 = inlined_call_operand.vmem [shape: f32[1,88], index: 4, kind: input, shape index: {}]   ;;  %s967_s5 = inlined_call_operand.vmem [shape: bf16[2,8,198], index: 5, kind: output, shape index: {}]  }
   0x1 LB: > { %s729_s19 = sadd.s32 4294967295, %s801_s18   ;;  %p733_p0 = scmp.ge.s32.totalorder %s801_s18, 1  ;;  %s801_s18 = sphi %s844_s18, %s15_s18  }
   0x2   : > { %p197_p1 = scmp.lt.s32.totalorder %s801_s18, 3 }
   0x4   : > { %p198_p2 = pnand %p733_p0, %p197_p1 }
   0x5   : > { %p230_p3 = scmp.lt.s32.totalorder (!%p198_p2), %s729_s19, 1  ;;  %s803_s24 = smov (!%p198_p2), 51  }
   0x6   : > { %201 = sbr.rel (%p198_p2) target bundleno = 735 (0x2df), region = 40  ;;  %s804_s25 = smov (!%p198_p2), 50  }
   0x7   : > { %s805_s26 = smov (!%p198_p2), 30   ;;  %s806_s30 = smov (!%p198_p2), 52  }
   0x8   : > { %s807_s6 = smov (!%p198_p2), 29   ;;  %s808_s7 = smov (!%p198_p2), 28  }
   0x9   : > { %s813_s13 = smov (!%p198_p2), 99  }
   0xb   : > { %s969_s19 = smov (!%p230_p3, %s729_s19), 1  ;;  %vm341_vm0 = vcmask 244736   ;;  %vm265_vm1 = vcmask 1043456   ;;  %v745_v14 = vld [vmem:[%s964_s2 + $0xc] sm:$0xf]  ;;  %vm261_vm2 = vcmask 64512  }
   0xc   : > { %s852_s20 = sshll.u32 %s969_s19, 3  ;;  %vm259_vm3 = vcmask 416768   ;;  %vm313_vm4 = vcmask 408576   ;;  %v740_v24 = vld [vmem:[%s964_s2 + $0x4] sm:$0xf]  ;;  %vm286_vm5 = vcmask 424960  }
   0xd   : > { %s234_s23 = scalar_lea.vmem %s962_s0, %s852_s20  ;;  %s239_s29 = scalar_lea.vmem %s963_s1, %s852_s20  ;;  %v743_v25 = vld [vmem:[%s964_s2 + $0x8] sm:$0xf]  ;;  %v247_v31 = vld [vmem:[%s964_s2] sm:$0xf]  ;;  %vm369_vm6 = vcmask 236544   ;;  %v809_v42 = vmov 0  }
   0xe   : > { %v246_v0 = vld [vmem:[%s234_s23] sm:$0xff]  ;;  %v747_v39 = vld [vmem:[%s964_s2 + $0x10] sm:$0xf]  ;;  %v751_v40 = vld [vmem:[%s964_s2 + $0x18] sm:$0xf]  ;;  %787 = vset.pattern.permute.xlu0 %v809_v42  ;;  %vm397_vm7 = vcmask 228352   ;;  %s244_s16 = scalar_lea.vmem %s967_s5, %s852_s20 }
   0xf   : > { %v251_v1 = vunpack.c.l.b16 %v246_v0  ;;  %v252_v3 = vunpack.c.h.b16 %v246_v0  ;;  %v419_v5 = vld [vmem:[%s239_s29] sm:$0xff]  ;;  %v753_v48 = vld [vmem:[%s964_s2 + $0x1c] sm:$0xf]  ;;  %v749_v55 = vld [vmem:[%s964_s2 + $0x14] sm:$0xf]  ;;  %vm599_vm8 = vcmask 719872  }
  0x10   : > { %v423_v6 = vunpack.c.l.b16 %v419_v5  ;;  %v424_v8 = vunpack.c.h.b16 %v419_v5  ;;  %v907_v41 = vld [vmem:[%s965_s3] sm:$0xff]  ;;  %v759_v56 = vld [vmem:[%s964_s2 + $0x28] sm:$0xf]  ;;  %vm647_vm13 = vcmask 809984   ;;  %vm651_vm14 = vcmask 482304  }
  0x11   : > { %v253_v2 = vpack.c.b16 %v251_v1, %v251_v1  ;;  %v254_v4 = vpack.c.b16 %v252_v3, %v252_v3  ;;  %v755_v62 = vld [vmem:[%s964_s2 + $0x20] sm:$0xf]  ;;  %vm659_vm15 = vcmask 572420  }
  0x12   : > { %v425_v7 = vpack.c.b16 %v423_v6, %v423_v6  ;;  %v426_v9 = vpack.c.b16 %v424_v8, %v424_v8  ;;  %v757_v6 = vld [vmem:[%s964_s2 + $0x24] sm:$0xf] }
  0x13   : > { %255 = vrot.lane.b32.xlu1 %v253_v2, %s803_s24  ;;  %309 = vrot.lane.b32.xlu0 %v253_v2, %s804_s25 }
  0x14   : > { %337 = vrot.lane.b32.xlu2 %v253_v2, %s805_s26 }
  0x1b   : > { %257 = vrot.lane.b32.xlu1 %v254_v4, %s803_s24  ;;  %311 = vrot.lane.b32.xlu0 %v254_v4, %s804_s25 }
  0x1c   : > { %339 = vrot.lane.b32.xlu2 %v254_v4, %s805_s26 }
  0x23   : > { %284 = vrot.lane.b32.xlu1 %v254_v4, %s806_s30  ;;  %282 = vrot.lane.b32.xlu0 %v253_v2, %s806_s30 }
  0x24   : > { %427 = vrot.lane.b32.xlu2 %v425_v7, %s806_s30 }
  0x2b   : > { %365 = vrot.lane.b32.xlu1 %v253_v2, %s807_s6  ;;  %429 = vrot.lane.b32.xlu0 %v426_v9, %s806_s30 }
  0x2c   : > { %367 = vrot.lane.b32.xlu2 %v254_v4, %s807_s6 }
  0x33   : > { %456 = vrot.lane.b32.xlu1 %v426_v9, %s803_s24  ;;  %454 = vrot.lane.b32.xlu0 %v425_v7, %s803_s24 }
  0x34   : > { %393 = vrot.lane.b32.xlu2 %v253_v2, %s808_s7 }
  0x3b   : > { %535 = vrot.lane.b32.xlu1 %v425_v7, %s807_s6  ;;  %395 = vrot.lane.b32.xlu0 %v254_v4, %s808_s7 }
  0x3c   : > { %537 = vrot.lane.b32.xlu2 %v426_v9, %s807_s6 }
  0x43   : > { %483 = vrot.lane.b32.xlu1 %v426_v9, %s804_s25  ;;  %481 = vrot.lane.b32.xlu0 %v425_v7, %s804_s25 }
  0x44   : > { %562 = vrot.lane.b32.xlu2 %v425_v7, %s808_s7 }
  0x4b   : > { %508 = vrot.lane.b32.xlu1 %v425_v7, %s805_s26  ;;  %564 = vrot.lane.b32.xlu0 %v426_v9, %s808_s7  ;;  %v761_v7 = vld [vmem:[%s964_s2 + $0x2c] sm:$0xf] }
  0x4c   : > { %510 = vrot.lane.b32.xlu2 %v426_v9, %s805_s26 }
  0x53   : > { %591 = vperm.xlu0 %787, %v907_v41  }
  0x6e   : > { %v338_v10 = vpop.permute.xlu2 %337 }
  0x76   : > { %v340_v11 = vpop.permute.xlu2 %339 }
  0x77   : > { %v342_v12 = vsel %vm341_vm0, %v338_v10, %v340_v11 }
  0x78   : > { %v347_v13 = vsel %vm265_vm1, %v342_v12, 0 }
  0x79   : > { %356 = vmatpush.bf16.msra.mxu3 %v347_v13 }
  0x7c   : > { %746 = vmatmul.msk.bf16.vlgmr.msra.gmra.mxu3 %vm261_vm2, %v745_v14 }
  0x7e   : > { %v428_v17 = vpop.permute.xlu2 %427 }
  0x85   : > { %v256_v15 = vpop.permute.xlu1 %255  ;;  %v310_v16 = vpop.permute.xlu0 %309 }
  0x86   : > { %v368_v26 = vpop.permute.xlu2 %367 }
  0x8d   : > { %v258_v18 = vpop.permute.xlu1 %257  ;;  %v312_v19 = vpop.permute.xlu0 %311 }
  0x8e   : > { %v260_v20 = vsel %vm259_vm3, %v256_v15, %v258_v18  ;;  %v314_v21 = vsel %vm313_vm4, %v310_v16, %v312_v19  ;;  %v394_v32 = vpop.permute.xlu2 %393 }
  0x8f   : > { %v267_v22 = vsel %vm265_vm1, %v260_v20, 0  ;;  %v319_v23 = vsel %vm265_vm1, %v314_v21, 0 }
  0x90   : > { %276 = vmatpush.bf16.msra.mxu0 %v267_v22  ;;  %328 = vmatpush.bf16.msra.mxu2 %v319_v23 }
  0x93   : > { %741 = vmatmul.msk.bf16.vlgmr.msra.gmra.mxu0 %vm261_vm2, %v740_v24  ;;  %744 = vmatmul.msk.bf16.vlgmr.msra.gmra.mxu2 %vm261_vm2, %v743_v25 }
  0x95   : > { %v285_v27 = vpop.permute.xlu1 %284  ;;  %v283_v28 = vpop.permute.xlu0 %282 }
  0x96   : > { %v287_v29 = vsel %vm286_vm5, %v283_v28, %v285_v27  ;;  %v538_v47 = vpop.permute.xlu2 %537 }
  0x97   : > { %v292_v30 = vsel %vm265_vm1, %v287_v29, 0 }
  0x98   : > { %301 = vmatpush.bf16.msra.mxu1 %v292_v30 }
  0x9b   : > { %742 = vmatmul.msk.bf16.vlgmr.msra.gmra.mxu1 %vm261_vm2, %v247_v31 }
  0x9d   : > { %v366_v33 = vpop.permute.xlu1 %365  ;;  %v430_v34 = vpop.permute.xlu0 %429 }
  0x9e   : > { %v431_v35 = vsel %vm286_vm5, %v428_v17, %v430_v34  ;;  %v370_v36 = vsel %vm369_vm6, %v366_v33, %v368_v26  ;;  %v563_v57 = vpop.permute.xlu2 %562 }
  0x9f   : > { %v436_v37 = vsel %vm265_vm1, %v431_v35, 0  ;;  %v375_v38 = vsel %vm265_vm1, %v370_v36, 0 }
  0xa0   : > { %445 = vmatpush.bf16.msrb.mxu2 %v436_v37  ;;  %384 = vmatpush.bf16.msrb.mxu0 %v375_v38 }
  0xa3   : > { %748 = vmatmul.msk.bf16.vlgmr.msrb.gmra.mxu0 %vm261_vm2, %v747_v39  ;;  %752 = vmatmul.msk.bf16.vlgmr.msrb.gmra.mxu2 %vm261_vm2, %v751_v40 }
  0xa5   : > { %v457_v43 = vpop.permute.xlu1 %456  ;;  %v455_v44 = vpop.permute.xlu0 %454 }
  0xa6   : > { %v458_v45 = vsel %vm259_vm3, %v455_v44, %v457_v43  ;;  %v511_v63 = vpop.permute.xlu2 %510  ;;  %v792_v43 = vld [vmem:[%s966_s4] ss:$0 sm:$0xff] }
  0xa7   : > { %v463_v46 = vsel %vm265_vm1, %v458_v45, 0 }
  0xa8   : > { %472 = vmatpush.bf16.msrb.mxu3 %v463_v46 }
  0xab   : > { %754 = vmatmul.msk.bf16.vlgmr.msrb.gmra.mxu3 %vm261_vm2, %v753_v48 }
  0xad   : > { %v536_v49 = vpop.permute.xlu1 %535  ;;  %v396_v50 = vpop.permute.xlu0 %395 }
  0xae   : > { %v539_v51 = vsel %vm369_vm6, %v536_v49, %v538_v47  ;;  %v398_v52 = vsel %vm397_vm7, %v394_v32, %v396_v50  ;;  %v810_v49 = vmov 1   ;;  %v811_v50 = vmov 3  }
  0xaf   : > { %v544_v53 = vsel %vm265_vm1, %v539_v51, 0  ;;  %v403_v54 = vsel %vm265_vm1, %v398_v52, 0  ;;  %788 = vset.pattern.permute.xlu0 %v810_v49  ;;  %790 = vset.pattern.permute.xlu2 %v811_v50  ;;  %v812_v51 = vmov 2  }
  0xb0   : > { %412 = vmatpush.bf16.msrb.mxu1 %v403_v54  ;;  %553 = vmatpush.bf16.msra.mxu2 %v544_v53 }
  0xb1   : > { %624 = vperm.xlu0 %788, %v907_v41  }
  0xb3   : > { %750 = vmatmul.msk.bf16.vlgmr.msrb.gmra.mxu1 %vm261_vm2, %v749_v55  ;;  %760 = vmatmul.msk.bf16.vlgmr.msra.gmra.mxu2 %vm261_vm2, %v759_v56 }
  0xb5   : > { %v484_v58 = vpop.permute.xlu1 %483  ;;  %v482_v59 = vpop.permute.xlu0 %481 }
  0xb6   : > { %v485_v60 = vsel %vm313_vm4, %v482_v59, %v484_v58 }
  0xb7   : > { %v490_v61 = vsel %vm265_vm1, %v485_v60, 0 }
  0xb8   : > { %499 = vmatpush.bf16.msra.mxu0 %v490_v61 }
  0xb9   : > { %789 = vset.pattern.permute.xlu0 %v812_v51 }
  0xba   : > { %629 = vperm.xlu0 %789, %v907_v41  }
  0xbb   : > { %756 = vmatmul.msk.bf16.vlgmr.msra.gmra.mxu0 %vm261_vm2, %v755_v62 }
  0xbd   : > { %v509_v0 = vpop.permute.xlu1 %508  ;;  %v565_v1 = vpop.permute.xlu0 %564 }
  0xbe   : > { %v512_v2 = vsel %vm341_vm0, %v509_v0, %v511_v63  ;;  %v566_v3 = vsel %vm397_vm7, %v563_v57, %v565_v1  ;;  %vm660_vm0 = vmor %vm659_vm15, %vm265_vm1 }
  0xbf   : > { %v517_v4 = vsel %vm265_vm1, %v512_v2, 0  ;;  %v571_v5 = vsel %vm265_vm1, %v566_v3, 0 }
  0xc0   : > { %526 = vmatpush.bf16.msra.mxu1 %v517_v4  ;;  %580 = vmatpush.bf16.msra.mxu3 %v571_v5 }
  0xc2   : > { %791 = vset.pattern.permute.xlu0 %v811_v50 }
  0xc3   : > { %758 = vmatmul.msk.bf16.vlgmr.msra.gmra.mxu1 %vm261_vm2, %v757_v6  ;;  %762 = vmatmul.msk.bf16.vlgmr.msra.gmra.mxu3 %vm261_vm2, %v761_v7 }
  0xc5   : > { %v592_v40 = vpop.permute.xlu0 %591 }
  0xff   : > { %v358_v8 = vpop.f32.mrf.mxu3 }
 0x107   : > { %v360_v9 = vpop.f32.mrf.mxu3 }
 0x110   : > { %v278_v10 = vpop.f32.mrf.mxu0 }
 0x116   : > { %v330_v11 = vpop.f32.mrf.mxu2 }
 0x118   : > { %v303_v12 = vpop.f32.mrf.mxu1  ;;  %v280_v13 = vpop.f32.mrf.mxu0 }
 0x119   : > { %v304_v18 = vadd.f32 %v303_v12, %v278_v10 }
 0x11b   : > { %v334_v20 = vadd.f32 %v330_v11, %v304_v18 }
 0x11d   : > { %v362_v23 = vadd.f32 %v358_v8, %v334_v20 }
 0x11e   : > { %v332_v14 = vpop.f32.mrf.mxu2 }
 0x120   : > { %v305_v15 = vpop.f32.mrf.mxu1  ;;  %v386_v16 = vpop.f32.mrf.mxu0 }
 0x121   : > { %v390_v25 = vadd.f32 %v386_v16, %v362_v23 }
 0x123   : > { %v625_v0 = vpop.permute.xlu0 %624 }
 0x126   : > { %v447_v17 = vpop.f32.mrf.mxu2 }
 0x128   : > { %v388_v19 = vpop.f32.mrf.mxu0 }
 0x12c   : > { %v630_v6 = vpop.permute.xlu0 %629 }
 0x12e   : > { %v474_v21 = vpop.f32.mrf.mxu3  ;;  %v449_v22 = vpop.f32.mrf.mxu2 }
 0x130   : > { %v414_v24 = vpop.f32.mrf.mxu1 }
 0x131   : > { %v418_v26 = vadd.f32 %v414_v24, %v390_v25 }
 0x133   : > { %v451_v31 = vadd.f32 %v447_v17, %v418_v26 }
 0x135   : > { %v478_v32 = vadd.f32 %v474_v21, %v451_v31 }
 0x136   : > { %v476_v27 = vpop.f32.mrf.mxu3  ;;  %v555_v28 = vpop.f32.mrf.mxu2 }
 0x138   : > { %v416_v29 = vpop.f32.mrf.mxu1  ;;  %v501_v30 = vpop.f32.mrf.mxu0 }
 0x139   : > { %v505_v34 = vadd.f32 %v501_v30, %v478_v32 }
 0x13e   : > { %v557_v33 = vpop.f32.mrf.mxu2 }
 0x140   : > { %v528_v35 = vpop.f32.mrf.mxu1  ;;  %v503_v36 = vpop.f32.mrf.mxu0 }
 0x141   : > { %v532_v37 = vadd.f32 %v528_v35, %v505_v34 }
 0x143   : > { %v559_v38 = vadd.f32 %v555_v28, %v532_v37 }
 0x146   : > { %v582_v39 = vpop.f32.mrf.mxu3 }
 0x147   : > { %v586_v42 = vadd.f32 %v582_v39, %v559_v38 }
 0x148   : > { %v530_v44 = vpop.f32.mrf.mxu1 }
 0x149   : > { %v594_v45 = vadd.f32 %v592_v40, %v586_v42 }
 0x14b   : > { %v598_v46 = vmul.f32 %v792_v43, %v594_v45 }
 0x14d   : > { %v600_v47 = vsel %vm599_vm8, %v598_v46, 0.0 }
 0x14e   : > { %601 = vadd.xlane.f32.xlu1 %v600_v47  ;;  %v584_v48 = vpop.f32.mrf.mxu3 }
 0x1c1   : > { %v602_v52 = vpop.xlane.xlu1 %601 }
 0x1c2   : > { %v603_v53 = vmul.f32 0.013888889, %v602_v52 }
 0x1c4   : > { %v604_v54 = vsub.f32 %v594_v45, %v603_v53 }
 0x1c6   : > { %v605_v55 = vmul.f32 %v792_v43, %v604_v54 }
 0x1c8   : > { %v606_v56 = vmul.f32 %v605_v55, %v605_v55 }
 0x1ca   : > { %v607_v57 = vsel %vm599_vm8, %v606_v56, 0.0 }
 0x1cb   : > { %608 = vadd.xlane.f32.xlu2 %v607_v57 }
 0x1e3   : > { %635 = vperm.xlu2 %790, %v907_v41  }
 0x23e   : > { %v609_v58 = vpop.xlane.xlu2 %608 }
 0x23f   : > { %v610_v59 = vmul.f32 0.013888889, %v609_v58 }
 0x241   : > { %v611_v60 = vadd.f32 1e-05, %v610_v59 }
 0x243   : > { %793 = vrsqrt.f32 %v611_v60  ;;  %vm618_vm10 = vweird.f32 %v611_v60 }
 0x246   : > { %v636_v8 = vpop.permute.xlu2 %635 }
 0x249   : > { %v794_v61 = vpop.eup %793 }
 0x24a   : > { %v613_v62 = vmul.f32 %v794_v61, %v611_v60  ;;  %vm619_vm9 = vweird.f32 %v794_v61 }
 0x24b   : > { %vm620_vm11 = vmor %vm618_vm10, %vm619_vm9 }
 0x24c   : > { %v614_v63 = vmul.f32 %v794_v61, %v613_v62 }
 0x24e   : > { %v615_v1 = vmul.f32 0.5, %v614_v63 }
 0x250   : > { %v616_v2 = vsub.f32 1.5, %v615_v1 }
 0x252   : > { %v617_v3 = vmul.f32 %v794_v61, %v616_v2 }
 0x254   : > { %v621_v4 = vsel %vm620_vm11, %v794_v61, %v617_v3 }
 0x255   : > { %v622_v5 = vmul.f32 %v621_v4, %v604_v54 }
 0x257   : > { %v627_v7 = vmul.f32 %v625_v0, %v622_v5 }
 0x259   : > { %v632_v41 = vadd.f32 %v630_v6, %v627_v7 }
 0x25b   : > { %vm633_vm12 = vcmp.ge.f32.partialorder %v632_v41, 0.0  ;;  %v638_v9 = vmul.f32 %v636_v8, %v632_v41 }
 0x25d   : > { %v639_v10 = vsel %vm633_vm12, %v632_v41, %v638_v9 }
 0x25e   : > { %v640_v11 = vmul.f32 %v792_v43, %v639_v10 }
 0x260   : > { %v641_v12 = vpack.c.bf16 %v640_v11, %v640_v11 }
 0x262   : > { %v643_v13 = vunpack.c.l.b16 %v641_v12 }
 0x264   : > { %v644_v14 = vpack.c.b16 %v643_v13, %v643_v13 }
 0x266   : > { %645 = vrot.lane.b32.xlu1 %v644_v14, %s813_s13 }
 0x2d8   : > { %v646_v15 = vpop.permute.xlu1 %645 }
 0x2d9   : > { %v650_v16 = vsel %vm647_vm13, 0, %v646_v15  ;;  %v652_v17 = vsel %vm651_vm14, %v646_v15, 0 }
 0x2da   : > { %v655_v18 = vunpack.c.l.b16 %v650_v16  ;;  %v656_v19 = vunpack.c.l.b16 %v652_v17 }
 0x2dc   : > { %v657_v20 = vpack.c.b16 %v656_v19, %v655_v18 }
 0x2de   : > { %661 = vst.msk [vmem:[%s244_s16] sm:$0xff] %vm660_vm0, %v657_v20 }
 0x2df PF: > { %s15_s18 = sadd.s32 1, %s801_s18  }
 0x2e0   : > { %p12_p4 = scmp.ge.s32.totalorder %s15_s18, 4  }
 0x2e2   :  { %14 = sbr.rel (!%p12_p4) target bundleno = 1 (0x1), region = 84 }

// kernel: mask_decoder_forward.7
= control target key start
LH: loop header
LB: loop body
LE: loop exit
PB: predicated region body
PF: predicated region fallthrough
CT: control target
= control target key end

     0   :  { %s1091_s21 = smov 0   ;;  %s1279_s0 = inlined_call_operand.vmem [shape: bf16[2,8,198], index: 0, kind: input, shape index: {}]   ;;  %s1280_s1 = inlined_call_operand.vmem [shape: bf16[2,8,198], index: 1, kind: input, shape index: {}]   ;;  %s1281_s2 = inlined_call_operand.vmem [shape: bf16[2,8,198], index: 2, kind: input, shape index: {}]   ;;  %s1282_s3 = inlined_call_operand.vmem [shape: bf16[3,6,8,8], index: 3, kind: input, shape index: {}]   ;;  %s1283_s4 = inlined_call_operand.vmem [shape: f32[8,8], index: 4, kind: input, shape index: {}]   ;;  %s1284_s5 = inlined_call_operand.vmem [shape: f32[1,88], index: 5, kind: input, shape index: {}]   ;;  %s1285_s6 = inlined_call_operand.vmem [shape: bf16[2,8,198], index: 6, kind: output, shape index: {}]  }
   0x1 LB: > { %s956_s22 = sadd.s32 4294967295, %s1043_s21   ;;  %p960_p0 = scmp.ge.s32.totalorder %s1043_s21, 1  ;;  %s1043_s21 = sphi %s1091_s21, %s16_s21  }
   0x2   : > { %p232_p1 = scmp.lt.s32.totalorder %s1043_s21, 3 }
   0x4   : > { %p233_p2 = pnand %p960_p0, %p232_p1 }
   0x5   : > { %p272_p3 = scmp.lt.s32.totalorder (!%p233_p2), %s956_s22, 1  ;;  %s1045_s27 = smov (!%p233_p2), 74  }
   0x6   : > { %236 = sbr.rel (%p233_p2) target bundleno = 763 (0x2fb), region = 44  ;;  %s1046_s28 = smov (!%p233_p2), 73  }
   0x7   : > { %s1047_s29 = smov (!%p233_p2), 72   ;;  %s1048_s30 = smov (!%p233_p2), 30  }
   0x8   : > { %s1049_s7 = smov (!%p233_p2), 29   ;;  %s1050_s11 = smov (!%p233_p2), 28  }
   0xb   : > { %s1287_s22 = smov (!%p272_p3, %s956_s22), 1  ;;  %vm360_vm0 = vcmask 588800   ;;  %vm312_vm1 = vcmask 1043456   ;;  %v972_v19 = vld [vmem:[%s1282_s3 + $0x8] sm:$0xf]  ;;  %vm308_vm2 = vcmask 64512  }
   0xc   : > { %s1099_s23 = sshll.u32 %s1287_s22, 3  ;;  %vm306_vm3 = vcmask 596992   ;;  %vm333_vm4 = vcmask 605184   ;;  %v969_v30 = vld [vmem:[%s1282_s3 + $0x4] sm:$0xf]  ;;  %vm388_vm5 = vcmask 244736  }
   0xd   : > { %s276_s26 = scalar_lea.vmem %s1279_s0, %s1099_s23  ;;  %s281_s10 = scalar_lea.vmem %s1280_s1, %s1099_s23  ;;  %v294_v31 = vld [vmem:[%s1282_s3] sm:$0xf]  ;;  %v974_v37 = vld [vmem:[%s1282_s3 + $0xc] sm:$0xf]  ;;  %vm416_vm6 = vcmask 236544   ;;  %vm444_vm7 = vcmask 228352  }
   0xe   : > { %v293_v0 = vld [vmem:[%s276_s26] sm:$0xff]  ;;  %s286_s14 = scalar_lea.vmem %s1281_s2, %s1099_s23  ;;  %v976_v45 = vld [vmem:[%s1282_s3 + $0x10] sm:$0xf]  ;;  %v978_v46 = vld [vmem:[%s1282_s3 + $0x14] sm:$0xf]  ;;  %vm814_vm8 = vcmask 719872  }
   0xf   : > { %v298_v1 = vunpack.c.l.b16 %v293_v0  ;;  %v299_v3 = vunpack.c.h.b16 %v293_v0  ;;  %v466_v5 = vld [vmem:[%s281_s10] sm:$0xff]  ;;  %v980_v51 = vld [vmem:[%s1282_s3 + $0x18] sm:$0xf]  ;;  %v982_v59 = vld [vmem:[%s1282_s3 + $0x1c] sm:$0xf]  ;;  %vm862_vm13 = vcmask 809984  }
  0x10   : > { %v471_v6 = vunpack.c.h.b16 %v466_v5  ;;  %v470_v7 = vunpack.c.l.b16 %v466_v5  ;;  %v634_v10 = vld [vmem:[%s286_s14] sm:$0xff]  ;;  %vm866_vm14 = vcmask 482304   ;;  %vm874_vm15 = vcmask 572420   ;;  %s291_s14 = scalar_lea.vmem %s1285_s6, %s1099_s23 }
  0x11   : > { %v300_v2 = vpack.c.b16 %v298_v1, %v298_v1  ;;  %v301_v4 = vpack.c.b16 %v299_v3, %v299_v3  ;;  %v639_v11 = vunpack.c.h.b16 %v634_v10  ;;  %v638_v12 = vunpack.c.l.b16 %v634_v10  ;;  %v984_v60 = vld [vmem:[%s1282_s3 + $0x20] sm:$0xf]  ;;  %v988_v10 = vld [vmem:[%s1282_s3 + $0x28] sm:$0xf] }
  0x12   : > { %v473_v8 = vpack.c.b16 %v471_v6, %v471_v6  ;;  %v472_v9 = vpack.c.b16 %v470_v7, %v470_v7 }
  0x13   : > { %329 = vrot.lane.b32.xlu1 %v300_v2, %s1045_s27  ;;  %302 = vrot.lane.b32.xlu0 %v300_v2, %s1046_s28  ;;  %v641_v13 = vpack.c.b16 %v639_v11, %v639_v11  ;;  %v640_v14 = vpack.c.b16 %v638_v12, %v638_v12  ;;  %v990_v11 = vld [vmem:[%s1282_s3 + $0x2c] sm:$0xf]  ;;  %v1224_v12 = vld [vmem:[%s1283_s4] sm:$0xff] }
  0x14   : > { %356 = vrot.lane.b32.xlu2 %v300_v2, %s1047_s29 }
  0x1b   : > { %331 = vrot.lane.b32.xlu1 %v301_v4, %s1045_s27  ;;  %304 = vrot.lane.b32.xlu0 %v301_v4, %s1046_s28 }
  0x1c   : > { %358 = vrot.lane.b32.xlu2 %v301_v4, %s1047_s29 }
  0x23   : > { %386 = vrot.lane.b32.xlu1 %v301_v4, %s1048_s30  ;;  %384 = vrot.lane.b32.xlu0 %v300_v2, %s1048_s30 }
  0x24   : > { %412 = vrot.lane.b32.xlu2 %v300_v2, %s1049_s7 }
  0x2b   : > { %440 = vrot.lane.b32.xlu1 %v300_v2, %s1050_s11  ;;  %414 = vrot.lane.b32.xlu0 %v301_v4, %s1049_s7  ;;  %v986_v2 = vld [vmem:[%s1282_s3 + $0x24] sm:$0xf] }
  0x2c   : > { %442 = vrot.lane.b32.xlu2 %v301_v4, %s1050_s11 }
  0x33   : > { %476 = vrot.lane.b32.xlu1 %v473_v8, %s1045_s27  ;;  %474 = vrot.lane.b32.xlu0 %v472_v9, %s1045_s27 }
  0x34   : > { %501 = vrot.lane.b32.xlu2 %v472_v9, %s1046_s28 }
  0x3b   : > { %528 = vrot.lane.b32.xlu1 %v472_v9, %s1047_s29  ;;  %503 = vrot.lane.b32.xlu0 %v473_v8, %s1046_s28 }
  0x3c   : > { %530 = vrot.lane.b32.xlu2 %v473_v8, %s1047_s29 }
  0x43   : > { %557 = vrot.lane.b32.xlu1 %v473_v8, %s1048_s30  ;;  %555 = vrot.lane.b32.xlu0 %v472_v9, %s1048_s30 }
  0x44   : > { %582 = vrot.lane.b32.xlu2 %v472_v9, %s1049_s7 }
  0x4b   : > { %609 = vrot.lane.b32.xlu1 %v472_v9, %s1050_s11  ;;  %584 = vrot.lane.b32.xlu0 %v473_v8, %s1049_s7 }
  0x4c   : > { %611 = vrot.lane.b32.xlu2 %v473_v8, %s1050_s11 }
  0x53   : > { %644 = vrot.lane.b32.xlu1 %v641_v13, %s1045_s27  ;;  %642 = vrot.lane.b32.xlu0 %v640_v14, %s1045_s27 }
  0x54   : > { %669 = vrot.lane.b32.xlu2 %v640_v14, %s1046_s28 }
  0x5b   : > { %696 = vrot.lane.b32.xlu1 %v640_v14, %s1047_s29  ;;  %671 = vrot.lane.b32.xlu0 %v641_v13, %s1046_s28 }
  0x5c   : > { %698 = vrot.lane.b32.xlu2 %v641_v13, %s1047_s29 }
  0x63   : > { %725 = vrot.lane.b32.xlu1 %v641_v13, %s1048_s30  ;;  %723 = vrot.lane.b32.xlu0 %v640_v14, %s1048_s30 }
  0x64   : > { %750 = vrot.lane.b32.xlu2 %v640_v14, %s1049_s7 }
  0x6b   : > { %752 = vrot.lane.b32.xlu0 %v641_v13, %s1049_s7  ;;  %777 = vrot.lane.b32.xlu1 %v640_v14, %s1050_s11 }
  0x6c   : > { %779 = vrot.lane.b32.xlu2 %v641_v13, %s1050_s11  ;;  %v1051_v13 = vmov 0   ;;  %s1055_s11 = smov 99  }
  0x6d   : > { %1029 = vset.pattern.permute.xlu0 %v1051_v13 }
  0x6e   : > { %v357_v15 = vpop.permute.xlu2 %356 }
  0x73   : > { %806 = vperm.xlu0 %1029, %v1224_v12  }
  0x76   : > { %v359_v16 = vpop.permute.xlu2 %358 }
  0x77   : > { %v361_v17 = vsel %vm360_vm0, %v357_v15, %v359_v16 }
  0x78   : > { %v366_v18 = vsel %vm312_vm1, %v361_v17, 0 }
  0x79   : > { %375 = vmatpush.bf16.msra.mxu2 %v366_v18 }
  0x7c   : > { %973 = vmatmul.msk.bf16.vlgmr.msra.gmra.mxu2 %vm308_vm2, %v972_v19  ;;  %v992_v19 = vld [vmem:[%s1282_s3 + $0x30] sm:$0xf] }
  0x7e   : > { %v413_v20 = vpop.permute.xlu2 %412 }
  0x85   : > { %v330_v21 = vpop.permute.xlu1 %329  ;;  %v303_v22 = vpop.permute.xlu0 %302 }
  0x86   : > { %v443_v23 = vpop.permute.xlu2 %442 }
  0x8d   : > { %v332_v24 = vpop.permute.xlu1 %331  ;;  %v305_v25 = vpop.permute.xlu0 %304 }
  0x8e   : > { %v307_v26 = vsel %vm306_vm3, %v303_v22, %v305_v25  ;;  %v334_v27 = vsel %vm333_vm4, %v330_v21, %v332_v24  ;;  %v502_v32 = vpop.permute.xlu2 %501 }
  0x8f   : > { %v314_v28 = vsel %vm312_vm1, %v307_v26, 0  ;;  %v339_v29 = vsel %vm312_vm1, %v334_v27, 0  ;;  %v994_v26 = vld [vmem:[%s1282_s3 + $0x34] sm:$0xf]  ;;  %v996_v27 = vld [vmem:[%s1282_s3 + $0x38] sm:$0xf] }
  0x90   : > { %323 = vmatpush.bf16.msra.mxu0 %v314_v28  ;;  %348 = vmatpush.bf16.msra.mxu1 %v339_v29 }
  0x93   : > { %970 = vmatmul.msk.bf16.vlgmr.msra.gmra.mxu0 %vm308_vm2, %v969_v30  ;;  %971 = vmatmul.msk.bf16.vlgmr.msra.gmra.mxu1 %vm308_vm2, %v294_v31 }
  0x95   : > { %v387_v33 = vpop.permute.xlu1 %386  ;;  %v385_v34 = vpop.permute.xlu0 %384 }
  0x96   : > { %v389_v35 = vsel %vm388_vm5, %v385_v34, %v387_v33  ;;  %v531_v42 = vpop.permute.xlu2 %530  ;;  %v998_v33 = vld [vmem:[%s1282_s3 + $0x3c] sm:$0xf] }
  0x97   : > { %v394_v36 = vsel %vm312_vm1, %v389_v35, 0 }
  0x98   : > { %403 = vmatpush.bf16.msra.mxu3 %v394_v36 }
  0x9b   : > { %975 = vmatmul.msk.bf16.vlgmr.msra.gmra.mxu3 %vm308_vm2, %v974_v37 }
  0x9d   : > { %v441_v38 = vpop.permute.xlu1 %440  ;;  %v415_v39 = vpop.permute.xlu0 %414 }
  0x9e   : > { %v417_v40 = vsel %vm416_vm6, %v413_v20, %v415_v39  ;;  %v445_v41 = vsel %vm444_vm7, %v441_v38, %v443_v23  ;;  %v583_v52 = vpop.permute.xlu2 %582 }
  0x9f   : > { %v422_v43 = vsel %vm312_vm1, %v417_v40, 0  ;;  %v450_v44 = vsel %vm312_vm1, %v445_v41, 0  ;;  %v1000_v41 = vld [vmem:[%s1282_s3 + $0x40] sm:$0xf] }
  0xa0   : > { %431 = vmatpush.bf16.msrb.mxu0 %v422_v43  ;;  %459 = vmatpush.bf16.msrb.mxu1 %v450_v44 }
  0xa3   : > { %977 = vmatmul.msk.bf16.vlgmr.msrb.gmra.mxu0 %vm308_vm2, %v976_v45  ;;  %979 = vmatmul.msk.bf16.vlgmr.msrb.gmra.mxu1 %vm308_vm2, %v978_v46 }
  0xa5   : > { %v477_v47 = vpop.permute.xlu1 %476  ;;  %v475_v48 = vpop.permute.xlu0 %474 }
  0xa6   : > { %v478_v49 = vsel %vm333_vm4, %v475_v48, %v477_v47  ;;  %v612_v61 = vpop.permute.xlu2 %611 }
  0xa7   : > { %v483_v50 = vsel %vm312_vm1, %v478_v49, 0 }
  0xa8   : > { %492 = vmatpush.bf16.msrb.mxu2 %v483_v50 }
  0xab   : > { %981 = vmatmul.msk.bf16.vlgmr.msrb.gmra.mxu2 %vm308_vm2, %v980_v51 }
  0xad   : > { %v529_v53 = vpop.permute.xlu1 %528  ;;  %v504_v54 = vpop.permute.xlu0 %503 }
  0xae   : > { %v532_v55 = vsel %vm360_vm0, %v529_v53, %v531_v42  ;;  %v505_v56 = vsel %vm306_vm3, %v502_v32, %v504_v54  ;;  %v670_v3 = vpop.permute.xlu2 %669  ;;  %v1002_v42 = vld [vmem:[%s1282_s3 + $0x44] sm:$0xf] }
  0xaf   : > { %v537_v57 = vsel %vm312_vm1, %v532_v55, 0  ;;  %v510_v58 = vsel %vm312_vm1, %v505_v56, 0 }
  0xb0   : > { %519 = vmatpush.bf16.msrb.mxu3 %v510_v58  ;;  %546 = vmatpush.bf16.msra.mxu0 %v537_v57 }
  0xb3   : > { %983 = vmatmul.msk.bf16.vlgmr.msrb.gmra.mxu3 %vm308_vm2, %v982_v59  ;;  %985 = vmatmul.msk.bf16.vlgmr.msra.gmra.mxu0 %vm308_vm2, %v984_v60 }
  0xb5   : > { %v558_v62 = vpop.permute.xlu1 %557  ;;  %v556_v63 = vpop.permute.xlu0 %555 }
  0xb6   : > { %v559_v0 = vsel %vm388_vm5, %v556_v63, %v558_v62  ;;  %v699_v18 = vpop.permute.xlu2 %698 }
  0xb7   : > { %v564_v1 = vsel %vm312_vm1, %v559_v0, 0 }
  0xb8   : > { %573 = vmatpush.bf16.msra.mxu1 %v564_v1 }
  0xbb   : > { %987 = vmatmul.msk.bf16.vlgmr.msra.gmra.mxu1 %vm308_vm2, %v986_v2 }
  0xbd   : > { %v610_v4 = vpop.permute.xlu1 %609  ;;  %v585_v5 = vpop.permute.xlu0 %584 }
  0xbe   : > { %v613_v6 = vsel %vm444_vm7, %v610_v4, %v612_v61  ;;  %v586_v7 = vsel %vm416_vm6, %v583_v52, %v585_v5  ;;  %v751_v28 = vpop.permute.xlu2 %750 }
  0xbf   : > { %v618_v8 = vsel %vm312_vm1, %v613_v6, 0  ;;  %v591_v9 = vsel %vm312_vm1, %v586_v7, 0 }
  0xc0   : > { %600 = vmatpush.bf16.msra.mxu2 %v591_v9  ;;  %627 = vmatpush.bf16.msra.mxu3 %v618_v8 }
  0xc3   : > { %989 = vmatmul.msk.bf16.vlgmr.msra.gmra.mxu2 %vm308_vm2, %v988_v10  ;;  %991 = vmatmul.msk.bf16.vlgmr.msra.gmra.mxu3 %vm308_vm2, %v990_v11 }
  0xc5   : > { %v645_v14 = vpop.permute.xlu1 %644  ;;  %v643_v15 = vpop.permute.xlu0 %642 }
  0xc6   : > { %v646_v16 = vsel %vm333_vm4, %v643_v15, %v645_v14  ;;  %v780_v34 = vpop.permute.xlu2 %779 }
  0xc7   : > { %v651_v17 = vsel %vm312_vm1, %v646_v16, 0 }
  0xc8   : > { %660 = vmatpush.bf16.msrb.mxu0 %v651_v17 }
  0xcb   : > { %993 = vmatmul.msk.bf16.vlgmr.msrb.gmra.mxu0 %vm308_vm2, %v992_v19 }
  0xcd   : > { %v697_v20 = vpop.permute.xlu1 %696  ;;  %v672_v21 = vpop.permute.xlu0 %671 }
  0xce   : > { %v700_v22 = vsel %vm360_vm0, %v697_v20, %v699_v18  ;;  %v673_v23 = vsel %vm306_vm3, %v670_v3, %v672_v21  ;;  %vm875_vm0 = vmor %vm874_vm15, %vm312_vm1 }
  0xcf   : > { %v705_v24 = vsel %vm312_vm1, %v700_v22, 0  ;;  %v678_v25 = vsel %vm312_vm1, %v673_v23, 0 }
  0xd0   : > { %687 = vmatpush.bf16.msrb.mxu1 %v678_v25  ;;  %714 = vmatpush.bf16.msrb.mxu2 %v705_v24 }
  0xd3   : > { %995 = vmatmul.msk.bf16.vlgmr.msrb.gmra.mxu1 %vm308_vm2, %v994_v26  ;;  %997 = vmatmul.msk.bf16.vlgmr.msrb.gmra.mxu2 %vm308_vm2, %v996_v27 }
  0xd5   : > { %v726_v29 = vpop.permute.xlu1 %725  ;;  %v724_v30 = vpop.permute.xlu0 %723 }
  0xd6   : > { %v727_v31 = vsel %vm388_vm5, %v724_v30, %v726_v29 }
  0xd7   : > { %v732_v32 = vsel %vm312_vm1, %v727_v31, 0  ;;  %v1034_v31 = vld [vmem:[%s1284_s5] ss:$0 sm:$0xff] }
  0xd8   : > { %741 = vmatpush.bf16.msrb.mxu3 %v732_v32 }
  0xdb   : > { %999 = vmatmul.msk.bf16.vlgmr.msrb.gmra.mxu3 %vm308_vm2, %v998_v33 }
  0xdd   : > { %v753_v35 = vpop.permute.xlu0 %752  ;;  %v778_v36 = vpop.permute.xlu1 %777 }
  0xde   : > { %v754_v37 = vsel %vm416_vm6, %v751_v28, %v753_v35  ;;  %v781_v38 = vsel %vm444_vm7, %v778_v36, %v780_v34 }
  0xdf   : > { %v759_v39 = vsel %vm312_vm1, %v754_v37, 0  ;;  %v786_v40 = vsel %vm312_vm1, %v781_v38, 0  ;;  %v1052_v38 = vmov 1  }
  0xe0   : > { %768 = vmatpush.bf16.msra.mxu0 %v759_v39  ;;  %795 = vmatpush.bf16.msra.mxu1 %v786_v40  ;;  %v1053_v39 = vmov 3   ;;  %v1054_v40 = vmov 2  }
  0xe1   : > { %1030 = vset.pattern.permute.xlu0 %v1052_v38  ;;  %1032 = vset.pattern.permute.xlu2 %v1053_v39 }
  0xe2   : > { %839 = vperm.xlu0 %1030, %v1224_v12  }
  0xe3   : > { %1001 = vmatmul.msk.bf16.vlgmr.msra.gmra.mxu0 %vm308_vm2, %v1000_v41  ;;  %1003 = vmatmul.msk.bf16.vlgmr.msra.gmra.mxu1 %vm308_vm2, %v1002_v42 }
  0xe5   : > { %v807_v29 = vpop.permute.xlu0 %806 }
  0xea   : > { %1031 = vset.pattern.permute.xlu0 %v1054_v40 }
  0xeb   : > { %844 = vperm.xlu0 %1031, %v1224_v12  }
  0xf3   : > { %1033 = vset.pattern.permute.xlu0 %v1053_v39 }
  0xff   : > { %v377_v43 = vpop.f32.mrf.mxu2 }
 0x107   : > { %v379_v44 = vpop.f32.mrf.mxu2 }
 0x110   : > { %v325_v45 = vpop.f32.mrf.mxu0  ;;  %v350_v46 = vpop.f32.mrf.mxu1 }
 0x111   : > { %v351_v57 = vadd.f32 %v350_v46, %v325_v45 }
 0x113   : > { %v381_v60 = vadd.f32 %v377_v43, %v351_v57 }
 0x118   : > { %v327_v47 = vpop.f32.mrf.mxu0  ;;  %v352_v48 = vpop.f32.mrf.mxu1 }
 0x11e   : > { %v405_v49 = vpop.f32.mrf.mxu3 }
 0x11f   : > { %v409_v63 = vadd.f32 %v405_v49, %v381_v60 }
 0x120   : > { %v433_v50 = vpop.f32.mrf.mxu0  ;;  %v461_v51 = vpop.f32.mrf.mxu1 }
 0x121   : > { %v437_v1 = vadd.f32 %v433_v50, %v409_v63 }
 0x123   : > { %v465_v3 = vadd.f32 %v461_v51, %v437_v1 }
 0x126   : > { %v407_v52 = vpop.f32.mrf.mxu3 }
 0x128   : > { %v435_v53 = vpop.f32.mrf.mxu0  ;;  %v463_v54 = vpop.f32.mrf.mxu1 }
 0x12e   : > { %v494_v55 = vpop.f32.mrf.mxu2 }
 0x12f   : > { %v498_v4 = vadd.f32 %v494_v55, %v465_v3 }
 0x130   : > { %v548_v56 = vpop.f32.mrf.mxu0 }
 0x136   : > { %v521_v58 = vpop.f32.mrf.mxu3  ;;  %v496_v59 = vpop.f32.mrf.mxu2 }
 0x137   : > { %v525_v7 = vadd.f32 %v521_v58, %v498_v4 }
 0x138   : > { %v575_v61 = vpop.f32.mrf.mxu1  ;;  %v550_v62 = vpop.f32.mrf.mxu0 }
 0x139   : > { %v552_v9 = vadd.f32 %v548_v56, %v525_v7 }
 0x13b   : > { %v579_v13 = vadd.f32 %v575_v61, %v552_v9 }
 0x13e   : > { %v523_v0 = vpop.f32.mrf.mxu3 }
 0x140   : > { %v577_v2 = vpop.f32.mrf.mxu1 }
 0x146   : > { %v602_v5 = vpop.f32.mrf.mxu2  ;;  %v629_v6 = vpop.f32.mrf.mxu3 }
 0x147   : > { %v606_v16 = vadd.f32 %v602_v5, %v579_v13 }
 0x148   : > { %v662_v8 = vpop.f32.mrf.mxu0 }
 0x149   : > { %v633_v17 = vadd.f32 %v629_v6, %v606_v16 }
 0x14b   : > { %v666_v20 = vadd.f32 %v662_v8, %v633_v17 }
 0x14e   : > { %v604_v10 = vpop.f32.mrf.mxu2  ;;  %v631_v11 = vpop.f32.mrf.mxu3 }
 0x150   : > { %v689_v14 = vpop.f32.mrf.mxu1  ;;  %v664_v15 = vpop.f32.mrf.mxu0 }
 0x151   : > { %v693_v21 = vadd.f32 %v689_v14, %v666_v20 }
 0x154   : > { %v840_v53 = vpop.permute.xlu0 %839 }
 0x156   : > { %v716_v18 = vpop.f32.mrf.mxu2 }
 0x157   : > { %v720_v22 = vadd.f32 %v716_v18, %v693_v21 }
 0x158   : > { %v691_v19 = vpop.f32.mrf.mxu1 }
 0x15d   : > { %v845_v59 = vpop.permute.xlu0 %844 }
 0x15e   : > { %v743_v23 = vpop.f32.mrf.mxu3  ;;  %v718_v24 = vpop.f32.mrf.mxu2 }
 0x15f   : > { %v747_v25 = vadd.f32 %v743_v23, %v720_v22 }
 0x160   : > { %v770_v26 = vpop.f32.mrf.mxu0  ;;  %v797_v27 = vpop.f32.mrf.mxu1 }
 0x161   : > { %v774_v28 = vadd.f32 %v770_v26, %v747_v25 }
 0x163   : > { %v801_v30 = vadd.f32 %v797_v27, %v774_v28 }
 0x165   : > { %v809_v32 = vadd.f32 %v807_v29, %v801_v30 }
 0x166   : > { %v745_v33 = vpop.f32.mrf.mxu3 }
 0x167   : > { %v813_v34 = vmul.f32 %v1034_v31, %v809_v32 }
 0x168   : > { %v772_v35 = vpop.f32.mrf.mxu0  ;;  %v799_v36 = vpop.f32.mrf.mxu1 }
 0x169   : > { %v815_v37 = vsel %vm814_vm8, %v813_v34, 0.0 }
 0x16a   : > { %816 = vadd.xlane.f32.xlu1 %v815_v37 }
 0x1dd   : > { %v817_v41 = vpop.xlane.xlu1 %816 }
 0x1de   : > { %v818_v42 = vmul.f32 0.013888889, %v817_v41 }
 0x1e0   : > { %v819_v43 = vsub.f32 %v809_v32, %v818_v42 }
 0x1e2   : > { %v820_v44 = vmul.f32 %v1034_v31, %v819_v43 }
 0x1e4   : > { %v821_v45 = vmul.f32 %v820_v44, %v820_v44 }
 0x1e6   : > { %v822_v46 = vsel %vm814_vm8, %v821_v45, 0.0 }
 0x1e7   : > { %823 = vadd.xlane.f32.xlu2 %v822_v46 }
 0x1ff   : > { %850 = vperm.xlu2 %1032, %v1224_v12  }
 0x25a   : > { %v824_v47 = vpop.xlane.xlu2 %823 }
 0x25b   : > { %v825_v48 = vmul.f32 0.013888889, %v824_v47 }
 0x25d   : > { %v826_v49 = vadd.f32 1e-05, %v825_v48 }
 0x25f   : > { %1035 = vrsqrt.f32 %v826_v49  ;;  %vm833_vm10 = vweird.f32 %v826_v49 }
 0x262   : > { %v851_v61 = vpop.permute.xlu2 %850 }
 0x265   : > { %v1036_v50 = vpop.eup %1035 }
 0x266   : > { %v828_v51 = vmul.f32 %v1036_v50, %v826_v49  ;;  %vm834_vm9 = vweird.f32 %v1036_v50 }
 0x267   : > { %vm835_vm11 = vmor %vm833_vm10, %vm834_vm9 }
 0x268   : > { %v829_v52 = vmul.f32 %v1036_v50, %v828_v51 }
 0x26a   : > { %v830_v54 = vmul.f32 0.5, %v829_v52 }
 0x26c   : > { %v831_v55 = vsub.f32 1.5, %v830_v54 }
 0x26e   : > { %v832_v56 = vmul.f32 %v1036_v50, %v831_v55 }
 0x270   : > { %v836_v57 = vsel %vm835_vm11, %v1036_v50, %v832_v56 }
 0x271   : > { %v837_v58 = vmul.f32 %v836_v57, %v819_v43 }
 0x273   : > { %v842_v60 = vmul.f32 %v840_v53, %v837_v58 }
 0x275   : > { %v847_v12 = vadd.f32 %v845_v59, %v842_v60 }
 0x277   : > { %vm848_vm12 = vcmp.ge.f32.partialorder %v847_v12, 0.0  ;;  %v853_v62 = vmul.f32 %v851_v61, %v847_v12 }
 0x279   : > { %v854_v63 = vsel %vm848_vm12, %v847_v12, %v853_v62 }
 0x27a   : > { %v855_v0 = vmul.f32 %v1034_v31, %v854_v63 }
 0x27c   : > { %v856_v1 = vpack.c.bf16 %v855_v0, %v855_v0 }
 0x27e   : > { %v858_v2 = vunpack.c.l.b16 %v856_v1 }
 0x280   : > { %v859_v3 = vpack.c.b16 %v858_v2, %v858_v2 }
 0x282   : > { %860 = vrot.lane.b32.xlu1 %v859_v3, %s1055_s11 }
 0x2f4   : > { %v861_v4 = vpop.permute.xlu1 %860 }
 0x2f5   : > { %v865_v5 = vsel %vm862_vm13, 0, %v861_v4  ;;  %v867_v6 = vsel %vm866_vm14, %v861_v4, 0 }
 0x2f6   : > { %v870_v7 = vunpack.c.l.b16 %v865_v5  ;;  %v871_v8 = vunpack.c.l.b16 %v867_v6 }
 0x2f8   : > { %v872_v9 = vpack.c.b16 %v871_v8, %v870_v7 }
 0x2fa   : > { %876 = vst.msk [vmem:[%s291_s14] sm:$0xff] %vm875_vm0, %v872_v9 }
 0x2fb PF: > { %s16_s21 = sadd.s32 1, %s1043_s21  }
 0x2fc   : > { %p13_p4 = scmp.ge.s32.totalorder %s16_s21, 4  }
 0x2fe   :  { %15 = sbr.rel (!%p13_p4) target bundleno = 1 (0x1), region = 97 }

// kernel: mask_decoder_forward.8
= control target key start
LH: loop header
LB: loop body
LE: loop exit
PB: predicated region body
PF: predicated region fallthrough
CT: control target
= control target key end

     0   :  { %s1315_s24 = smov 0   ;;  %s1531_s0 = inlined_call_operand.vmem [shape: bf16[2,8,198], index: 0, kind: input, shape index: {}]   ;;  %s1532_s1 = inlined_call_operand.vmem [shape: bf16[2,8,198], index: 1, kind: input, shape index: {}]   ;;  %s1533_s2 = inlined_call_operand.vmem [shape: bf16[2,8,198], index: 2, kind: input, shape index: {}]   ;;  %s1534_s3 = inlined_call_operand.vmem [shape: bf16[2,8,198], index: 3, kind: input, shape index: {}]   ;;  %s1535_s4 = inlined_call_operand.vmem [shape: bf16[4,6,8,8], index: 4, kind: input, shape index: {}]   ;;  %s1536_s5 = inlined_call_operand.vmem [shape: f32[8,8], index: 5, kind: input, shape index: {}]   ;;  %s1537_s6 = inlined_call_operand.vmem [shape: f32[1,88], index: 6, kind: input, shape index: {}]   ;;  %s1538_s7 = inlined_call_operand.vmem [shape: bf16[2,8,198], index: 7, kind: output, shape index: {}]  }
   0x1 LB: > { %s1160_s25 = sadd.s32 4294967295, %s1262_s24   ;;  %p1164_p0 = scmp.ge.s32.totalorder %s1262_s24, 1  ;;  %s1262_s24 = sphi %s1315_s24, %s17_s24  }
   0x2   : > { %p267_p1 = scmp.lt.s32.totalorder %s1262_s24, 3 }
   0x4   : > { %p268_p2 = pnand %p1164_p0, %p267_p1 }
   0x5   : > { %p314_p3 = scmp.lt.s32.totalorder (!%p268_p2), %s1160_s25, 1  ;;  %s1264_s10 = smov (!%p268_p2), 30  }
   0x6   : > { %271 = sbr.rel (%p268_p2) target bundleno = 768 (0x300), region = 48  ;;  %s1265_s11 = smov (!%p268_p2), 116  }
   0x7   : > { %s1266_s12 = smov (!%p268_p2), 118   ;;  %s1267_s13 = smov (!%p268_p2), 117  }
   0x8   : > { %s1268_s14 = smov (!%p268_p2), 29   ;;  %s1269_s15 = smov (!%p268_p2), 28  }
   0xb   : > { %s1540_s25 = smov (!%p314_p3, %s1160_s25), 1  ;;  %vm353_vm0 = vcmask 1043456   ;;  %v341_v34 = vld [vmem:[%s1535_s4] sm:$0xf]  ;;  %vm349_vm1 = vcmask 64512   ;;  %vm427_vm2 = vcmask 244736  }
   0xc   : > { %s1323_s26 = sshll.u32 %s1540_s25, 3  ;;  %v1178_v42 = vld [vmem:[%s1535_s4 + $0x8] sm:$0xf]  ;;  %v1175_v50 = vld [vmem:[%s1535_s4 + $0x4] sm:$0xf]  ;;  %vm455_vm3 = vcmask 236544  }
   0xd   : > { %s318_s29 = scalar_lea.vmem %s1531_s0, %s1323_s26  ;;  %s323_s9 = scalar_lea.vmem %s1532_s1, %s1323_s26  ;;  %v1180_v51 = vld [vmem:[%s1535_s4 + $0xc] sm:$0xf]  ;;  %v1186_v57 = vld [vmem:[%s1535_s4 + $0x18] sm:$0xf]  ;;  %vm483_vm4 = vcmask 228352   ;;  %vm1006_vm5 = vcmask 719872  }
   0xe   : > { %v415_v0 = vld [vmem:[%s318_s29] sm:$0xff]  ;;  %s328_s18 = scalar_lea.vmem %s1533_s2, %s1323_s26  ;;  %s333_s21 = scalar_lea.vmem %s1534_s3, %s1323_s26  ;;  %v1182_v62 = vld [vmem:[%s1535_s4 + $0x10] sm:$0xf]  ;;  %v1188_v63 = vld [vmem:[%s1535_s4 + $0x1c] sm:$0xf]  ;;  %vm1054_vm10 = vcmask 809984  }
   0xf   : > { %v340_v1 = vld [vmem:[%s318_s29] sm:$0xf]  ;;  %v420_v2 = vunpack.c.h.b16 %v415_v0  ;;  %v419_v7 = vunpack.c.l.b16 %v415_v0  ;;  %v1184_v0 = vld [vmem:[%s1535_s4 + $0x14] sm:$0xf]  ;;  %vm1058_vm11 = vcmask 482304   ;;  %vm1066_vm12 = vcmask 572420  }
  0x10   : > { %v345_v3 = vunpack.c.l.b16 %v340_v1  ;;  %v505_v6 = vld [vmem:[%s323_s9] sm:$0xf]  ;;  %vm1067_vm13 = vmor %vm1066_vm12, %vm353_vm0 }
  0x11   : > { %v422_v4 = vpack.c.b16 %v420_v2, %v420_v2  ;;  %v509_v8 = vunpack.c.l.b16 %v505_v6  ;;  %v421_v9 = vpack.c.b16 %v419_v7, %v419_v7  ;;  %v581_v11 = vld [vmem:[%s323_s9] sm:$0xff] }
  0x12   : > { %v346_v5 = vpack.c.b16 %v345_v3, %v345_v3  ;;  %v585_v12 = vunpack.c.l.b16 %v581_v11  ;;  %v586_v14 = vunpack.c.h.b16 %v581_v11  ;;  %v744_v16 = vld [vmem:[%s328_s18] sm:$0xff] }
  0x13   : > { %425 = vrot.lane.b32.xlu1 %v422_v4, %s1264_s10  ;;  %v510_v10 = vpack.c.b16 %v509_v8, %v509_v8  ;;  %v668_v17 = vld [vmem:[%s328_s18] sm:$0xf]  ;;  %v748_v18 = vunpack.c.l.b16 %v744_v16  ;;  %v749_v20 = vunpack.c.h.b16 %v744_v16  ;;  %v1194_v8 = vld [vmem:[%s1535_s4 + $0x28] sm:$0xf]  ;;  %v1196_v16 = vld [vmem:[%s1535_s4 + $0x2c] sm:$0xf] }
  0x14   : > { %393 = vrot.lane.b32.xlu0 %v346_v5, %s1265_s11  ;;  %370 = vrot.lane.b32.xlu2 %v346_v5, %s1266_s12  ;;  %v587_v13 = vpack.c.b16 %v585_v12, %v585_v12  ;;  %v588_v15 = vpack.c.b16 %v586_v14, %v586_v14  ;;  %v672_v19 = vunpack.c.l.b16 %v668_v17  ;;  %v831_v23 = vld [vmem:[%s333_s21] sm:$0xf]  ;;  %v1192_v17 = vld [vmem:[%s1535_s4 + $0x24] sm:$0xf] }
  0x15   : > { %v750_v21 = vpack.c.b16 %v748_v18, %v748_v18  ;;  %v751_v24 = vpack.c.b16 %v749_v20, %v749_v20  ;;  %v835_v25 = vunpack.c.l.b16 %v831_v23  ;;  %v907_v27 = vld [vmem:[%s333_s21] sm:$0xff] }
  0x16   : > { %v673_v22 = vpack.c.b16 %v672_v19, %v672_v19  ;;  %v911_v28 = vunpack.c.l.b16 %v907_v27  ;;  %v912_v30 = vunpack.c.h.b16 %v907_v27 }
  0x17   : > { %v836_v26 = vpack.c.b16 %v835_v25, %v835_v25 }
  0x18   : > { %v913_v29 = vpack.c.b16 %v911_v28, %v911_v28  ;;  %v914_v31 = vpack.c.b16 %v912_v30, %v912_v30 }
  0x1b   : > { %347 = vrot.lane.b32.xlu1 %v346_v5, %s1267_s13 }
  0x1c   : > { %423 = vrot.lane.b32.xlu0 %v421_v9, %s1264_s10  ;;  %511 = vrot.lane.b32.xlu2 %v510_v10, %s1266_s12 }
  0x23   : > { %453 = vrot.lane.b32.xlu1 %v422_v4, %s1268_s14 }
  0x24   : > { %451 = vrot.lane.b32.xlu0 %v421_v9, %s1268_s14  ;;  %535 = vrot.lane.b32.xlu2 %v510_v10, %s1267_s13 }
  0x2b   : > { %481 = vrot.lane.b32.xlu1 %v422_v4, %s1269_s15 }
  0x2c   : > { %479 = vrot.lane.b32.xlu0 %v421_v9, %s1269_s15  ;;  %616 = vrot.lane.b32.xlu2 %v587_v13, %s1268_s14 }
  0x33   : > { %643 = vrot.lane.b32.xlu1 %v587_v13, %s1269_s15 }
  0x34   : > { %618 = vrot.lane.b32.xlu0 %v588_v15, %s1268_s14  ;;  %645 = vrot.lane.b32.xlu2 %v588_v15, %s1269_s15 }
  0x3b   : > { %589 = vrot.lane.b32.xlu1 %v587_v13, %s1264_s10 }
  0x3c   : > { %559 = vrot.lane.b32.xlu0 %v510_v10, %s1265_s11  ;;  %591 = vrot.lane.b32.xlu2 %v588_v15, %s1264_s10  ;;  %v1190_v15 = vld [vmem:[%s1535_s4 + $0x20] sm:$0xf] }
  0x43   : > { %752 = vrot.lane.b32.xlu1 %v750_v21, %s1264_s10 }
  0x44   : > { %722 = vrot.lane.b32.xlu0 %v673_v22, %s1265_s11  ;;  %754 = vrot.lane.b32.xlu2 %v751_v24, %s1264_s10 }
  0x4b   : > { %698 = vrot.lane.b32.xlu1 %v673_v22, %s1267_s13 }
  0x4c   : > { %674 = vrot.lane.b32.xlu0 %v673_v22, %s1266_s12  ;;  %837 = vrot.lane.b32.xlu2 %v836_v26, %s1266_s12 }
  0x53   : > { %781 = vrot.lane.b32.xlu1 %v751_v24, %s1268_s14 }
  0x54   : > { %779 = vrot.lane.b32.xlu0 %v750_v21, %s1268_s14  ;;  %861 = vrot.lane.b32.xlu2 %v836_v26, %s1267_s13 }
  0x5b   : > { %808 = vrot.lane.b32.xlu1 %v751_v24, %s1269_s15 }
  0x5c   : > { %806 = vrot.lane.b32.xlu0 %v750_v21, %s1269_s15  ;;  %942 = vrot.lane.b32.xlu2 %v913_v29, %s1268_s14 }
  0x63   : > { %969 = vrot.lane.b32.xlu1 %v913_v29, %s1269_s15 }
  0x64   : > { %944 = vrot.lane.b32.xlu0 %v914_v31, %s1268_s14  ;;  %971 = vrot.lane.b32.xlu2 %v914_v31, %s1269_s15  ;;  %s338_s14 = scalar_lea.vmem %s1538_s7, %s1323_s26 }
  0x6b   : > { %915 = vrot.lane.b32.xlu1 %v913_v29, %s1264_s10 }
  0x6c   : > { %885 = vrot.lane.b32.xlu0 %v836_v26, %s1265_s11  ;;  %917 = vrot.lane.b32.xlu2 %v914_v31, %s1264_s10  ;;  %v1202_v26 = vld [vmem:[%s1535_s4 + $0x38] sm:$0xf]  ;;  %v1198_v31 = vld [vmem:[%s1535_s4 + $0x30] sm:$0xf]  ;;  %s1274_s11 = smov 99  }
  0x6e   : > { %v371_v32 = vpop.permute.xlu2 %370 }
  0x6f   : > { %v376_v33 = vsel %vm353_vm0, %v371_v32, 0  ;;  %v1204_v32 = vld [vmem:[%s1535_s4 + $0x3c] sm:$0xf] }
  0x70   : > { %385 = vmatpush.bf16.msra.mxu1 %v376_v33  ;;  %v1200_v33 = vld [vmem:[%s1535_s4 + $0x34] sm:$0xf] }
  0x73   : > { %1177 = vmatmul.msk.bf16.vlgmr.msra.gmra.mxu1 %vm349_vm1, %v341_v34  ;;  %v1469_v34 = vld [vmem:[%s1536_s5] sm:$0xff] }
  0x76   : > { %v512_v35 = vpop.permute.xlu2 %511 }
  0x77   : > { %v517_v39 = vsel %vm353_vm0, %v512_v35, 0  ;;  %v1270_v35 = vmov 0  }
  0x78   : > { %1248 = vset.pattern.permute.xlu0 %v1270_v35 }
  0x79   : > { %998 = vperm.xlu0 %1248, %v1469_v34  }
  0x7e   : > { %v536_v36 = vpop.permute.xlu2 %535 }
  0x7f   : > { %v541_v47 = vsel %vm353_vm0, %v536_v36, 0 }
  0x85   : > { %v426_v37 = vpop.permute.xlu1 %425 }
  0x86   : > { %v394_v38 = vpop.permute.xlu0 %393  ;;  %v617_v41 = vpop.permute.xlu2 %616 }
  0x87   : > { %v399_v40 = vsel %vm353_vm0, %v394_v38, 0 }
  0x88   : > { %408 = vmatpush.bf16.msra.mxu2 %v399_v40 }
  0x8b   : > { %1179 = vmatmul.msk.bf16.vlgmr.msra.gmra.mxu2 %vm349_vm1, %v1178_v42 }
  0x8c   : > { %526 = vmatpush.bf16.msrb.mxu2 %v517_v39 }
  0x8d   : > { %v348_v43 = vpop.permute.xlu1 %347 }
  0x8e   : > { %v424_v44 = vpop.permute.xlu0 %423  ;;  %v355_v45 = vsel %vm353_vm0, %v348_v43, 0  ;;  %v646_v48 = vpop.permute.xlu2 %645 }
  0x8f   : > { %v428_v46 = vsel %vm427_vm2, %v424_v44, %v426_v37  ;;  %364 = vmatpush.bf16.msra.mxu0 %v355_v45 }
  0x90   : > { %v433_v49 = vsel %vm353_vm0, %v428_v46, 0  ;;  %v1206_v46 = vld [vmem:[%s1535_s4 + $0x40] sm:$0xf] }
  0x91   : > { %442 = vmatpush.bf16.msra.mxu3 %v433_v49 }
  0x92   : > { %1176 = vmatmul.msk.bf16.vlgmr.msra.gmra.mxu0 %vm349_vm1, %v1175_v50 }
  0x94   : > { %1181 = vmatmul.msk.bf16.vlgmr.msra.gmra.mxu3 %vm349_vm1, %v1180_v51 }
  0x95   : > { %550 = vmatpush.bf16.msrb.mxu3 %v541_v47  ;;  %v454_v52 = vpop.permute.xlu1 %453  ;;  %v1212_v47 = vld [vmem:[%s1535_s4 + $0x4c] sm:$0xf] }
  0x96   : > { %v452_v53 = vpop.permute.xlu0 %451  ;;  %v592_v55 = vpop.permute.xlu2 %591 }
  0x97   : > { %v456_v54 = vsel %vm455_vm3, %v452_v53, %v454_v52 }
  0x98   : > { %v461_v56 = vsel %vm353_vm0, %v456_v54, 0 }
  0x99   : > { %470 = vmatpush.bf16.msrb.mxu0 %v461_v56  ;;  %v1218_v56 = vld [vmem:[%s1535_s4 + $0x58] sm:$0xf] }
  0x9b   : > { %1187 = vmatmul.msk.bf16.vlgmr.msrb.gmra.mxu2 %vm349_vm1, %v1186_v57 }
  0x9d   : > { %v482_v58 = vpop.permute.xlu1 %481 }
  0x9e   : > { %v480_v59 = vpop.permute.xlu0 %479  ;;  %v755_v1 = vpop.permute.xlu2 %754 }
  0x9f   : > { %v484_v60 = vsel %vm483_vm4, %v480_v59, %v482_v58 }
  0xa0   : > { %v489_v61 = vsel %vm353_vm0, %v484_v60, 0 }
  0xa1   : > { %498 = vmatpush.bf16.msrb.mxu1 %v489_v61 }
  0xa2   : > { %1183 = vmatmul.msk.bf16.vlgmr.msrb.gmra.mxu0 %vm349_vm1, %v1182_v62 }
  0xa4   : > { %1189 = vmatmul.msk.bf16.vlgmr.msrb.gmra.mxu3 %vm349_vm1, %v1188_v63  ;;  %1185 = vmatmul.msk.bf16.vlgmr.msrb.gmra.mxu1 %vm349_vm1, %v1184_v0  ;;  %v1214_v63 = vld [vmem:[%s1535_s4 + $0x50] sm:$0xf]  ;;  %v1220_v0 = vld [vmem:[%s1535_s4 + $0x5c] sm:$0xf] }
  0xa5   : > { %v644_v2 = vpop.permute.xlu1 %643 }
  0xa6   : > { %v619_v3 = vpop.permute.xlu0 %618  ;;  %v647_v5 = vsel %vm483_vm4, %v644_v2, %v646_v48  ;;  %v838_v9 = vpop.permute.xlu2 %837  ;;  %v1208_v48 = vld [vmem:[%s1535_s4 + $0x44] sm:$0xf] }
  0xa7   : > { %v620_v4 = vsel %vm455_vm3, %v617_v41, %v619_v3  ;;  %v652_v7 = vsel %vm353_vm0, %v647_v5, 0  ;;  %v843_v21 = vsel %vm353_vm0, %v838_v9, 0  ;;  %v1210_v41 = vld [vmem:[%s1535_s4 + $0x48] sm:$0xf] }
  0xa8   : > { %v625_v6 = vsel %vm353_vm0, %v620_v4, 0  ;;  %661 = vmatpush.bf16.msra.mxu3 %v652_v7 }
  0xa9   : > { %634 = vmatpush.bf16.msra.mxu2 %v625_v6 }
  0xac   : > { %1195 = vmatmul.msk.bf16.vlgmr.msra.gmra.mxu2 %vm349_vm1, %v1194_v8 }
  0xad   : > { %v590_v10 = vpop.permute.xlu1 %589 }
  0xae   : > { %v560_v11 = vpop.permute.xlu0 %559  ;;  %v593_v13 = vsel %vm427_vm2, %v590_v10, %v592_v55  ;;  %v862_v18 = vpop.permute.xlu2 %861 }
  0xaf   : > { %v565_v12 = vsel %vm353_vm0, %v560_v11, 0  ;;  %v598_v14 = vsel %vm353_vm0, %v593_v13, 0  ;;  %v867_v24 = vsel %vm353_vm0, %v862_v18, 0 }
  0xb0   : > { %574 = vmatpush.bf16.msra.mxu0 %v565_v12  ;;  %607 = vmatpush.bf16.msra.mxu1 %v598_v14 }
  0xb3   : > { %1191 = vmatmul.msk.bf16.vlgmr.msra.gmra.mxu0 %vm349_vm1, %v1190_v15 }
  0xb4   : > { %1197 = vmatmul.msk.bf16.vlgmr.msra.gmra.mxu3 %vm349_vm1, %v1196_v16  ;;  %1193 = vmatmul.msk.bf16.vlgmr.msra.gmra.mxu1 %vm349_vm1, %v1192_v17 }
  0xb5   : > { %v753_v19 = vpop.permute.xlu1 %752 }
  0xb6   : > { %v723_v20 = vpop.permute.xlu0 %722  ;;  %v756_v23 = vsel %vm427_vm2, %v753_v19, %v755_v1  ;;  %v943_v40 = vpop.permute.xlu2 %942  ;;  %v1216_v1 = vld [vmem:[%s1535_s4 + $0x54] sm:$0xf] }
  0xb7   : > { %v728_v22 = vsel %vm353_vm0, %v723_v20, 0  ;;  %v761_v25 = vsel %vm353_vm0, %v756_v23, 0 }
  0xb8   : > { %737 = vmatpush.bf16.msrb.mxu2 %v728_v22  ;;  %770 = vmatpush.bf16.msrb.mxu3 %v761_v25 }
  0xbc   : > { %852 = vmatpush.bf16.msra.mxu2 %v843_v21  ;;  %876 = vmatpush.bf16.msra.mxu3 %v867_v24 }
  0xbd   : > { %1203 = vmatmul.msk.bf16.vlgmr.msrb.gmra.mxu2 %vm349_vm1, %v1202_v26  ;;  %v699_v27 = vpop.permute.xlu1 %698 }
  0xbe   : > { %v675_v28 = vpop.permute.xlu0 %674  ;;  %v704_v29 = vsel %vm353_vm0, %v699_v27, 0  ;;  %v972_v49 = vpop.permute.xlu2 %971 }
  0xbf   : > { %v680_v30 = vsel %vm353_vm0, %v675_v28, 0  ;;  %713 = vmatpush.bf16.msrb.mxu1 %v704_v29 }
  0xc0   : > { %689 = vmatpush.bf16.msrb.mxu0 %v680_v30 }
  0xc3   : > { %1199 = vmatmul.msk.bf16.vlgmr.msrb.gmra.mxu0 %vm349_vm1, %v1198_v31 }
  0xc4   : > { %1205 = vmatmul.msk.bf16.vlgmr.msrb.gmra.mxu3 %vm349_vm1, %v1204_v32  ;;  %1201 = vmatmul.msk.bf16.vlgmr.msrb.gmra.mxu1 %vm349_vm1, %v1200_v33 }
  0xc5   : > { %v782_v36 = vpop.permute.xlu1 %781 }
  0xc6   : > { %v780_v37 = vpop.permute.xlu0 %779  ;;  %v918_v57 = vpop.permute.xlu2 %917 }
  0xc7   : > { %v783_v38 = vsel %vm455_vm3, %v780_v37, %v782_v36 }
  0xc8   : > { %v788_v39 = vsel %vm353_vm0, %v783_v38, 0 }
  0xc9   : > { %797 = vmatpush.bf16.msra.mxu0 %v788_v39 }
  0xcd   : > { %1211 = vmatmul.msk.bf16.vlgmr.msra.gmra.mxu2 %vm349_vm1, %v1210_v41  ;;  %v809_v42 = vpop.permute.xlu1 %808 }
  0xce   : > { %v807_v43 = vpop.permute.xlu0 %806 }
  0xcf   : > { %v810_v44 = vsel %vm483_vm4, %v807_v43, %v809_v42 }
  0xd0   : > { %v815_v45 = vsel %vm353_vm0, %v810_v44, 0 }
  0xd1   : > { %824 = vmatpush.bf16.msra.mxu1 %v815_v45 }
  0xd3   : > { %1207 = vmatmul.msk.bf16.vlgmr.msra.gmra.mxu0 %vm349_vm1, %v1206_v46 }
  0xd4   : > { %1213 = vmatmul.msk.bf16.vlgmr.msra.gmra.mxu3 %vm349_vm1, %v1212_v47  ;;  %1209 = vmatmul.msk.bf16.vlgmr.msra.gmra.mxu1 %vm349_vm1, %v1208_v48 }
  0xd5   : > { %v970_v51 = vpop.permute.xlu1 %969 }
  0xd6   : > { %v945_v50 = vpop.permute.xlu0 %944  ;;  %v973_v53 = vsel %vm483_vm4, %v970_v51, %v972_v49 }
  0xd7   : > { %v946_v52 = vsel %vm455_vm3, %v943_v40, %v945_v50  ;;  %v978_v55 = vsel %vm353_vm0, %v973_v53, 0 }
  0xd8   : > { %v951_v54 = vsel %vm353_vm0, %v946_v52, 0  ;;  %987 = vmatpush.bf16.msrb.mxu3 %v978_v55 }
  0xd9   : > { %960 = vmatpush.bf16.msrb.mxu2 %v951_v54 }
  0xdd   : > { %1219 = vmatmul.msk.bf16.vlgmr.msrb.gmra.mxu2 %vm349_vm1, %v1218_v56  ;;  %v916_v59 = vpop.permute.xlu1 %915 }
  0xde   : > { %v886_v58 = vpop.permute.xlu0 %885  ;;  %v919_v61 = vsel %vm427_vm2, %v916_v59, %v918_v57 }
  0xdf   : > { %v891_v60 = vsel %vm353_vm0, %v886_v58, 0  ;;  %v924_v62 = vsel %vm353_vm0, %v919_v61, 0 }
  0xe0   : > { %900 = vmatpush.bf16.msrb.mxu0 %v891_v60  ;;  %933 = vmatpush.bf16.msrb.mxu1 %v924_v62 }
  0xe3   : > { %1215 = vmatmul.msk.bf16.vlgmr.msrb.gmra.mxu0 %vm349_vm1, %v1214_v63 }
  0xe4   : > { %1221 = vmatmul.msk.bf16.vlgmr.msrb.gmra.mxu3 %vm349_vm1, %v1220_v0  ;;  %1217 = vmatmul.msk.bf16.vlgmr.msrb.gmra.mxu1 %vm349_vm1, %v1216_v1 }
  0xf0   : > { %v387_v2 = vpop.f32.mrf.mxu1 }
  0xf8   : > { %v389_v3 = vpop.f32.mrf.mxu1 }
 0x10e   : > { %v410_v4 = vpop.f32.mrf.mxu2 }
 0x10f   : > { %v366_v5 = vpop.f32.mrf.mxu0 }
 0x110   : > { %v388_v12 = vadd.f32 %v387_v2, %v366_v5 }
 0x112   : > { %v414_v14 = vadd.f32 %v410_v4, %v388_v12  ;;  %v999_v4 = vpop.permute.xlu0 %998 }
 0x116   : > { %v412_v6 = vpop.f32.mrf.mxu2 }
 0x117   : > { %v444_v7 = vpop.f32.mrf.mxu3  ;;  %v368_v8 = vpop.f32.mrf.mxu0 }
 0x118   : > { %v448_v16 = vadd.f32 %v444_v7, %v414_v14 }
 0x11e   : > { %v528_v9 = vpop.f32.mrf.mxu2 }
 0x11f   : > { %v446_v10 = vpop.f32.mrf.mxu3  ;;  %v472_v11 = vpop.f32.mrf.mxu0 }
 0x120   : > { %v476_v19 = vadd.f32 %v472_v11, %v448_v16  ;;  %v1272_v16 = vmov 3  }
 0x121   : > { %v500_v13 = vpop.f32.mrf.mxu1  ;;  %1251 = vset.pattern.permute.xlu2 %v1272_v16 }
 0x122   : > { %v504_v21 = vadd.f32 %v500_v13, %v476_v19 }
 0x124   : > { %v532_v25 = vadd.f32 %v528_v9, %v504_v21  ;;  %v1253_v9 = vld [vmem:[%s1537_s6] ss:$0 sm:$0xff] }
 0x126   : > { %v530_v15 = vpop.f32.mrf.mxu2 }
 0x127   : > { %v552_v17 = vpop.f32.mrf.mxu3  ;;  %v474_v18 = vpop.f32.mrf.mxu0  ;;  %v1271_v15 = vmov 1  }
 0x128   : > { %v556_v27 = vadd.f32 %v552_v17, %v532_v25  ;;  %1249 = vset.pattern.permute.xlu0 %v1271_v15  ;;  %v1273_v17 = vmov 2  }
 0x129   : > { %v502_v20 = vpop.f32.mrf.mxu1  ;;  %1031 = vperm.xlu0 %1249, %v1469_v34  }
 0x12f   : > { %v554_v22 = vpop.f32.mrf.mxu3  ;;  %v636_v23 = vpop.f32.mrf.mxu2 }
 0x130   : > { %v576_v24 = vpop.f32.mrf.mxu0 }
 0x131   : > { %v609_v26 = vpop.f32.mrf.mxu1  ;;  %v580_v28 = vadd.f32 %v576_v24, %v556_v27  ;;  %1250 = vset.pattern.permute.xlu0 %v1273_v17 }
 0x132   : > { %1036 = vperm.xlu0 %1250, %v1469_v34  }
 0x133   : > { %v613_v33 = vadd.f32 %v609_v26, %v580_v28 }
 0x135   : > { %v640_v35 = vadd.f32 %v636_v23, %v613_v33 }
 0x137   : > { %v663_v29 = vpop.f32.mrf.mxu3  ;;  %v638_v30 = vpop.f32.mrf.mxu2 }
 0x138   : > { %v578_v31 = vpop.f32.mrf.mxu0  ;;  %v667_v40 = vadd.f32 %v663_v29, %v640_v35 }
 0x139   : > { %v611_v32 = vpop.f32.mrf.mxu1 }
 0x13a   : > { %1252 = vset.pattern.permute.xlu0 %v1272_v16 }
 0x13f   : > { %v665_v36 = vpop.f32.mrf.mxu3 }
 0x140   : > { %v739_v37 = vpop.f32.mrf.mxu2  ;;  %v691_v38 = vpop.f32.mrf.mxu0 }
 0x141   : > { %v715_v39 = vpop.f32.mrf.mxu1  ;;  %v695_v41 = vadd.f32 %v691_v38, %v667_v40 }
 0x143   : > { %v719_v45 = vadd.f32 %v715_v39, %v695_v41 }
 0x145   : > { %v743_v47 = vadd.f32 %v739_v37, %v719_v45 }
 0x147   : > { %v772_v42 = vpop.f32.mrf.mxu3 }
 0x148   : > { %v741_v43 = vpop.f32.mrf.mxu2  ;;  %v693_v44 = vpop.f32.mrf.mxu0  ;;  %v776_v51 = vadd.f32 %v772_v42, %v743_v47 }
 0x149   : > { %v717_v46 = vpop.f32.mrf.mxu1 }
 0x14f   : > { %v774_v48 = vpop.f32.mrf.mxu3 }
 0x150   : > { %v854_v49 = vpop.f32.mrf.mxu2  ;;  %v799_v50 = vpop.f32.mrf.mxu0 }
 0x151   : > { %v826_v52 = vpop.f32.mrf.mxu1  ;;  %v803_v53 = vadd.f32 %v799_v50, %v776_v51 }
 0x153   : > { %v830_v54 = vadd.f32 %v826_v52, %v803_v53 }
 0x155   : > { %v858_v59 = vadd.f32 %v854_v49, %v830_v54 }
 0x157   : > { %v878_v55 = vpop.f32.mrf.mxu3 }
 0x158   : > { %v856_v56 = vpop.f32.mrf.mxu2  ;;  %v801_v57 = vpop.f32.mrf.mxu0  ;;  %v882_v60 = vadd.f32 %v878_v55, %v858_v59 }
 0x159   : > { %v828_v58 = vpop.f32.mrf.mxu1 }
 0x15f   : > { %v880_v61 = vpop.f32.mrf.mxu3 }
 0x160   : > { %v962_v62 = vpop.f32.mrf.mxu2  ;;  %v902_v63 = vpop.f32.mrf.mxu0 }
 0x161   : > { %v906_v0 = vadd.f32 %v902_v63, %v882_v60  ;;  %v935_v1 = vpop.f32.mrf.mxu1 }
 0x163   : > { %v939_v2 = vadd.f32 %v935_v1, %v906_v0 }
 0x165   : > { %v966_v3 = vadd.f32 %v962_v62, %v939_v2 }
 0x167   : > { %v989_v5 = vpop.f32.mrf.mxu3 }
 0x168   : > { %v964_v6 = vpop.f32.mrf.mxu2  ;;  %v993_v7 = vadd.f32 %v989_v5, %v966_v3  ;;  %v904_v8 = vpop.f32.mrf.mxu0 }
 0x169   : > { %v937_v10 = vpop.f32.mrf.mxu1 }
 0x16a   : > { %v1001_v11 = vadd.f32 %v999_v4, %v993_v7 }
 0x16c   : > { %v1005_v12 = vmul.f32 %v1253_v9, %v1001_v11 }
 0x16e   : > { %v1007_v13 = vsel %vm1006_vm5, %v1005_v12, 0.0 }
 0x16f   : > { %1008 = vadd.xlane.f32.xlu1 %v1007_v13  ;;  %v991_v14 = vpop.f32.mrf.mxu3 }
 0x19b   : > { %v1032_v30 = vpop.permute.xlu0 %1031 }
 0x1a4   : > { %v1037_v37 = vpop.permute.xlu0 %1036 }
 0x1e2   : > { %v1009_v18 = vpop.xlane.xlu1 %1008 }
 0x1e3   : > { %v1010_v19 = vmul.f32 0.013888889, %v1009_v18 }
 0x1e5   : > { %v1011_v20 = vsub.f32 %v1001_v11, %v1010_v19 }
 0x1e7   : > { %v1012_v21 = vmul.f32 %v1253_v9, %v1011_v20 }
 0x1e9   : > { %v1013_v22 = vmul.f32 %v1012_v21, %v1012_v21 }
 0x1eb   : > { %v1014_v23 = vsel %vm1006_vm5, %v1013_v22, 0.0 }
 0x1ec   : > { %1015 = vadd.xlane.f32.xlu2 %v1014_v23 }
 0x204   : > { %1042 = vperm.xlu2 %1251, %v1469_v34  }
 0x25f   : > { %v1016_v24 = vpop.xlane.xlu2 %1015 }
 0x260   : > { %v1017_v25 = vmul.f32 0.013888889, %v1016_v24 }
 0x262   : > { %v1018_v26 = vadd.f32 1e-05, %v1017_v25 }
 0x264   : > { %1254 = vrsqrt.f32 %v1018_v26  ;;  %vm1025_vm7 = vweird.f32 %v1018_v26 }
 0x267   : > { %v1043_v39 = vpop.permute.xlu2 %1042 }
 0x26a   : > { %v1255_v27 = vpop.eup %1254 }
 0x26b   : > { %v1020_v28 = vmul.f32 %v1255_v27, %v1018_v26  ;;  %vm1026_vm6 = vweird.f32 %v1255_v27 }
 0x26c   : > { %vm1027_vm8 = vmor %vm1025_vm7, %vm1026_vm6 }
 0x26d   : > { %v1021_v29 = vmul.f32 %v1255_v27, %v1020_v28 }
 0x26f   : > { %v1022_v31 = vmul.f32 0.5, %v1021_v29 }
 0x271   : > { %v1023_v32 = vsub.f32 1.5, %v1022_v31 }
 0x273   : > { %v1024_v33 = vmul.f32 %v1255_v27, %v1023_v32 }
 0x275   : > { %v1028_v35 = vsel %vm1027_vm8, %v1255_v27, %v1024_v33 }
 0x276   : > { %v1029_v36 = vmul.f32 %v1028_v35, %v1011_v20 }
 0x278   : > { %v1034_v38 = vmul.f32 %v1032_v30, %v1029_v36 }
 0x27a   : > { %v1039_v34 = vadd.f32 %v1037_v37, %v1034_v38 }
 0x27c   : > { %vm1040_vm9 = vcmp.ge.f32.partialorder %v1039_v34, 0.0  ;;  %v1045_v40 = vmul.f32 %v1043_v39, %v1039_v34 }
 0x27e   : > { %v1046_v41 = vsel %vm1040_vm9, %v1039_v34, %v1045_v40 }
 0x27f   : > { %v1047_v42 = vmul.f32 %v1253_v9, %v1046_v41 }
 0x281   : > { %v1048_v43 = vpack.c.bf16 %v1047_v42, %v1047_v42 }
 0x283   : > { %v1050_v44 = vunpack.c.l.b16 %v1048_v43 }
 0x285   : > { %v1051_v45 = vpack.c.b16 %v1050_v44, %v1050_v44 }
 0x287   : > { %1052 = vrot.lane.b32.xlu1 %v1051_v45, %s1274_s11 }
 0x2f9   : > { %v1053_v46 = vpop.permute.xlu1 %1052 }
 0x2fa   : > { %v1057_v47 = vsel %vm1054_vm10, 0, %v1053_v46  ;;  %v1059_v48 = vsel %vm1058_vm11, %v1053_v46, 0 }
 0x2fb   : > { %v1062_v49 = vunpack.c.l.b16 %v1057_v47  ;;  %v1063_v50 = vunpack.c.l.b16 %v1059_v48 }
 0x2fd   : > { %v1064_v51 = vpack.c.b16 %v1063_v50, %v1062_v49 }
 0x2ff   : > { %1068 = vst.msk [vmem:[%s338_s14] sm:$0xff] %vm1067_vm13, %v1064_v51 }
 0x300 PF: > { %s17_s24 = sadd.s32 1, %s1262_s24  }
 0x301   : > { %p14_p4 = scmp.ge.s32.totalorder %s17_s24, 4  }
 0x303   :  { %16 = sbr.rel (!%p14_p4) target bundleno = 1 (0x1), region = 110 }

// kernel: mask_decoder_forward.9
= control target key start
LH: loop header
LB: loop body
LE: loop exit
PB: predicated region body
PF: predicated region fallthrough
CT: control target
= control target key end

     0   :  { %s722_s21 = smov 0   ;;  %s795_s0 = inlined_call_operand.vmem [shape: bf16[2,8,198], index: 0, kind: input, shape index: {}]   ;;  %s796_s1 = inlined_call_operand.vmem [shape: bf16[3,16,8], index: 1, kind: input, shape index: {}]   ;;  %s797_s2 = inlined_call_operand.vmem [shape: f32[16,8], index: 2, kind: input, shape index: {}]   ;;  %s798_s3 = inlined_call_operand.vmem [shape: f32[8,8], index: 3, kind: input, shape index: {}]   ;;  %s799_s4 = inlined_call_operand.vmem [shape: f32[1,88], index: 4, kind: input, shape index: {}]   ;;  %s800_s5 = inlined_call_operand.vmem [shape: f32[2,88], index: 5, kind: input, shape index: {}]   ;;  %s801_s6 = inlined_call_operand.vmem [shape: f32[2,2,88], index: 6, kind: output, shape index: {}]  }
   0x1 LB: > { %s601_s22 = sadd.s32 4294967295, %s676_s21   ;;  %p605_p0 = scmp.ge.s32.totalorder %s676_s21, 1  ;;  %s676_s21 = sphi %s722_s21, %s16_s21  }
   0x2   : > { %p212_p1 = scmp.lt.s32.totalorder %s676_s21, 3 }
   0x4   : > { %p213_p2 = pnand %p605_p0, %p212_p1 }
   0x5   : > { %p241_p3 = scmp.lt.s32.totalorder (!%p213_p2), %s601_s22, 1  ;;  %s678_s27 = smov (!%p213_p2), 29  }
   0x6   : > { %216 = sbr.rel (%p213_p2) target bundleno = 743 (0x2e7), region = 44  ;;  %s679_s28 = smov (!%p213_p2), 28  }
   0x7   : > { %s680_s29 = smov (!%p213_p2), 30   ;;  %s685_s20 = smov (!%p213_p2), 87  }
   0xb   : > { %s803_s22 = smov (!%p241_p3, %s601_s22), 1  ;;  %v739_v6 = vld [vmem:[%s797_s2] sm:$0xff]  ;;  %v363_v7 = vld [vmem:[%s797_s2 + $0x8] sm:$0xff]  ;;  %vm304_vm0 = vcmask 244736   ;;  %v681_v8 = vmov 0   ;;  %vm277_vm1 = vcmask 1043456  }
   0xc   : > { %s630_s23 = sshll.u32 %s803_s22, 3  ;;  %651 = vset.pattern.permute.xlu0 %v681_v8  ;;  %652 = vset.pattern.permute.xlu1 %v681_v8  ;;  %v631_v12 = vld [vmem:[%s796_s1] sm:$0xff]  ;;  %vm273_vm2 = vcmask 64512   ;;  %vm271_vm3 = vcmask 236544   ;;  %vm338_vm4 = vcmask 228352   ;;  %v632_v21 = vld [vmem:[%s796_s1 + $0x8] sm:$0xff] }
   0xd   : > { %s245_s26 = scalar_lea.vmem %s795_s0, %s630_s23  ;;  %v633_v22 = vld [vmem:[%s796_s1 + $0x10] sm:$0xff]  ;;  %v682_v23 = vmov 1   ;;  %v659_v30 = vld [vmem:[%s799_s4] ss:$0 sm:$0xff]  ;;  %vm381_vm5 = vcmask 719872   ;;  %v683_v43 = vmov 2  }
   0xe   : > { %v251_v0 = vld [vmem:[%s245_s26] sm:$0xff]  ;;  %653 = vset.pattern.permute.xlu2 %v682_v23  ;;  %v684_v51 = vmov 3   ;;  %s686_s23 = smov 127   ;;  %vm489_vm11 = vcmask 711680  }
   0xf   : > { %v263_v1 = vunpack.c.l.b16 %v251_v0  ;;  %v264_v3 = vunpack.c.h.b16 %v251_v0  ;;  %v770_v44 = vld [vmem:[%s798_s3] sm:$0xff] }
  0x11   : > { %v265_v2 = vpack.c.b16 %v263_v1, %v263_v1  ;;  %v266_v4 = vpack.c.b16 %v264_v3, %v264_v3 }
  0x13   : > { %267 = vrot.lane.b32.xlu1 %v265_v2, %s678_s27  ;;  %334 = vrot.lane.b32.xlu0 %v265_v2, %s679_s28 }
  0x14   : > { %300 = vrot.lane.b32.xlu2 %v265_v2, %s680_s29 }
  0x1b   : > { %269 = vrot.lane.b32.xlu1 %v266_v4, %s678_s27  ;;  %336 = vrot.lane.b32.xlu0 %v266_v4, %s679_s28  ;;  %s608_s28 = sshll.u32 %s803_s22, 1 }
  0x1c   : > { %302 = vrot.lane.b32.xlu2 %v266_v4, %s680_s29  ;;  %s249_s7 = scalar_lea.vmem %s801_s6, %s608_s28 }
  0x23   : > { %366 = vperm.xlu0 %651, %v739_v6   ;;  %371 = vperm.xlu1 %652, %v363_v7  }
  0x2b   : > { %654 = vset.pattern.permute.xlu1 %v683_v43  ;;  %655 = vset.pattern.permute.xlu0 %v684_v51  ;;  %v499_v51 = vld [vmem:[%s800_s5] sm:$0x1] }
  0x6e   : > { %v301_v5 = vpop.permute.xlu2 %300 }
  0x76   : > { %v303_v9 = vpop.permute.xlu2 %302 }
  0x77   : > { %v305_v10 = vsel %vm304_vm0, %v301_v5, %v303_v9 }
  0x78   : > { %v310_v11 = vsel %vm277_vm1, %v305_v10, 0 }
  0x79   : > { %319 = vmatpush.bf16.msra.mxu1 %v310_v11 }
  0x7c   : > { %620 = vmatmul.msk.bf16.vlgmr.msra.gmra.mxu1 %vm273_vm2, %v631_v12 }
  0x85   : > { %v268_v13 = vpop.permute.xlu1 %267  ;;  %v335_v14 = vpop.permute.xlu0 %334 }
  0x8d   : > { %v270_v15 = vpop.permute.xlu1 %269  ;;  %v337_v16 = vpop.permute.xlu0 %336 }
  0x8e   : > { %v272_v17 = vsel %vm271_vm3, %v268_v13, %v270_v15  ;;  %v339_v18 = vsel %vm338_vm4, %v335_v14, %v337_v16  ;;  %vm544_vm4 = vcmask 1040384  }
  0x8f   : > { %v279_v19 = vsel %vm277_vm1, %v272_v17, 0  ;;  %v344_v20 = vsel %vm277_vm1, %v339_v18, 0 }
  0x90   : > { %288 = vmatpush.bf16.msra.mxu0 %v279_v19  ;;  %353 = vmatpush.bf16.msra.mxu2 %v344_v20 }
  0x93   : > { %615 = vmatmul.msk.bf16.vlgmr.msra.gmra.mxu0 %vm273_vm2, %v632_v21  ;;  %627 = vmatmul.msk.bf16.vlgmr.msra.gmra.mxu2 %vm273_vm2, %v633_v22 }
  0x95   : > { %v367_v28 = vpop.permute.xlu0 %366  ;;  %v372_v38 = vpop.permute.xlu1 %371 }
  0xf9   : > { %v321_v25 = vpop.f32.mrf.mxu1 }
 0x101   : > { %v323_v34 = vpop.f32.mrf.mxu1 }
 0x110   : > { %v290_v24 = vpop.f32.mrf.mxu0 }
 0x111   : > { %v322_v26 = vadd.f32 %v321_v25, %v290_v24 }
 0x116   : > { %v355_v27 = vpop.f32.mrf.mxu2 }
 0x117   : > { %v360_v29 = vadd.f32 %v355_v27, %v322_v26 }
 0x118   : > { %v292_v32 = vpop.f32.mrf.mxu0 }
 0x119   : > { %v374_v31 = vadd.f32 %v367_v28, %v360_v29  ;;  %v324_v35 = vadd.f32 %v323_v34, %v292_v32 }
 0x11b   : > { %v380_v33 = vmul.f32 %v659_v30, %v374_v31 }
 0x11d   : > { %v382_v36 = vsel %vm381_vm5, %v380_v33, 0.0 }
 0x11e   : > { %v357_v37 = vpop.f32.mrf.mxu2  ;;  %383 = vadd.xlane.f32.xlu2 %v382_v36 }
 0x11f   : > { %v361_v39 = vadd.f32 %v357_v37, %v324_v35 }
 0x121   : > { %v375_v40 = vadd.f32 %v372_v38, %v361_v39 }
 0x123   : > { %v385_v41 = vmul.f32 %v659_v30, %v375_v40 }
 0x125   : > { %v386_v42 = vsel %vm381_vm5, %v385_v41, 0.0 }
 0x126   : > { %387 = vadd.xlane.f32.xlu1 %v386_v42 }
 0x136   : > { %418 = vperm.xlu2 %653, %v739_v6  }
 0x13f   : > { %423 = vperm.xlu1 %654, %v739_v6  }
 0x147   : > { %656 = vset.pattern.permute.xlu1 %v681_v8 }
 0x148   : > { %443 = vperm.xlu1 %656, %v770_v44  }
 0x191   : > { %v384_v45 = vpop.xlane.xlu2 %383 }
 0x199   : > { %v388_v46 = vpop.xlane.xlu1 %387  ;;  %v419_v58 = vpop.permute.xlu2 %418 }
 0x19a   : > { %v389_v47 = vadd.f32 %v388_v46, %v384_v45 }
 0x19c   : > { %v390_v48 = vmul.f32 0.0069444445, %v389_v47 }
 0x19e   : > { %v391_v49 = vsub.f32 %v374_v31, %v390_v48  ;;  %v393_v50 = vsub.f32 %v375_v40, %v390_v48 }
 0x1a0   : > { %v394_v52 = vmul.f32 %v659_v30, %v393_v50  ;;  %v392_v53 = vmul.f32 %v659_v30, %v391_v49 }
 0x1a2   : > { %v399_v54 = vmul.f32 %v394_v52, %v394_v52  ;;  %v395_v55 = vmul.f32 %v392_v53, %v392_v53 }
 0x1a4   : > { %v400_v56 = vsel %vm381_vm5, %v399_v54, 0.0  ;;  %v396_v57 = vsel %vm381_vm5, %v395_v55, 0.0 }
 0x1a5   : > { %401 = vadd.xlane.f32.xlu2 %v400_v56  ;;  %397 = vadd.xlane.f32.xlu0 %v396_v57 }
 0x1b1   : > { %v424_v5 = vpop.permute.xlu1 %423 }
 0x1b9   : > { %432 = vperm.xlu0 %655, %v739_v6  }
 0x1ba   : > { %v444_v17 = vpop.permute.xlu1 %443 }
 0x1bd   : > { %455 = vperm.xlu2 %653, %v770_v44  }
 0x1c1   : > { %658 = vset.pattern.permute.xlu0 %v683_v43 }
 0x1c5   : > { %657 = vset.pattern.permute.xlu2 %v683_v43 }
 0x218   : > { %v398_v59 = vpop.xlane.xlu0 %397  ;;  %v402_v60 = vpop.xlane.xlu2 %401 }
 0x219   : > { %v403_v61 = vadd.f32 %v402_v60, %v398_v59 }
 0x21b   : > { %v404_v62 = vmul.f32 0.0069444445, %v403_v61 }
 0x21d   : > { %v405_v63 = vadd.f32 1e-05, %v404_v62 }
 0x21f   : > { %660 = vrsqrt.f32 %v405_v63  ;;  %vm412_vm7 = vweird.f32 %v405_v63 }
 0x220   : > { %v456_v18 = vpop.permute.xlu2 %455 }
 0x225   : > { %v661_v0 = vpop.eup %660 }
 0x226   : > { %v407_v1 = vmul.f32 %v661_v0, %v405_v63  ;;  %vm413_vm6 = vweird.f32 %v661_v0 }
 0x227   : > { %vm414_vm8 = vmor %vm412_vm7, %vm413_vm6 }
 0x228   : > { %v408_v2 = vmul.f32 %v661_v0, %v407_v1  ;;  %v500_v1 = vld [vmem:[%s800_s5 + $0x1] sm:$0x1] }
 0x22a   : > { %v409_v3 = vmul.f32 0.5, %v408_v2 }
 0x22b   : > { %v433_v12 = vpop.permute.xlu0 %432 }
 0x22c   : > { %v410_v4 = vsub.f32 1.5, %v409_v3 }
 0x22e   : > { %v411_v7 = vmul.f32 %v661_v0, %v410_v4 }
 0x230   : > { %v415_v6 = vsel %vm414_vm8, %v661_v0, %v411_v7 }
 0x231   : > { %v416_v8 = vmul.f32 %v415_v6, %v391_v49  ;;  %v427_v9 = vmul.f32 %v415_v6, %v393_v50 }
 0x233   : > { %v421_v10 = vmul.f32 %v419_v58, %v416_v8  ;;  %v428_v11 = vmul.f32 %v427_v9, %v419_v58 }
 0x235   : > { %v426_v13 = vadd.f32 %v424_v5, %v421_v10  ;;  %v429_v14 = vadd.f32 %v428_v11, %v424_v5 }
 0x237   : > { %v435_v15 = vmul.f32 %v433_v12, %v426_v13  ;;  %v438_v16 = vmul.f32 %v433_v12, %v429_v14  ;;  %vm430_vm9 = vcmp.ge.f32.partialorder %v426_v13, 0.0  ;;  %vm437_vm10 = vcmp.ge.f32.partialorder %v429_v14, 0.0 }
 0x239   : > { %v436_v19 = vsel %vm430_vm9, %v426_v13, %v435_v15  ;;  %v439_v20 = vsel %vm437_vm10, %v429_v14, %v438_v16 }
 0x23a   : > { %v446_v21 = vmul.f32 %v444_v17, %v436_v19  ;;  %v458_v22 = vmul.f32 %v456_v18, %v439_v20  ;;  %v474_v23 = vmul.f32 %v456_v18, %v436_v19  ;;  %v466_v47 = vmul.f32 %v444_v17, %v439_v20 }
 0x23c   : > { %v447_v24 = vsel %vm381_vm5, %v446_v21, 0.0  ;;  %v459_v25 = vsel %vm381_vm5, %v458_v22, 0.0  ;;  %v475_v26 = vsel %vm381_vm5, %v474_v23, 0.0  ;;  %v467_v49 = vsel %vm381_vm5, %v466_v47, 0.0 }
 0x23d   : > { %v448_v27 = vrot.slane %v447_v24, 4  ;;  %v460_v28 = vrot.slane %v459_v25, 4  ;;  %v476_v29 = vrot.slane %v475_v26, 4  ;;  %v468_v50 = vrot.slane %v467_v49, 4 }
 0x23e   : > { %vm546_vm5 = vcmask 713728  }
 0x23f   : > { %v449_v30 = vadd.f32 %v448_v27, %v447_v24  ;;  %v461_v31 = vadd.f32 %v460_v28, %v459_v25  ;;  %v477_v32 = vadd.f32 %v476_v29, %v475_v26  ;;  %v469_v53 = vadd.f32 %v468_v50, %v467_v49 }
 0x241   : > { %v450_v33 = vrot.slane %v449_v30, 2  ;;  %v478_v34 = vrot.slane %v477_v32, 2  ;;  %v462_v35 = vrot.slane %v461_v31, 2  ;;  %v470_v56 = vrot.slane %v469_v53, 2 }
 0x243   : > { %v479_v36 = vadd.f32 %v478_v34, %v477_v32  ;;  %v451_v37 = vadd.f32 %v450_v33, %v449_v30  ;;  %v463_v38 = vadd.f32 %v462_v35, %v461_v31  ;;  %v471_v59 = vadd.f32 %v470_v56, %v469_v53 }
 0x245   : > { %v480_v39 = vrot.slane %v479_v36, 1  ;;  %v452_v40 = vrot.slane %v451_v37, 1  ;;  %v464_v41 = vrot.slane %v463_v38, 1  ;;  %v472_v60 = vrot.slane %v471_v59, 1 }
 0x247   : > { %v481_v42 = vadd.f32 %v480_v39, %v479_v36  ;;  %v453_v43 = vadd.f32 %v452_v40, %v451_v37  ;;  %v465_v45 = vadd.f32 %v464_v41, %v463_v38  ;;  %v473_v61 = vadd.f32 %v472_v60, %v471_v59 }
 0x249   : > { %486 = vrot.lane.b32.xlu1 %v481_v42, %s685_s20  ;;  %483 = vrot.lane.b32.xlu2 %v481_v42, %s686_s23  ;;  %v491_v46 = vadd.f32 %v465_v45, %v453_v43 }
 0x251   : > { %493 = vperm.xlu2 %657, %v770_v44  }
 0x2a3   : > { %v484_v48 = vpop.permute.xlu2 %483 }
 0x2ab   : > { %v494_v52 = vpop.permute.xlu2 %493 }
 0x2ac   : > { %v496_v54 = vadd.f32 %v494_v52, %v491_v46 }
 0x2ae   : > { %v501_v55 = vmul.f32 %v499_v51, %v496_v54 }
 0x2b0   : > { %v502_v57 = vsub.f32 0.0, %v501_v55 }
 0x2b2   : > { %v503_v58 = vmul.f32 1.442695, %v502_v57 }
 0x2b4   : > { %662 = vpow2.f32 %v503_v58 }
 0x2ba   : > { %v663_v63 = vpop.eup %662 }
 0x2bb   : > { %v487_v44 = vpop.permute.xlu1 %486  ;;  %v505_v3 = vadd.f32 1.0, %v663_v63 }
 0x2bc   : > { %v490_v62 = vsel %vm489_vm11, %v484_v48, %v487_v44 }
 0x2bd   : > { %v497_v0 = vadd.f32 %v490_v62, %v473_v61  ;;  %664 = vrcp.f32 %v505_v3  ;;  %vm511_vm13 = vweird.f32 %v505_v3  ;;  %v517_v17 = vand.u32 2147483648, %v505_v3 }
 0x2be   : > { %v515_v19 = vand.u32 2147483647, %v505_v3 }
 0x2bf   : > { %v498_v2 = vadd.f32 %v497_v0, %v494_v52  ;;  %v518_v24 = vor.u32 1.1754944e-38, %v517_v17 }
 0x2c0   : > { %vm516_vm2 = vcmp.eq.f32.partialorder %v515_v19, 8.507059e+37 }
 0x2c1   : > { %v521_v4 = vmul.f32 %v500_v1, %v498_v2 }
 0x2c3   : > { %v522_v5 = vsub.f32 0.0, %v521_v4  ;;  %v665_v6 = vpop.eup %664 }
 0x2c4   : > { %v507_v9 = vmul.f32 %v665_v6, %v505_v3  ;;  %vm512_vm12 = vweird.f32 %v665_v6 }
 0x2c5   : > { %v523_v7 = vmul.f32 1.442695, %v522_v5  ;;  %vm513_vm15 = vmor %vm511_vm13, %vm512_vm12 }
 0x2c6   : > { %v508_v11 = vsub.f32 1.0, %v507_v9 }
 0x2c7   : > { %666 = vpow2.f32 %v523_v7 }
 0x2c8   : > { %v509_v12 = vmul.f32 %v665_v6, %v508_v11 }
 0x2ca   : > { %v510_v15 = vadd.f32 %v665_v6, %v509_v12 }
 0x2cc   : > { %v514_v22 = vsel %vm513_vm15, %v665_v6, %v510_v15 }
 0x2cd   : > { %v667_v8 = vpop.eup %666  ;;  %v519_v27 = vsel %vm516_vm2, %v518_v24, %v514_v22 }
 0x2ce   : > { %v525_v10 = vadd.f32 1.0, %v667_v8  ;;  %v520_v30 = vmul.f32 2.0, %v519_v27 }
 0x2d0   : > { %668 = vrcp.f32 %v525_v10  ;;  %v537_v18 = vand.u32 2147483648, %v525_v10  ;;  %v535_v21 = vand.u32 2147483647, %v525_v10  ;;  %vm531_vm0 = vweird.f32 %v525_v10 }
 0x2d2   : > { %v538_v25 = vor.u32 1.1754944e-38, %v537_v18  ;;  %vm536_vm3 = vcmp.eq.f32.partialorder %v535_v21, 8.507059e+37 }
 0x2d6   : > { %v669_v13 = vpop.eup %668 }
 0x2d7   : > { %v527_v14 = vmul.f32 %v669_v13, %v525_v10  ;;  %vm532_vm14 = vweird.f32 %v669_v13 }
 0x2d8   : > { %vm533_vm1 = vmor %vm531_vm0, %vm532_vm14 }
 0x2d9   : > { %v528_v16 = vsub.f32 1.0, %v527_v14 }
 0x2db   : > { %v529_v20 = vmul.f32 %v669_v13, %v528_v16 }
 0x2dd   : > { %v530_v23 = vadd.f32 %v669_v13, %v529_v20 }
 0x2df   : > { %v534_v26 = vsel %vm533_vm1, %v669_v13, %v530_v23 }
 0x2e0   : > { %v539_v28 = vsel %vm536_vm3, %v538_v25, %v534_v26 }
 0x2e1   : > { %v540_v29 = vmul.f32 2.0, %v539_v28 }
 0x2e3   : > { %v542_v31 = vrot.slane %v540_v29, 7 }
 0x2e5   : > { %v545_v32 = vsel %vm544_vm4, %v520_v30, %v542_v31 }
 0x2e6   : > { %547 = vst.msk [vmem:[%s249_s7] sm:$0x3] %vm546_vm5, %v545_v32 }
 0x2e7 PF: > { %s16_s21 = sadd.s32 1, %s676_s21  }
 0x2e8   : > { %p13_p4 = scmp.ge.s32.totalorder %s16_s21, 4  }
 0x2ea   :  { %15 = sbr.rel (!%p13_p4) target bundleno = 1 (0x1), region = 76 }

</bundles_post_ra>
